<compile_context>
chip_gen: v7x
topology: tpu7x:2x2x1
jax: 0.10.0
libtpu: 0.0.40
codegen_flags: <defaults>
</compile_context>

<pallas_src>
import functools

import jax
import jax.numpy as jnp
from jax.experimental import pallas as pl
from jax.experimental.pallas import tpu as pltpu


def _round_up(x, m):
    return (x + m - 1) // m * m


def get_hidden_layer_sizes(n_features, embedding_dim, n_hidden):
    # Linear interpolation between n_features and embedding_dim (exclusive).
    return [
        int(round(n_features + (embedding_dim - n_features) * (i + 1) / (n_hidden + 1)))
        for i in range(n_hidden)
    ]


# ----------------------------------------------------------------------------
# Fused Pallas kernel: all LSTM layers, whole sequence, one program.
# ----------------------------------------------------------------------------
def _encoder_kernel(x_ref, wih_ref, whh_ref, b_ref, y_ref, hN_ref, cN_ref,
                    *, seq_len, b_pad):
    # x_ref:   (T*Bp, P)      time-major, padded input (row block t = timestep t)
    # wih_ref: (L, P, 4P)     fused input->gate weights, gate order (i, f, g, o)
    # whh_ref: (L, P, 4P)     fused hidden->gate weights
    # b_ref:   (L, 1, 4P)     b_ih + b_hh per layer
    # y_ref:   (T*Bp, P)      last layer's hidden states (also reused as the
    #                         inter-layer ping-pong buffer, in-place safe
    #                         because each layer reads it fully before writing)
    # hN_ref:  (Bp, P)        final hidden state of the last layer
    # cN_ref:  (Bp, P)        final cell state of the last layer
    P = x_ref.shape[-1]
    L = wih_ref.shape[0]
    T = seq_len
    Bp = b_pad

    h = jnp.zeros((Bp, P), jnp.float32)
    c = jnp.zeros((Bp, P), jnp.float32)

    for l in range(L):                       # static unroll over the 5 layers
        src = x_ref if l == 0 else y_ref
        act = src[...]                        # (T*Bp, P), one VMEM load
        wih = wih_ref[l]                      # (P, 4P)
        whh = whh_ref[l]                      # (P, 4P)
        bias = b_ref[l]                       # (1, 4P), loaded once per layer

        # Hoisted input projection for the whole sequence: one MXU matmul,
        # lane-dense (4P = 128) output.
        proj = jnp.dot(act, wih, preferred_element_type=jnp.float32) + bias  # (T*Bp, 4P)

        h = jnp.zeros((Bp, P), jnp.float32)
        c = jnp.zeros((Bp, P), jnp.float32)
        hs = []
        for t in range(T):                    # static, fully unrolled recurrence
            gates = (jnp.dot(h, whh, preferred_element_type=jnp.float32)
                     + proj[t * Bp:(t + 1) * Bp, :])            # (Bp, 4P)
            i_g = jax.nn.sigmoid(gates[:, 0 * P:1 * P])
            f_g = jax.nn.sigmoid(gates[:, 1 * P:2 * P])
            g_g = jnp.tanh(gates[:, 2 * P:3 * P])
            o_g = jax.nn.sigmoid(gates[:, 3 * P:4 * P])
            c = f_g * c + i_g * g_g
            h = o_g * jnp.tanh(c)
            hs.append(h)

        # Single contiguous store of this layer's full output sequence.
        y_ref[...] = jnp.concatenate(hs, axis=0)                # (T*Bp, P)

    hN_ref[...] = h
    cN_ref[...] = c


def _encoder_pallas(x2d, wih_all, whh_all, b_all, *, seq_len, b_pad):
    TB, P = x2d.shape
    vmem = pl.BlockSpec(memory_space=pltpu.MemorySpace.VMEM)
    kernel = functools.partial(_encoder_kernel, seq_len=seq_len, b_pad=b_pad)
    return pl.pallas_call(
        kernel,
        out_shape=(
            jax.ShapeDtypeStruct((TB, P), jnp.float32),
            jax.ShapeDtypeStruct((b_pad, P), jnp.float32),
            jax.ShapeDtypeStruct((b_pad, P), jnp.float32),
        ),
        in_specs=[vmem, vmem, vmem, vmem],
        out_specs=(vmem, vmem, vmem),
    )(x2d, wih_all, whh_all, b_all)


# ----------------------------------------------------------------------------
# Parameters: PyTorch layout init + fused / padded re-layout for the kernel.
# ----------------------------------------------------------------------------
def init_lstm_params_torch(key, in_dim, hidden_dim):
    k = 1.0 / float(hidden_dim) ** 0.5
    k1, k2, k3, k4 = jax.random.split(key, 4)
    w_ih = jax.random.uniform(k1, (4 * hidden_dim, in_dim), jnp.float32, -k, k)
    w_hh = jax.random.uniform(k2, (4 * hidden_dim, hidden_dim), jnp.float32, -k, k)
    b_ih = jax.random.uniform(k3, (4 * hidden_dim,), jnp.float32, -k, k)
    b_hh = jax.random.uniform(k4, (4 * hidden_dim,), jnp.float32, -k, k)
    return w_ih, w_hh, b_ih, b_hh


def pack_params(raw_params, layer_sizes, P):
    """Stack + pad all layers: wih/whh -> (L, P, 4P), bias -> (L, 1, 4P)."""
    L = len(raw_params)
    wih_all = jnp.zeros((L, P, 4 * P), jnp.float32)
    whh_all = jnp.zeros((L, P, 4 * P), jnp.float32)
    b_all = jnp.zeros((L, 1, 4 * P), jnp.float32)
    for l, (w_ih, w_hh, b_ih, b_hh) in enumerate(raw_params):
        in_dim = layer_sizes[l]
        hid = layer_sizes[l + 1]

        def fuse(w, idim):
            # (4H, in) -> (4, H, in) -> pad -> (4, P, P) -> (in, gate, out) -> (P, 4P)
            w4 = w.reshape(4, hid, idim)
            w4 = jnp.pad(w4, ((0, 0), (0, P - hid), (0, P - idim)))
            return jnp.transpose(w4, (2, 0, 1)).reshape(P, 4 * P)

        wih_all = wih_all.at[l].set(fuse(w_ih, in_dim))
        whh_all = whh_all.at[l].set(fuse(w_hh, hid))
        b4 = (b_ih + b_hh).reshape(4, hid)
        b4 = jnp.pad(b4, ((0, 0), (0, P - hid))).reshape(1, 4 * P)
        b_all = b_all.at[l].set(b4)
    return wih_all, whh_all, b_all


# ----------------------------------------------------------------------------
# Encoder forward (layout glue in plain JAX, all compute in one Pallas call).
# ----------------------------------------------------------------------------
@functools.partial(jax.jit, static_argnames=("batch_size", "seq_len",
                                             "n_features", "embedding_dim"))
def encoder_forward(x, wih_all, whh_all, b_all, *, batch_size, seq_len,
                    n_features, embedding_dim):
    P = wih_all.shape[1]
    b_pad = _round_up(batch_size, 8)

    x = x.reshape((batch_size, seq_len, n_features))
    x = jnp.transpose(x, (1, 0, 2))                       # time-major (T, B, F)
    x = jnp.pad(x, ((0, 0), (0, b_pad - batch_size), (0, P - n_features)))
    x2d = x.reshape(seq_len * b_pad, P)

    y2d, hN, cN = _encoder_pallas(x2d, wih_all, whh_all, b_all,
                                  seq_len=seq_len, b_pad=b_pad)

    y = y2d.reshape(seq_len, b_pad, P)[:, :batch_size, :embedding_dim]
    y = jnp.transpose(y, (1, 0, 2))                       # (B, T, embedding_dim)
    h_n = hN[:batch_size, :embedding_dim][None, :, :]
    c_n = cN[:batch_size, :embedding_dim][None, :, :]
    return y, (h_n, c_n)


# ----------------------------------------------------------------------------
# Pure-JAX reference (lax.scan, unpadded PyTorch-layout weights).
# ----------------------------------------------------------------------------
def _ref_layer(x_tm, w_ih, w_hh, b_ih, b_hh):
    T, B, _ = x_tm.shape
    H = w_hh.shape[1]
    b = b_ih + b_hh

    def step(carry, x_t):
        h, c = carry
        g = x_t @ w_ih.T + h @ w_hh.T + b
        i_g = jax.nn.sigmoid(g[:, 0 * H:1 * H])
        f_g = jax.nn.sigmoid(g[:, 1 * H:2 * H])
        g_g = jnp.tanh(g[:, 2 * H:3 * H])
        o_g = jax.nn.sigmoid(g[:, 3 * H:4 * H])
        c_new = f_g * c + i_g * g_g
        h_new = o_g * jnp.tanh(c_new)
        return (h_new, c_new), h_new

    init = (jnp.zeros((B, H), jnp.float32), jnp.zeros((B, H), jnp.float32))
    (hT, cT), ys = jax.lax.scan(step, init, x_tm)
    return ys, hT, cT


def _ref_forward(x, raw_params, batch_size, seq_len, n_features):
    x = x.reshape((batch_size, seq_len, n_features))
    x = jnp.transpose(x, (1, 0, 2))
    h = c = None
    for (w_ih, w_hh, b_ih, b_hh) in raw_params:
        x, h, c = _ref_layer(x, w_ih, w_hh, b_ih, b_hh)
    return jnp.transpose(x, (1, 0, 2)), (h[None], c[None])


if __name__ == "__main__":
    # Small shapes consistent with the module.
    batch_size = 2
    seq_len = 8
    n_features = 32
    embedding_dim = 16
    n_layer = 5

    hidden_sizes = get_hidden_layer_sizes(n_features, embedding_dim, n_layer - 1)
    layer_sizes = [n_features] + hidden_sizes + [embedding_dim]  # 6 entries -> 5 LSTMs

    # Common padded feature width (multiple of 32 so 4P is lane-dense).
    P = _round_up(max(layer_sizes), 32)

    key = jax.random.PRNGKey(0)
    key, xkey = jax.random.split(key)
    x = jax.random.normal(xkey, (batch_size, seq_len, n_features), jnp.float32)

    raw_params = []
    for li in range(n_layer):
        key, sub = jax.random.split(key)
        raw_params.append(init_lstm_params_torch(sub, layer_sizes[li], layer_sizes[li + 1]))

    wih_all, whh_all, b_all = pack_params(raw_params, layer_sizes, P)

    y, (h_n, c_n) = encoder_forward(
        x, wih_all, whh_all, b_all,
        batch_size=batch_size, seq_len=seq_len,
        n_features=n_features, embedding_dim=embedding_dim)
    jax.block_until_ready((y, h_n, c_n))

    # Sanity check against pure-JAX reference (unpadded weights).
    y_ref, (h_ref, c_ref) = _ref_forward(x, raw_params, batch_size, seq_len, n_features)
    assert y.shape == (batch_size, seq_len, embedding_dim)
    assert h_n.shape == (1, batch_size, embedding_dim)
    assert c_n.shape == (1, batch_size, embedding_dim)
    assert jnp.allclose(y, y_ref, atol=5e-5), "output mismatch"
    assert jnp.allclose(h_n, h_ref, atol=5e-5), "h_n mismatch"
    assert jnp.allclose(c_n, c_ref, atol=5e-5), "c_n mismatch"

    print("KERNEL_OK")
</pallas_src>

<mosaic_0001>
module attributes {stable_mosaic.version = 11 : i64} {
  func.func @_encoder_kernel(%arg0: memref<64x32xf32, #tpu.memory_space<vmem>>, %arg1: memref<5x32x128xf32, #tpu.memory_space<vmem>>, %arg2: memref<5x32x128xf32, #tpu.memory_space<vmem>>, %arg3: memref<5x1x128xf32, #tpu.memory_space<vmem>>, %arg4: memref<64x32xf32, #tpu.memory_space<vmem>>, %arg5: memref<8x32xf32, #tpu.memory_space<vmem>>, %arg6: memref<8x32xf32, #tpu.memory_space<vmem>>) attributes {dimension_semantics = [], scalar_prefetch = 0 : i64, scratch_operands = 0 : i64, tpu.core_type = #tpu.core_type<tc>} {
    %c0 = arith.constant 0 : index
    %c0_0 = arith.constant 0 : index
    %0 = vector.load %arg0[%c0, %c0_0] : memref<64x32xf32, #tpu.memory_space<vmem>>, vector<64x32xf32>
    %c0_1 = arith.constant 0 : index
    %c0_2 = arith.constant 0 : index
    %c0_3 = arith.constant 0 : index
    %1 = vector.load %arg1[%c0_1, %c0_2, %c0_3] : memref<5x32x128xf32, #tpu.memory_space<vmem>>, vector<1x32x128xf32>
    %2 = vector.shape_cast %1 : vector<1x32x128xf32> to vector<32x128xf32>
    %c0_4 = arith.constant 0 : index
    %c0_5 = arith.constant 0 : index
    %c0_6 = arith.constant 0 : index
    %3 = vector.load %arg2[%c0_4, %c0_5, %c0_6] : memref<5x32x128xf32, #tpu.memory_space<vmem>>, vector<1x32x128xf32>
    %4 = vector.shape_cast %3 : vector<1x32x128xf32> to vector<32x128xf32>
    %c0_7 = arith.constant 0 : index
    %c0_8 = arith.constant 0 : index
    %c0_9 = arith.constant 0 : index
    %5 = vector.load %arg3[%c0_7, %c0_8, %c0_9] : memref<5x1x128xf32, #tpu.memory_space<vmem>>, vector<1x1x128xf32>
    %6 = vector.shape_cast %5 : vector<1x1x128xf32> to vector<1x128xf32>
    %cst = arith.constant dense<0.000000e+00> : vector<64x128xf32>
    %7 = tpu.matmul %0, %2, %cst {dimension_numbers = #tpu.dot_dimension_numbers<[1], [0], [0], [1], [0, 0, 1, 1], [], []>} : vector<64x32xf32>, vector<32x128xf32>, vector<64x128xf32> -> vector<64x128xf32>
    %8 = vector.broadcast %6 : vector<1x128xf32> to vector<64x128xf32>
    %9 = arith.addf %7, %8 : vector<64x128xf32>
    %cst_10 = arith.constant 0.000000e+00 : f32
    %10 = vector.broadcast %cst_10 : f32 to vector<8x32xf32>
    %cst_11 = arith.constant 0.000000e+00 : f32
    %11 = vector.broadcast %cst_11 : f32 to vector<8x32xf32>
    %cst_12 = arith.constant dense<0.000000e+00> : vector<8x128xf32>
    %12 = tpu.matmul %10, %4, %cst_12 {dimension_numbers = #tpu.dot_dimension_numbers<[1], [0], [0], [1], [0, 0, 1, 1], [], []>} : vector<8x32xf32>, vector<32x128xf32>, vector<8x128xf32> -> vector<8x128xf32>
    %13 = vector.extract_strided_slice %9 {offsets = [0, 0], sizes = [8, 128], strides = [1, 1]} : vector<64x128xf32> to vector<8x128xf32>
    %14 = arith.addf %12, %13 : vector<8x128xf32>
    %15 = vector.extract_strided_slice %14 {offsets = [0, 0], sizes = [8, 32], strides = [1, 1]} : vector<8x128xf32> to vector<8x32xf32>
    %16 = arith.negf %15 : vector<8x32xf32>
    %17 = math.exp %16 : vector<8x32xf32>
    %cst_13 = arith.constant 1.000000e+00 : f32
    %18 = vector.broadcast %cst_13 : f32 to vector<8x32xf32>
    %19 = arith.addf %18, %17 : vector<8x32xf32>
    %20 = arith.divf %18, %19 : vector<8x32xf32>
    %21 = vector.extract_strided_slice %14 {offsets = [0, 32], sizes = [8, 32], strides = [1, 1]} : vector<8x128xf32> to vector<8x32xf32>
    %22 = arith.negf %21 : vector<8x32xf32>
    %23 = math.exp %22 : vector<8x32xf32>
    %cst_14 = arith.constant 1.000000e+00 : f32
    %24 = vector.broadcast %cst_14 : f32 to vector<8x32xf32>
    %25 = arith.addf %24, %23 : vector<8x32xf32>
    %26 = arith.divf %24, %25 : vector<8x32xf32>
    %27 = vector.extract_strided_slice %14 {offsets = [0, 64], sizes = [8, 32], strides = [1, 1]} : vector<8x128xf32> to vector<8x32xf32>
    %28 = math.tanh %27 : vector<8x32xf32>
    %29 = vector.extract_strided_slice %14 {offsets = [0, 96], sizes = [8, 32], strides = [1, 1]} : vector<8x128xf32> to vector<8x32xf32>
    %30 = arith.negf %29 : vector<8x32xf32>
    %31 = math.exp %30 : vector<8x32xf32>
    %cst_15 = arith.constant 1.000000e+00 : f32
    %32 = vector.broadcast %cst_15 : f32 to vector<8x32xf32>
    %33 = arith.addf %32, %31 : vector<8x32xf32>
    %34 = arith.divf %32, %33 : vector<8x32xf32>
    %35 = arith.mulf %26, %11 : vector<8x32xf32>
    %36 = arith.mulf %20, %28 : vector<8x32xf32>
    %37 = arith.addf %35, %36 : vector<8x32xf32>
    %38 = math.tanh %37 : vector<8x32xf32>
    %39 = arith.mulf %34, %38 : vector<8x32xf32>
    %cst_16 = arith.constant dense<0.000000e+00> : vector<8x128xf32>
    %40 = tpu.matmul %39, %4, %cst_16 {dimension_numbers = #tpu.dot_dimension_numbers<[1], [0], [0], [1], [0, 0, 1, 1], [], []>} : vector<8x32xf32>, vector<32x128xf32>, vector<8x128xf32> -> vector<8x128xf32>
    %41 = vector.extract_strided_slice %9 {offsets = [8, 0], sizes = [8, 128], strides = [1, 1]} : vector<64x128xf32> to vector<8x128xf32>
    %42 = arith.addf %40, %41 : vector<8x128xf32>
    %43 = vector.extract_strided_slice %42 {offsets = [0, 0], sizes = [8, 32], strides = [1, 1]} : vector<8x128xf32> to vector<8x32xf32>
    %44 = arith.negf %43 : vector<8x32xf32>
    %45 = math.exp %44 : vector<8x32xf32>
    %cst_17 = arith.constant 1.000000e+00 : f32
    %46 = vector.broadcast %cst_17 : f32 to vector<8x32xf32>
    %47 = arith.addf %46, %45 : vector<8x32xf32>
    %48 = arith.divf %46, %47 : vector<8x32xf32>
    %49 = vector.extract_strided_slice %42 {offsets = [0, 32], sizes = [8, 32], strides = [1, 1]} : vector<8x128xf32> to vector<8x32xf32>
    %50 = arith.negf %49 : vector<8x32xf32>
    %51 = math.exp %50 : vector<8x32xf32>
    %cst_18 = arith.constant 1.000000e+00 : f32
    %52 = vector.broadcast %cst_18 : f32 to vector<8x32xf32>
    %53 = arith.addf %52, %51 : vector<8x32xf32>
    %54 = arith.divf %52, %53 : vector<8x32xf32>
    %55 = vector.extract_strided_slice %42 {offsets = [0, 64], sizes = [8, 32], strides = [1, 1]} : vector<8x128xf32> to vector<8x32xf32>
    %56 = math.tanh %55 : vector<8x32xf32>
    %57 = vector.extract_strided_slice %42 {offsets = [0, 96], sizes = [8, 32], strides = [1, 1]} : vector<8x128xf32> to vector<8x32xf32>
    %58 = arith.negf %57 : vector<8x32xf32>
    %59 = math.exp %58 : vector<8x32xf32>
    %cst_19 = arith.constant 1.000000e+00 : f32
    %60 = vector.broadcast %cst_19 : f32 to vector<8x32xf32>
    %61 = arith.addf %60, %59 : vector<8x32xf32>
    %62 = arith.divf %60, %61 : vector<8x32xf32>
    %63 = arith.mulf %54, %37 : vector<8x32xf32>
    %64 = arith.mulf %48, %56 : vector<8x32xf32>
    %65 = arith.addf %63, %64 : vector<8x32xf32>
    %66 = math.tanh %65 : vector<8x32xf32>
    %67 = arith.mulf %62, %66 : vector<8x32xf32>
    %cst_20 = arith.constant dense<0.000000e+00> : vector<8x128xf32>
    %68 = tpu.matmul %67, %4, %cst_20 {dimension_numbers = #tpu.dot_dimension_numbers<[1], [0], [0], [1], [0, 0, 1, 1], [], []>} : vector<8x32xf32>, vector<32x128xf32>, vector<8x128xf32> -> vector<8x128xf32>
    %69 = vector.extract_strided_slice %9 {offsets = [16, 0], sizes = [8, 128], strides = [1, 1]} : vector<64x128xf32> to vector<8x128xf32>
    %70 = arith.addf %68, %69 : vector<8x128xf32>
    %71 = vector.extract_strided_slice %70 {offsets = [0, 0], sizes = [8, 32], strides = [1, 1]} : vector<8x128xf32> to vector<8x32xf32>
    %72 = arith.negf %71 : vector<8x32xf32>
    %73 = math.exp %72 : vector<8x32xf32>
    %cst_21 = arith.constant 1.000000e+00 : f32
    %74 = vector.broadcast %cst_21 : f32 to vector<8x32xf32>
    %75 = arith.addf %74, %73 : vector<8x32xf32>
    %76 = arith.divf %74, %75 : vector<8x32xf32>
    %77 = vector.extract_strided_slice %70 {offsets = [0, 32], sizes = [8, 32], strides = [1, 1]} : vector<8x128xf32> to vector<8x32xf32>
    %78 = arith.negf %77 : vector<8x32xf32>
    %79 = math.exp %78 : vector<8x32xf32>
    %cst_22 = arith.constant 1.000000e+00 : f32
    %80 = vector.broadcast %cst_22 : f32 to vector<8x32xf32>
    %81 = arith.addf %80, %79 : vector<8x32xf32>
    %82 = arith.divf %80, %81 : vector<8x32xf32>
    %83 = vector.extract_strided_slice %70 {offsets = [0, 64], sizes = [8, 32], strides = [1, 1]} : vector<8x128xf32> to vector<8x32xf32>
    %84 = math.tanh %83 : vector<8x32xf32>
    %85 = vector.extract_strided_slice %70 {offsets = [0, 96], sizes = [8, 32], strides = [1, 1]} : vector<8x128xf32> to vector<8x32xf32>
    %86 = arith.negf %85 : vector<8x32xf32>
    %87 = math.exp %86 : vector<8x32xf32>
    %cst_23 = arith.constant 1.000000e+00 : f32
    %88 = vector.broadcast %cst_23 : f32 to vector<8x32xf32>
    %89 = arith.addf %88, %87 : vector<8x32xf32>
    %90 = arith.divf %88, %89 : vector<8x32xf32>
    %91 = arith.mulf %82, %65 : vector<8x32xf32>
    %92 = arith.mulf %76, %84 : vector<8x32xf32>
    %93 = arith.addf %91, %92 : vector<8x32xf32>
    %94 = math.tanh %93 : vector<8x32xf32>
    %95 = arith.mulf %90, %94 : vector<8x32xf32>
    %cst_24 = arith.constant dense<0.000000e+00> : vector<8x128xf32>
    %96 = tpu.matmul %95, %4, %cst_24 {dimension_numbers = #tpu.dot_dimension_numbers<[1], [0], [0], [1], [0, 0, 1, 1], [], []>} : vector<8x32xf32>, vector<32x128xf32>, vector<8x128xf32> -> vector<8x128xf32>
    %97 = vector.extract_strided_slice %9 {offsets = [24, 0], sizes = [8, 128], strides = [1, 1]} : vector<64x128xf32> to vector<8x128xf32>
    %98 = arith.addf %96, %97 : vector<8x128xf32>
    %99 = vector.extract_strided_slice %98 {offsets = [0, 0], sizes = [8, 32], strides = [1, 1]} : vector<8x128xf32> to vector<8x32xf32>
    %100 = arith.negf %99 : vector<8x32xf32>
    %101 = math.exp %100 : vector<8x32xf32>
    %cst_25 = arith.constant 1.000000e+00 : f32
    %102 = vector.broadcast %cst_25 : f32 to vector<8x32xf32>
    %103 = arith.addf %102, %101 : vector<8x32xf32>
    %104 = arith.divf %102, %103 : vector<8x32xf32>
    %105 = vector.extract_strided_slice %98 {offsets = [0, 32], sizes = [8, 32], strides = [1, 1]} : vector<8x128xf32> to vector<8x32xf32>
    %106 = arith.negf %105 : vector<8x32xf32>
    %107 = math.exp %106 : vector<8x32xf32>
    %cst_26 = arith.constant 1.000000e+00 : f32
    %108 = vector.broadcast %cst_26 : f32 to vector<8x32xf32>
    %109 = arith.addf %108, %107 : vector<8x32xf32>
    %110 = arith.divf %108, %109 : vector<8x32xf32>
    %111 = vector.extract_strided_slice %98 {offsets = [0, 64], sizes = [8, 32], strides = [1, 1]} : vector<8x128xf32> to vector<8x32xf32>
    %112 = math.tanh %111 : vector<8x32xf32>
    %113 = vector.extract_strided_slice %98 {offsets = [0, 96], sizes = [8, 32], strides = [1, 1]} : vector<8x128xf32> to vector<8x32xf32>
    %114 = arith.negf %113 : vector<8x32xf32>
    %115 = math.exp %114 : vector<8x32xf32>
    %cst_27 = arith.constant 1.000000e+00 : f32
    %116 = vector.broadcast %cst_27 : f32 to vector<8x32xf32>
    %117 = arith.addf %116, %115 : vector<8x32xf32>
    %118 = arith.divf %116, %117 : vector<8x32xf32>
    %119 = arith.mulf %110, %93 : vector<8x32xf32>
    %120 = arith.mulf %104, %112 : vector<8x32xf32>
    %121 = arith.addf %119, %120 : vector<8x32xf32>
    %122 = math.tanh %121 : vector<8x32xf32>
    %123 = arith.mulf %118, %122 : vector<8x32xf32>
    %cst_28 = arith.constant dense<0.000000e+00> : vector<8x128xf32>
    %124 = tpu.matmul %123, %4, %cst_28 {dimension_numbers = #tpu.dot_dimension_numbers<[1], [0], [0], [1], [0, 0, 1, 1], [], []>} : vector<8x32xf32>, vector<32x128xf32>, vector<8x128xf32> -> vector<8x128xf32>
    %125 = vector.extract_strided_slice %9 {offsets = [32, 0], sizes = [8, 128], strides = [1, 1]} : vector<64x128xf32> to vector<8x128xf32>
    %126 = arith.addf %124, %125 : vector<8x128xf32>
    %127 = vector.extract_strided_slice %126 {offsets = [0, 0], sizes = [8, 32], strides = [1, 1]} : vector<8x128xf32> to vector<8x32xf32>
    %128 = arith.negf %127 : vector<8x32xf32>
    %129 = math.exp %128 : vector<8x32xf32>
    %cst_29 = arith.constant 1.000000e+00 : f32
    %130 = vector.broadcast %cst_29 : f32 to vector<8x32xf32>
    %131 = arith.addf %130, %129 : vector<8x32xf32>
    %132 = arith.divf %130, %131 : vector<8x32xf32>
    %133 = vector.extract_strided_slice %126 {offsets = [0, 32], sizes = [8, 32], strides = [1, 1]} : vector<8x128xf32> to vector<8x32xf32>
    %134 = arith.negf %133 : vector<8x32xf32>
    %135 = math.exp %134 : vector<8x32xf32>
    %cst_30 = arith.constant 1.000000e+00 : f32
    %136 = vector.broadcast %cst_30 : f32 to vector<8x32xf32>
    %137 = arith.addf %136, %135 : vector<8x32xf32>
    %138 = arith.divf %136, %137 : vector<8x32xf32>
    %139 = vector.extract_strided_slice %126 {offsets = [0, 64], sizes = [8, 32], strides = [1, 1]} : vector<8x128xf32> to vector<8x32xf32>
    %140 = math.tanh %139 : vector<8x32xf32>
    %141 = vector.extract_strided_slice %126 {offsets = [0, 96], sizes = [8, 32], strides = [1, 1]} : vector<8x128xf32> to vector<8x32xf32>
    %142 = arith.negf %141 : vector<8x32xf32>
    %143 = math.exp %142 : vector<8x32xf32>
    %cst_31 = arith.constant 1.000000e+00 : f32
    %144 = vector.broadcast %cst_31 : f32 to vector<8x32xf32>
    %145 = arith.addf %144, %143 : vector<8x32xf32>
    %146 = arith.divf %144, %145 : vector<8x32xf32>
    %147 = arith.mulf %138, %121 : vector<8x32xf32>
    %148 = arith.mulf %132, %140 : vector<8x32xf32>
    %149 = arith.addf %147, %148 : vector<8x32xf32>
    %150 = math.tanh %149 : vector<8x32xf32>
    %151 = arith.mulf %146, %150 : vector<8x32xf32>
    %cst_32 = arith.constant dense<0.000000e+00> : vector<8x128xf32>
    %152 = tpu.matmul %151, %4, %cst_32 {dimension_numbers = #tpu.dot_dimension_numbers<[1], [0], [0], [1], [0, 0, 1, 1], [], []>} : vector<8x32xf32>, vector<32x128xf32>, vector<8x128xf32> -> vector<8x128xf32>
    %153 = vector.extract_strided_slice %9 {offsets = [40, 0], sizes = [8, 128], strides = [1, 1]} : vector<64x128xf32> to vector<8x128xf32>
    %154 = arith.addf %152, %153 : vector<8x128xf32>
    %155 = vector.extract_strided_slice %154 {offsets = [0, 0], sizes = [8, 32], strides = [1, 1]} : vector<8x128xf32> to vector<8x32xf32>
    %156 = arith.negf %155 : vector<8x32xf32>
    %157 = math.exp %156 : vector<8x32xf32>
    %cst_33 = arith.constant 1.000000e+00 : f32
    %158 = vector.broadcast %cst_33 : f32 to vector<8x32xf32>
    %159 = arith.addf %158, %157 : vector<8x32xf32>
    %160 = arith.divf %158, %159 : vector<8x32xf32>
    %161 = vector.extract_strided_slice %154 {offsets = [0, 32], sizes = [8, 32], strides = [1, 1]} : vector<8x128xf32> to vector<8x32xf32>
    %162 = arith.negf %161 : vector<8x32xf32>
    %163 = math.exp %162 : vector<8x32xf32>
    %cst_34 = arith.constant 1.000000e+00 : f32
    %164 = vector.broadcast %cst_34 : f32 to vector<8x32xf32>
    %165 = arith.addf %164, %163 : vector<8x32xf32>
    %166 = arith.divf %164, %165 : vector<8x32xf32>
    %167 = vector.extract_strided_slice %154 {offsets = [0, 64], sizes = [8, 32], strides = [1, 1]} : vector<8x128xf32> to vector<8x32xf32>
    %168 = math.tanh %167 : vector<8x32xf32>
    %169 = vector.extract_strided_slice %154 {offsets = [0, 96], sizes = [8, 32], strides = [1, 1]} : vector<8x128xf32> to vector<8x32xf32>
    %170 = arith.negf %169 : vector<8x32xf32>
    %171 = math.exp %170 : vector<8x32xf32>
    %cst_35 = arith.constant 1.000000e+00 : f32
    %172 = vector.broadcast %cst_35 : f32 to vector<8x32xf32>
    %173 = arith.addf %172, %171 : vector<8x32xf32>
    %174 = arith.divf %172, %173 : vector<8x32xf32>
    %175 = arith.mulf %166, %149 : vector<8x32xf32>
    %176 = arith.mulf %160, %168 : vector<8x32xf32>
    %177 = arith.addf %175, %176 : vector<8x32xf32>
    %178 = math.tanh %177 : vector<8x32xf32>
    %179 = arith.mulf %174, %178 : vector<8x32xf32>
    %cst_36 = arith.constant dense<0.000000e+00> : vector<8x128xf32>
    %180 = tpu.matmul %179, %4, %cst_36 {dimension_numbers = #tpu.dot_dimension_numbers<[1], [0], [0], [1], [0, 0, 1, 1], [], []>} : vector<8x32xf32>, vector<32x128xf32>, vector<8x128xf32> -> vector<8x128xf32>
    %181 = vector.extract_strided_slice %9 {offsets = [48, 0], sizes = [8, 128], strides = [1, 1]} : vector<64x128xf32> to vector<8x128xf32>
    %182 = arith.addf %180, %181 : vector<8x128xf32>
    %183 = vector.extract_strided_slice %182 {offsets = [0, 0], sizes = [8, 32], strides = [1, 1]} : vector<8x128xf32> to vector<8x32xf32>
    %184 = arith.negf %183 : vector<8x32xf32>
    %185 = math.exp %184 : vector<8x32xf32>
    %cst_37 = arith.constant 1.000000e+00 : f32
    %186 = vector.broadcast %cst_37 : f32 to vector<8x32xf32>
    %187 = arith.addf %186, %185 : vector<8x32xf32>
    %188 = arith.divf %186, %187 : vector<8x32xf32>
    %189 = vector.extract_strided_slice %182 {offsets = [0, 32], sizes = [8, 32], strides = [1, 1]} : vector<8x128xf32> to vector<8x32xf32>
    %190 = arith.negf %189 : vector<8x32xf32>
    %191 = math.exp %190 : vector<8x32xf32>
    %cst_38 = arith.constant 1.000000e+00 : f32
    %192 = vector.broadcast %cst_38 : f32 to vector<8x32xf32>
    %193 = arith.addf %192, %191 : vector<8x32xf32>
    %194 = arith.divf %192, %193 : vector<8x32xf32>
    %195 = vector.extract_strided_slice %182 {offsets = [0, 64], sizes = [8, 32], strides = [1, 1]} : vector<8x128xf32> to vector<8x32xf32>
    %196 = math.tanh %195 : vector<8x32xf32>
    %197 = vector.extract_strided_slice %182 {offsets = [0, 96], sizes = [8, 32], strides = [1, 1]} : vector<8x128xf32> to vector<8x32xf32>
    %198 = arith.negf %197 : vector<8x32xf32>
    %199 = math.exp %198 : vector<8x32xf32>
    %cst_39 = arith.constant 1.000000e+00 : f32
    %200 = vector.broadcast %cst_39 : f32 to vector<8x32xf32>
    %201 = arith.addf %200, %199 : vector<8x32xf32>
    %202 = arith.divf %200, %201 : vector<8x32xf32>
    %203 = arith.mulf %194, %177 : vector<8x32xf32>
    %204 = arith.mulf %188, %196 : vector<8x32xf32>
    %205 = arith.addf %203, %204 : vector<8x32xf32>
    %206 = math.tanh %205 : vector<8x32xf32>
    %207 = arith.mulf %202, %206 : vector<8x32xf32>
    %cst_40 = arith.constant dense<0.000000e+00> : vector<8x128xf32>
    %208 = tpu.matmul %207, %4, %cst_40 {dimension_numbers = #tpu.dot_dimension_numbers<[1], [0], [0], [1], [0, 0, 1, 1], [], []>} : vector<8x32xf32>, vector<32x128xf32>, vector<8x128xf32> -> vector<8x128xf32>
    %209 = vector.extract_strided_slice %9 {offsets = [56, 0], sizes = [8, 128], strides = [1, 1]} : vector<64x128xf32> to vector<8x128xf32>
    %210 = arith.addf %208, %209 : vector<8x128xf32>
    %211 = vector.extract_strided_slice %210 {offsets = [0, 0], sizes = [8, 32], strides = [1, 1]} : vector<8x128xf32> to vector<8x32xf32>
    %212 = arith.negf %211 : vector<8x32xf32>
    %213 = math.exp %212 : vector<8x32xf32>
    %cst_41 = arith.constant 1.000000e+00 : f32
    %214 = vector.broadcast %cst_41 : f32 to vector<8x32xf32>
    %215 = arith.addf %214, %213 : vector<8x32xf32>
    %216 = arith.divf %214, %215 : vector<8x32xf32>
    %217 = vector.extract_strided_slice %210 {offsets = [0, 32], sizes = [8, 32], strides = [1, 1]} : vector<8x128xf32> to vector<8x32xf32>
    %218 = arith.negf %217 : vector<8x32xf32>
    %219 = math.exp %218 : vector<8x32xf32>
    %cst_42 = arith.constant 1.000000e+00 : f32
    %220 = vector.broadcast %cst_42 : f32 to vector<8x32xf32>
    %221 = arith.addf %220, %219 : vector<8x32xf32>
    %222 = arith.divf %220, %221 : vector<8x32xf32>
    %223 = vector.extract_strided_slice %210 {offsets = [0, 64], sizes = [8, 32], strides = [1, 1]} : vector<8x128xf32> to vector<8x32xf32>
    %224 = math.tanh %223 : vector<8x32xf32>
    %225 = vector.extract_strided_slice %210 {offsets = [0, 96], sizes = [8, 32], strides = [1, 1]} : vector<8x128xf32> to vector<8x32xf32>
    %226 = arith.negf %225 : vector<8x32xf32>
    %227 = math.exp %226 : vector<8x32xf32>
    %cst_43 = arith.constant 1.000000e+00 : f32
    %228 = vector.broadcast %cst_43 : f32 to vector<8x32xf32>
    %229 = arith.addf %228, %227 : vector<8x32xf32>
    %230 = arith.divf %228, %229 : vector<8x32xf32>
    %231 = arith.mulf %222, %205 : vector<8x32xf32>
    %232 = arith.mulf %216, %224 : vector<8x32xf32>
    %233 = arith.addf %231, %232 : vector<8x32xf32>
    %234 = math.tanh %233 : vector<8x32xf32>
    %235 = arith.mulf %230, %234 : vector<8x32xf32>
    %236 = tpu.concatenate %39, %67, %95, %123, %151, %179, %207, %235 in 0 : vector<8x32xf32>, vector<8x32xf32>, vector<8x32xf32>, vector<8x32xf32>, vector<8x32xf32>, vector<8x32xf32>, vector<8x32xf32>, vector<8x32xf32> -> vector<64x32xf32>
    %c0_44 = arith.constant 0 : index
    %c0_45 = arith.constant 0 : index
    %237 = vector.load %arg4[%c0_44, %c0_45] : memref<64x32xf32, #tpu.memory_space<vmem>>, vector<64x32xf32>
    tpu.vector_store %arg4[%c0_44, %c0_45], %236 {strides = array<i32>} : memref<64x32xf32, #tpu.memory_space<vmem>>, vector<64x32xf32>,
    %c0_46 = arith.constant 0 : index
    %c0_47 = arith.constant 0 : index
    %238 = vector.load %arg4[%c0_46, %c0_47] : memref<64x32xf32, #tpu.memory_space<vmem>>, vector<64x32xf32>
    %c1 = arith.constant 1 : index
    %c0_48 = arith.constant 0 : index
    %c0_49 = arith.constant 0 : index
    %239 = vector.load %arg1[%c1, %c0_48, %c0_49] : memref<5x32x128xf32, #tpu.memory_space<vmem>>, vector<1x32x128xf32>
    %240 = vector.shape_cast %239 : vector<1x32x128xf32> to vector<32x128xf32>
    %c1_50 = arith.constant 1 : index
    %c0_51 = arith.constant 0 : index
    %c0_52 = arith.constant 0 : index
    %241 = vector.load %arg2[%c1_50, %c0_51, %c0_52] : memref<5x32x128xf32, #tpu.memory_space<vmem>>, vector<1x32x128xf32>
    %242 = vector.shape_cast %241 : vector<1x32x128xf32> to vector<32x128xf32>
    %c1_53 = arith.constant 1 : index
    %c0_54 = arith.constant 0 : index
    %c0_55 = arith.constant 0 : index
    %243 = vector.load %arg3[%c1_53, %c0_54, %c0_55] : memref<5x1x128xf32, #tpu.memory_space<vmem>>, vector<1x1x128xf32>
    %244 = vector.shape_cast %243 : vector<1x1x128xf32> to vector<1x128xf32>
    %cst_56 = arith.constant dense<0.000000e+00> : vector<64x128xf32>
    %245 = tpu.matmul %238, %240, %cst_56 {dimension_numbers = #tpu.dot_dimension_numbers<[1], [0], [0], [1], [0, 0, 1, 1], [], []>} : vector<64x32xf32>, vector<32x128xf32>, vector<64x128xf32> -> vector<64x128xf32>
    %246 = vector.broadcast %244 : vector<1x128xf32> to vector<64x128xf32>
    %247 = arith.addf %245, %246 : vector<64x128xf32>
    %cst_57 = arith.constant 0.000000e+00 : f32
    %248 = vector.broadcast %cst_57 : f32 to vector<8x32xf32>
    %cst_58 = arith.constant 0.000000e+00 : f32
    %249 = vector.broadcast %cst_58 : f32 to vector<8x32xf32>
    %cst_59 = arith.constant dense<0.000000e+00> : vector<8x128xf32>
    %250 = tpu.matmul %248, %242, %cst_59 {dimension_numbers = #tpu.dot_dimension_numbers<[1], [0], [0], [1], [0, 0, 1, 1], [], []>} : vector<8x32xf32>, vector<32x128xf32>, vector<8x128xf32> -> vector<8x128xf32>
    %251 = vector.extract_strided_slice %247 {offsets = [0, 0], sizes = [8, 128], strides = [1, 1]} : vector<64x128xf32> to vector<8x128xf32>
    %252 = arith.addf %250, %251 : vector<8x128xf32>
    %253 = vector.extract_strided_slice %252 {offsets = [0, 0], sizes = [8, 32], strides = [1, 1]} : vector<8x128xf32> to vector<8x32xf32>
    %254 = arith.negf %253 : vector<8x32xf32>
    %255 = math.exp %254 : vector<8x32xf32>
    %cst_60 = arith.constant 1.000000e+00 : f32
    %256 = vector.broadcast %cst_60 : f32 to vector<8x32xf32>
    %257 = arith.addf %256, %255 : vector<8x32xf32>
    %258 = arith.divf %256, %257 : vector<8x32xf32>
    %259 = vector.extract_strided_slice %252 {offsets = [0, 32], sizes = [8, 32], strides = [1, 1]} : vector<8x128xf32> to vector<8x32xf32>
    %260 = arith.negf %259 : vector<8x32xf32>
    %261 = math.exp %260 : vector<8x32xf32>
    %cst_61 = arith.constant 1.000000e+00 : f32
    %262 = vector.broadcast %cst_61 : f32 to vector<8x32xf32>
    %263 = arith.addf %262, %261 : vector<8x32xf32>
    %264 = arith.divf %262, %263 : vector<8x32xf32>
    %265 = vector.extract_strided_slice %252 {offsets = [0, 64], sizes = [8, 32], strides = [1, 1]} : vector<8x128xf32> to vector<8x32xf32>
    %266 = math.tanh %265 : vector<8x32xf32>
    %267 = vector.extract_strided_slice %252 {offsets = [0, 96], sizes = [8, 32], strides = [1, 1]} : vector<8x128xf32> to vector<8x32xf32>
    %268 = arith.negf %267 : vector<8x32xf32>
    %269 = math.exp %268 : vector<8x32xf32>
    %cst_62 = arith.constant 1.000000e+00 : f32
    %270 = vector.broadcast %cst_62 : f32 to vector<8x32xf32>
    %271 = arith.addf %270, %269 : vector<8x32xf32>
    %272 = arith.divf %270, %271 : vector<8x32xf32>
    %273 = arith.mulf %264, %249 : vector<8x32xf32>
    %274 = arith.mulf %258, %266 : vector<8x32xf32>
    %275 = arith.addf %273, %274 : vector<8x32xf32>
    %276 = math.tanh %275 : vector<8x32xf32>
    %277 = arith.mulf %272, %276 : vector<8x32xf32>
    %cst_63 = arith.constant dense<0.000000e+00> : vector<8x128xf32>
    %278 = tpu.matmul %277, %242, %cst_63 {dimension_numbers = #tpu.dot_dimension_numbers<[1], [0], [0], [1], [0, 0, 1, 1], [], []>} : vector<8x32xf32>, vector<32x128xf32>, vector<8x128xf32> -> vector<8x128xf32>
    %279 = vector.extract_strided_slice %247 {offsets = [8, 0], sizes = [8, 128], strides = [1, 1]} : vector<64x128xf32> to vector<8x128xf32>
    %280 = arith.addf %278, %279 : vector<8x128xf32>
    %281 = vector.extract_strided_slice %280 {offsets = [0, 0], sizes = [8, 32], strides = [1, 1]} : vector<8x128xf32> to vector<8x32xf32>
    %282 = arith.negf %281 : vector<8x32xf32>
    %283 = math.exp %282 : vector<8x32xf32>
    %cst_64 = arith.constant 1.000000e+00 : f32
    %284 = vector.broadcast %cst_64 : f32 to vector<8x32xf32>
    %285 = arith.addf %284, %283 : vector<8x32xf32>
    %286 = arith.divf %284, %285 : vector<8x32xf32>
    %287 = vector.extract_strided_slice %280 {offsets = [0, 32], sizes = [8, 32], strides = [1, 1]} : vector<8x128xf32> to vector<8x32xf32>
    %288 = arith.negf %287 : vector<8x32xf32>
    %289 = math.exp %288 : vector<8x32xf32>
    %cst_65 = arith.constant 1.000000e+00 : f32
    %290 = vector.broadcast %cst_65 : f32 to vector<8x32xf32>
    %291 = arith.addf %290, %289 : vector<8x32xf32>
    %292 = arith.divf %290, %291 : vector<8x32xf32>
    %293 = vector.extract_strided_slice %280 {offsets = [0, 64], sizes = [8, 32], strides = [1, 1]} : vector<8x128xf32> to vector<8x32xf32>
    %294 = math.tanh %293 : vector<8x32xf32>
    %295 = vector.extract_strided_slice %280 {offsets = [0, 96], sizes = [8, 32], strides = [1, 1]} : vector<8x128xf32> to vector<8x32xf32>
    %296 = arith.negf %295 : vector<8x32xf32>
    %297 = math.exp %296 : vector<8x32xf32>
    %cst_66 = arith.constant 1.000000e+00 : f32
    %298 = vector.broadcast %cst_66 : f32 to vector<8x32xf32>
    %299 = arith.addf %298, %297 : vector<8x32xf32>
    %300 = arith.divf %298, %299 : vector<8x32xf32>
    %301 = arith.mulf %292, %275 : vector<8x32xf32>
    %302 = arith.mulf %286, %294 : vector<8x32xf32>
    %303 = arith.addf %301, %302 : vector<8x32xf32>
    %304 = math.tanh %303 : vector<8x32xf32>
    %305 = arith.mulf %300, %304 : vector<8x32xf32>
    %cst_67 = arith.constant dense<0.000000e+00> : vector<8x128xf32>
    %306 = tpu.matmul %305, %242, %cst_67 {dimension_numbers = #tpu.dot_dimension_numbers<[1], [0], [0], [1], [0, 0, 1, 1], [], []>} : vector<8x32xf32>, vector<32x128xf32>, vector<8x128xf32> -> vector<8x128xf32>
    %307 = vector.extract_strided_slice %247 {offsets = [16, 0], sizes = [8, 128], strides = [1, 1]} : vector<64x128xf32> to vector<8x128xf32>
    %308 = arith.addf %306, %307 : vector<8x128xf32>
    %309 = vector.extract_strided_slice %308 {offsets = [0, 0], sizes = [8, 32], strides = [1, 1]} : vector<8x128xf32> to vector<8x32xf32>
    %310 = arith.negf %309 : vector<8x32xf32>
    %311 = math.exp %310 : vector<8x32xf32>
    %cst_68 = arith.constant 1.000000e+00 : f32
    %312 = vector.broadcast %cst_68 : f32 to vector<8x32xf32>
    %313 = arith.addf %312, %311 : vector<8x32xf32>
    %314 = arith.divf %312, %313 : vector<8x32xf32>
    %315 = vector.extract_strided_slice %308 {offsets = [0, 32], sizes = [8, 32], strides = [1, 1]} : vector<8x128xf32> to vector<8x32xf32>
    %316 = arith.negf %315 : vector<8x32xf32>
    %317 = math.exp %316 : vector<8x32xf32>
    %cst_69 = arith.constant 1.000000e+00 : f32
    %318 = vector.broadcast %cst_69 : f32 to vector<8x32xf32>
    %319 = arith.addf %318, %317 : vector<8x32xf32>
    %320 = arith.divf %318, %319 : vector<8x32xf32>
    %321 = vector.extract_strided_slice %308 {offsets = [0, 64], sizes = [8, 32], strides = [1, 1]} : vector<8x128xf32> to vector<8x32xf32>
    %322 = math.tanh %321 : vector<8x32xf32>
    %323 = vector.extract_strided_slice %308 {offsets = [0, 96], sizes = [8, 32], strides = [1, 1]} : vector<8x128xf32> to vector<8x32xf32>
    %324 = arith.negf %323 : vector<8x32xf32>
    %325 = math.exp %324 : vector<8x32xf32>
    %cst_70 = arith.constant 1.000000e+00 : f32
    %326 = vector.broadcast %cst_70 : f32 to vector<8x32xf32>
    %327 = arith.addf %326, %325 : vector<8x32xf32>
    %328 = arith.divf %326, %327 : vector<8x32xf32>
    %329 = arith.mulf %320, %303 : vector<8x32xf32>
    %330 = arith.mulf %314, %322 : vector<8x32xf32>
    %331 = arith.addf %329, %330 : vector<8x32xf32>
    %332 = math.tanh %331 : vector<8x32xf32>
    %333 = arith.mulf %328, %332 : vector<8x32xf32>
    %cst_71 = arith.constant dense<0.000000e+00> : vector<8x128xf32>
    %334 = tpu.matmul %333, %242, %cst_71 {dimension_numbers = #tpu.dot_dimension_numbers<[1], [0], [0], [1], [0, 0, 1, 1], [], []>} : vector<8x32xf32>, vector<32x128xf32>, vector<8x128xf32> -> vector<8x128xf32>
    %335 = vector.extract_strided_slice %247 {offsets = [24, 0], sizes = [8, 128], strides = [1, 1]} : vector<64x128xf32> to vector<8x128xf32>
    %336 = arith.addf %334, %335 : vector<8x128xf32>
    %337 = vector.extract_strided_slice %336 {offsets = [0, 0], sizes = [8, 32], strides = [1, 1]} : vector<8x128xf32> to vector<8x32xf32>
    %338 = arith.negf %337 : vector<8x32xf32>
    %339 = math.exp %338 : vector<8x32xf32>
    %cst_72 = arith.constant 1.000000e+00 : f32
    %340 = vector.broadcast %cst_72 : f32 to vector<8x32xf32>
    %341 = arith.addf %340, %339 : vector<8x32xf32>
    %342 = arith.divf %340, %341 : vector<8x32xf32>
    %343 = vector.extract_strided_slice %336 {offsets = [0, 32], sizes = [8, 32], strides = [1, 1]} : vector<8x128xf32> to vector<8x32xf32>
    %344 = arith.negf %343 : vector<8x32xf32>
    %345 = math.exp %344 : vector<8x32xf32>
    %cst_73 = arith.constant 1.000000e+00 : f32
    %346 = vector.broadcast %cst_73 : f32 to vector<8x32xf32>
    %347 = arith.addf %346, %345 : vector<8x32xf32>
    %348 = arith.divf %346, %347 : vector<8x32xf32>
    %349 = vector.extract_strided_slice %336 {offsets = [0, 64], sizes = [8, 32], strides = [1, 1]} : vector<8x128xf32> to vector<8x32xf32>
    %350 = math.tanh %349 : vector<8x32xf32>
    %351 = vector.extract_strided_slice %336 {offsets = [0, 96], sizes = [8, 32], strides = [1, 1]} : vector<8x128xf32> to vector<8x32xf32>
    %352 = arith.negf %351 : vector<8x32xf32>
    %353 = math.exp %352 : vector<8x32xf32>
    %cst_74 = arith.constant 1.000000e+00 : f32
    %354 = vector.broadcast %cst_74 : f32 to vector<8x32xf32>
    %355 = arith.addf %354, %353 : vector<8x32xf32>
    %356 = arith.divf %354, %355 : vector<8x32xf32>
    %357 = arith.mulf %348, %331 : vector<8x32xf32>
    %358 = arith.mulf %342, %350 : vector<8x32xf32>
    %359 = arith.addf %357, %358 : vector<8x32xf32>
    %360 = math.tanh %359 : vector<8x32xf32>
    %361 = arith.mulf %356, %360 : vector<8x32xf32>
    %cst_75 = arith.constant dense<0.000000e+00> : vector<8x128xf32>
    %362 = tpu.matmul %361, %242, %cst_75 {dimension_numbers = #tpu.dot_dimension_numbers<[1], [0], [0], [1], [0, 0, 1, 1], [], []>} : vector<8x32xf32>, vector<32x128xf32>, vector<8x128xf32> -> vector<8x128xf32>
    %363 = vector.extract_strided_slice %247 {offsets = [32, 0], sizes = [8, 128], strides = [1, 1]} : vector<64x128xf32> to vector<8x128xf32>
    %364 = arith.addf %362, %363 : vector<8x128xf32>
    %365 = vector.extract_strided_slice %364 {offsets = [0, 0], sizes = [8, 32], strides = [1, 1]} : vector<8x128xf32> to vector<8x32xf32>
    %366 = arith.negf %365 : vector<8x32xf32>
    %367 = math.exp %366 : vector<8x32xf32>
    %cst_76 = arith.constant 1.000000e+00 : f32
    %368 = vector.broadcast %cst_76 : f32 to vector<8x32xf32>
    %369 = arith.addf %368, %367 : vector<8x32xf32>
    %370 = arith.divf %368, %369 : vector<8x32xf32>
    %371 = vector.extract_strided_slice %364 {offsets = [0, 32], sizes = [8, 32], strides = [1, 1]} : vector<8x128xf32> to vector<8x32xf32>
    %372 = arith.negf %371 : vector<8x32xf32>
    %373 = math.exp %372 : vector<8x32xf32>
    %cst_77 = arith.constant 1.000000e+00 : f32
    %374 = vector.broadcast %cst_77 : f32 to vector<8x32xf32>
    %375 = arith.addf %374, %373 : vector<8x32xf32>
    %376 = arith.divf %374, %375 : vector<8x32xf32>
    %377 = vector.extract_strided_slice %364 {offsets = [0, 64], sizes = [8, 32], strides = [1, 1]} : vector<8x128xf32> to vector<8x32xf32>
    %378 = math.tanh %377 : vector<8x32xf32>
    %379 = vector.extract_strided_slice %364 {offsets = [0, 96], sizes = [8, 32], strides = [1, 1]} : vector<8x128xf32> to vector<8x32xf32>
    %380 = arith.negf %379 : vector<8x32xf32>
    %381 = math.exp %380 : vector<8x32xf32>
    %cst_78 = arith.constant 1.000000e+00 : f32
    %382 = vector.broadcast %cst_78 : f32 to vector<8x32xf32>
    %383 = arith.addf %382, %381 : vector<8x32xf32>
    %384 = arith.divf %382, %383 : vector<8x32xf32>
    %385 = arith.mulf %376, %359 : vector<8x32xf32>
    %386 = arith.mulf %370, %378 : vector<8x32xf32>
    %387 = arith.addf %385, %386 : vector<8x32xf32>
    %388 = math.tanh %387 : vector<8x32xf32>
    %389 = arith.mulf %384, %388 : vector<8x32xf32>
    %cst_79 = arith.constant dense<0.000000e+00> : vector<8x128xf32>
    %390 = tpu.matmul %389, %242, %cst_79 {dimension_numbers = #tpu.dot_dimension_numbers<[1], [0], [0], [1], [0, 0, 1, 1], [], []>} : vector<8x32xf32>, vector<32x128xf32>, vector<8x128xf32> -> vector<8x128xf32>
    %391 = vector.extract_strided_slice %247 {offsets = [40, 0], sizes = [8, 128], strides = [1, 1]} : vector<64x128xf32> to vector<8x128xf32>
    %392 = arith.addf %390, %391 : vector<8x128xf32>
    %393 = vector.extract_strided_slice %392 {offsets = [0, 0], sizes = [8, 32], strides = [1, 1]} : vector<8x128xf32> to vector<8x32xf32>
    %394 = arith.negf %393 : vector<8x32xf32>
    %395 = math.exp %394 : vector<8x32xf32>
    %cst_80 = arith.constant 1.000000e+00 : f32
    %396 = vector.broadcast %cst_80 : f32 to vector<8x32xf32>
    %397 = arith.addf %396, %395 : vector<8x32xf32>
    %398 = arith.divf %396, %397 : vector<8x32xf32>
    %399 = vector.extract_strided_slice %392 {offsets = [0, 32], sizes = [8, 32], strides = [1, 1]} : vector<8x128xf32> to vector<8x32xf32>
    %400 = arith.negf %399 : vector<8x32xf32>
    %401 = math.exp %400 : vector<8x32xf32>
    %cst_81 = arith.constant 1.000000e+00 : f32
    %402 = vector.broadcast %cst_81 : f32 to vector<8x32xf32>
    %403 = arith.addf %402, %401 : vector<8x32xf32>
    %404 = arith.divf %402, %403 : vector<8x32xf32>
    %405 = vector.extract_strided_slice %392 {offsets = [0, 64], sizes = [8, 32], strides = [1, 1]} : vector<8x128xf32> to vector<8x32xf32>
    %406 = math.tanh %405 : vector<8x32xf32>
    %407 = vector.extract_strided_slice %392 {offsets = [0, 96], sizes = [8, 32], strides = [1, 1]} : vector<8x128xf32> to vector<8x32xf32>
    %408 = arith.negf %407 : vector<8x32xf32>
    %409 = math.exp %408 : vector<8x32xf32>
    %cst_82 = arith.constant 1.000000e+00 : f32
    %410 = vector.broadcast %cst_82 : f32 to vector<8x32xf32>
    %411 = arith.addf %410, %409 : vector<8x32xf32>
    %412 = arith.divf %410, %411 : vector<8x32xf32>
    %413 = arith.mulf %404, %387 : vector<8x32xf32>
    %414 = arith.mulf %398, %406 : vector<8x32xf32>
    %415 = arith.addf %413, %414 : vector<8x32xf32>
    %416 = math.tanh %415 : vector<8x32xf32>
    %417 = arith.mulf %412, %416 : vector<8x32xf32>
    %cst_83 = arith.constant dense<0.000000e+00> : vector<8x128xf32>
    %418 = tpu.matmul %417, %242, %cst_83 {dimension_numbers = #tpu.dot_dimension_numbers<[1], [0], [0], [1], [0, 0, 1, 1], [], []>} : vector<8x32xf32>, vector<32x128xf32>, vector<8x128xf32> -> vector<8x128xf32>
    %419 = vector.extract_strided_slice %247 {offsets = [48, 0], sizes = [8, 128], strides = [1, 1]} : vector<64x128xf32> to vector<8x128xf32>
    %420 = arith.addf %418, %419 : vector<8x128xf32>
    %421 = vector.extract_strided_slice %420 {offsets = [0, 0], sizes = [8, 32], strides = [1, 1]} : vector<8x128xf32> to vector<8x32xf32>
    %422 = arith.negf %421 : vector<8x32xf32>
    %423 = math.exp %422 : vector<8x32xf32>
    %cst_84 = arith.constant 1.000000e+00 : f32
    %424 = vector.broadcast %cst_84 : f32 to vector<8x32xf32>
    %425 = arith.addf %424, %423 : vector<8x32xf32>
    %426 = arith.divf %424, %425 : vector<8x32xf32>
    %427 = vector.extract_strided_slice %420 {offsets = [0, 32], sizes = [8, 32], strides = [1, 1]} : vector<8x128xf32> to vector<8x32xf32>
    %428 = arith.negf %427 : vector<8x32xf32>
    %429 = math.exp %428 : vector<8x32xf32>
    %cst_85 = arith.constant 1.000000e+00 : f32
    %430 = vector.broadcast %cst_85 : f32 to vector<8x32xf32>
    %431 = arith.addf %430, %429 : vector<8x32xf32>
    %432 = arith.divf %430, %431 : vector<8x32xf32>
    %433 = vector.extract_strided_slice %420 {offsets = [0, 64], sizes = [8, 32], strides = [1, 1]} : vector<8x128xf32> to vector<8x32xf32>
    %434 = math.tanh %433 : vector<8x32xf32>
    %435 = vector.extract_strided_slice %420 {offsets = [0, 96], sizes = [8, 32], strides = [1, 1]} : vector<8x128xf32> to vector<8x32xf32>
    %436 = arith.negf %435 : vector<8x32xf32>
    %437 = math.exp %436 : vector<8x32xf32>
    %cst_86 = arith.constant 1.000000e+00 : f32
    %438 = vector.broadcast %cst_86 : f32 to vector<8x32xf32>
    %439 = arith.addf %438, %437 : vector<8x32xf32>
    %440 = arith.divf %438, %439 : vector<8x32xf32>
    %441 = arith.mulf %432, %415 : vector<8x32xf32>
    %442 = arith.mulf %426, %434 : vector<8x32xf32>
    %443 = arith.addf %441, %442 : vector<8x32xf32>
    %444 = math.tanh %443 : vector<8x32xf32>
    %445 = arith.mulf %440, %444 : vector<8x32xf32>
    %cst_87 = arith.constant dense<0.000000e+00> : vector<8x128xf32>
    %446 = tpu.matmul %445, %242, %cst_87 {dimension_numbers = #tpu.dot_dimension_numbers<[1], [0], [0], [1], [0, 0, 1, 1], [], []>} : vector<8x32xf32>, vector<32x128xf32>, vector<8x128xf32> -> vector<8x128xf32>
    %447 = vector.extract_strided_slice %247 {offsets = [56, 0], sizes = [8, 128], strides = [1, 1]} : vector<64x128xf32> to vector<8x128xf32>
    %448 = arith.addf %446, %447 : vector<8x128xf32>
    %449 = vector.extract_strided_slice %448 {offsets = [0, 0], sizes = [8, 32], strides = [1, 1]} : vector<8x128xf32> to vector<8x32xf32>
    %450 = arith.negf %449 : vector<8x32xf32>
    %451 = math.exp %450 : vector<8x32xf32>
    %cst_88 = arith.constant 1.000000e+00 : f32
    %452 = vector.broadcast %cst_88 : f32 to vector<8x32xf32>
    %453 = arith.addf %452, %451 : vector<8x32xf32>
    %454 = arith.divf %452, %453 : vector<8x32xf32>
    %455 = vector.extract_strided_slice %448 {offsets = [0, 32], sizes = [8, 32], strides = [1, 1]} : vector<8x128xf32> to vector<8x32xf32>
    %456 = arith.negf %455 : vector<8x32xf32>
    %457 = math.exp %456 : vector<8x32xf32>
    %cst_89 = arith.constant 1.000000e+00 : f32
    %458 = vector.broadcast %cst_89 : f32 to vector<8x32xf32>
    %459 = arith.addf %458, %457 : vector<8x32xf32>
    %460 = arith.divf %458, %459 : vector<8x32xf32>
    %461 = vector.extract_strided_slice %448 {offsets = [0, 64], sizes = [8, 32], strides = [1, 1]} : vector<8x128xf32> to vector<8x32xf32>
    %462 = math.tanh %461 : vector<8x32xf32>
    %463 = vector.extract_strided_slice %448 {offsets = [0, 96], sizes = [8, 32], strides = [1, 1]} : vector<8x128xf32> to vector<8x32xf32>
    %464 = arith.negf %463 : vector<8x32xf32>
    %465 = math.exp %464 : vector<8x32xf32>
    %cst_90 = arith.constant 1.000000e+00 : f32
    %466 = vector.broadcast %cst_90 : f32 to vector<8x32xf32>
    %467 = arith.addf %466, %465 : vector<8x32xf32>
    %468 = arith.divf %466, %467 : vector<8x32xf32>
    %469 = arith.mulf %460, %443 : vector<8x32xf32>
    %470 = arith.mulf %454, %462 : vector<8x32xf32>
    %471 = arith.addf %469, %470 : vector<8x32xf32>
    %472 = math.tanh %471 : vector<8x32xf32>
    %473 = arith.mulf %468, %472 : vector<8x32xf32>
    %474 = tpu.concatenate %277, %305, %333, %361, %389, %417, %445, %473 in 0 : vector<8x32xf32>, vector<8x32xf32>, vector<8x32xf32>, vector<8x32xf32>, vector<8x32xf32>, vector<8x32xf32>, vector<8x32xf32>, vector<8x32xf32> -> vector<64x32xf32>
    %c0_91 = arith.constant 0 : index
    %c0_92 = arith.constant 0 : index
    %475 = vector.load %arg4[%c0_91, %c0_92] : memref<64x32xf32, #tpu.memory_space<vmem>>, vector<64x32xf32>
    tpu.vector_store %arg4[%c0_91, %c0_92], %474 {strides = array<i32>} : memref<64x32xf32, #tpu.memory_space<vmem>>, vector<64x32xf32>,
    %c0_93 = arith.constant 0 : index
    %c0_94 = arith.constant 0 : index
    %476 = vector.load %arg4[%c0_93, %c0_94] : memref<64x32xf32, #tpu.memory_space<vmem>>, vector<64x32xf32>
    %c2 = arith.constant 2 : index
    %c0_95 = arith.constant 0 : index
    %c0_96 = arith.constant 0 : index
    %477 = vector.load %arg1[%c2, %c0_95, %c0_96] : memref<5x32x128xf32, #tpu.memory_space<vmem>>, vector<1x32x128xf32>
    %478 = vector.shape_cast %477 : vector<1x32x128xf32> to vector<32x128xf32>
    %c2_97 = arith.constant 2 : index
    %c0_98 = arith.constant 0 : index
    %c0_99 = arith.constant 0 : index
    %479 = vector.load %arg2[%c2_97, %c0_98, %c0_99] : memref<5x32x128xf32, #tpu.memory_space<vmem>>, vector<1x32x128xf32>
    %480 = vector.shape_cast %479 : vector<1x32x128xf32> to vector<32x128xf32>
    %c2_100 = arith.constant 2 : index
    %c0_101 = arith.constant 0 : index
    %c0_102 = arith.constant 0 : index
    %481 = vector.load %arg3[%c2_100, %c0_101, %c0_102] : memref<5x1x128xf32, #tpu.memory_space<vmem>>, vector<1x1x128xf32>
    %482 = vector.shape_cast %481 : vector<1x1x128xf32> to vector<1x128xf32>
    %cst_103 = arith.constant dense<0.000000e+00> : vector<64x128xf32>
    %483 = tpu.matmul %476, %478, %cst_103 {dimension_numbers = #tpu.dot_dimension_numbers<[1], [0], [0], [1], [0, 0, 1, 1], [], []>} : vector<64x32xf32>, vector<32x128xf32>, vector<64x128xf32> -> vector<64x128xf32>
    %484 = vector.broadcast %482 : vector<1x128xf32> to vector<64x128xf32>
    %485 = arith.addf %483, %484 : vector<64x128xf32>
    %cst_104 = arith.constant 0.000000e+00 : f32
    %486 = vector.broadcast %cst_104 : f32 to vector<8x32xf32>
    %cst_105 = arith.constant 0.000000e+00 : f32
    %487 = vector.broadcast %cst_105 : f32 to vector<8x32xf32>
    %cst_106 = arith.constant dense<0.000000e+00> : vector<8x128xf32>
    %488 = tpu.matmul %486, %480, %cst_106 {dimension_numbers = #tpu.dot_dimension_numbers<[1], [0], [0], [1], [0, 0, 1, 1], [], []>} : vector<8x32xf32>, vector<32x128xf32>, vector<8x128xf32> -> vector<8x128xf32>
    %489 = vector.extract_strided_slice %485 {offsets = [0, 0], sizes = [8, 128], strides = [1, 1]} : vector<64x128xf32> to vector<8x128xf32>
    %490 = arith.addf %488, %489 : vector<8x128xf32>
    %491 = vector.extract_strided_slice %490 {offsets = [0, 0], sizes = [8, 32], strides = [1, 1]} : vector<8x128xf32> to vector<8x32xf32>
    %492 = arith.negf %491 : vector<8x32xf32>
    %493 = math.exp %492 : vector<8x32xf32>
    %cst_107 = arith.constant 1.000000e+00 : f32
    %494 = vector.broadcast %cst_107 : f32 to vector<8x32xf32>
    %495 = arith.addf %494, %493 : vector<8x32xf32>
    %496 = arith.divf %494, %495 : vector<8x32xf32>
    %497 = vector.extract_strided_slice %490 {offsets = [0, 32], sizes = [8, 32], strides = [1, 1]} : vector<8x128xf32> to vector<8x32xf32>
    %498 = arith.negf %497 : vector<8x32xf32>
    %499 = math.exp %498 : vector<8x32xf32>
    %cst_108 = arith.constant 1.000000e+00 : f32
    %500 = vector.broadcast %cst_108 : f32 to vector<8x32xf32>
    %501 = arith.addf %500, %499 : vector<8x32xf32>
    %502 = arith.divf %500, %501 : vector<8x32xf32>
    %503 = vector.extract_strided_slice %490 {offsets = [0, 64], sizes = [8, 32], strides = [1, 1]} : vector<8x128xf32> to vector<8x32xf32>
    %504 = math.tanh %503 : vector<8x32xf32>
    %505 = vector.extract_strided_slice %490 {offsets = [0, 96], sizes = [8, 32], strides = [1, 1]} : vector<8x128xf32> to vector<8x32xf32>
    %506 = arith.negf %505 : vector<8x32xf32>
    %507 = math.exp %506 : vector<8x32xf32>
    %cst_109 = arith.constant 1.000000e+00 : f32
    %508 = vector.broadcast %cst_109 : f32 to vector<8x32xf32>
    %509 = arith.addf %508, %507 : vector<8x32xf32>
    %510 = arith.divf %508, %509 : vector<8x32xf32>
    %511 = arith.mulf %502, %487 : vector<8x32xf32>
    %512 = arith.mulf %496, %504 : vector<8x32xf32>
    %513 = arith.addf %511, %512 : vector<8x32xf32>
    %514 = math.tanh %513 : vector<8x32xf32>
    %515 = arith.mulf %510, %514 : vector<8x32xf32>
    %cst_110 = arith.constant dense<0.000000e+00> : vector<8x128xf32>
    %516 = tpu.matmul %515, %480, %cst_110 {dimension_numbers = #tpu.dot_dimension_numbers<[1], [0], [0], [1], [0, 0, 1, 1], [], []>} : vector<8x32xf32>, vector<32x128xf32>, vector<8x128xf32> -> vector<8x128xf32>
    %517 = vector.extract_strided_slice %485 {offsets = [8, 0], sizes = [8, 128], strides = [1, 1]} : vector<64x128xf32> to vector<8x128xf32>
    %518 = arith.addf %516, %517 : vector<8x128xf32>
    %519 = vector.extract_strided_slice %518 {offsets = [0, 0], sizes = [8, 32], strides = [1, 1]} : vector<8x128xf32> to vector<8x32xf32>
    %520 = arith.negf %519 : vector<8x32xf32>
    %521 = math.exp %520 : vector<8x32xf32>
    %cst_111 = arith.constant 1.000000e+00 : f32
    %522 = vector.broadcast %cst_111 : f32 to vector<8x32xf32>
    %523 = arith.addf %522, %521 : vector<8x32xf32>
    %524 = arith.divf %522, %523 : vector<8x32xf32>
    %525 = vector.extract_strided_slice %518 {offsets = [0, 32], sizes = [8, 32], strides = [1, 1]} : vector<8x128xf32> to vector<8x32xf32>
    %526 = arith.negf %525 : vector<8x32xf32>
    %527 = math.exp %526 : vector<8x32xf32>
    %cst_112 = arith.constant 1.000000e+00 : f32
    %528 = vector.broadcast %cst_112 : f32 to vector<8x32xf32>
    %529 = arith.addf %528, %527 : vector<8x32xf32>
    %530 = arith.divf %528, %529 : vector<8x32xf32>
    %531 = vector.extract_strided_slice %518 {offsets = [0, 64], sizes = [8, 32], strides = [1, 1]} : vector<8x128xf32> to vector<8x32xf32>
    %532 = math.tanh %531 : vector<8x32xf32>
    %533 = vector.extract_strided_slice %518 {offsets = [0, 96], sizes = [8, 32], strides = [1, 1]} : vector<8x128xf32> to vector<8x32xf32>
    %534 = arith.negf %533 : vector<8x32xf32>
    %535 = math.exp %534 : vector<8x32xf32>
    %cst_113 = arith.constant 1.000000e+00 : f32
    %536 = vector.broadcast %cst_113 : f32 to vector<8x32xf32>
    %537 = arith.addf %536, %535 : vector<8x32xf32>
    %538 = arith.divf %536, %537 : vector<8x32xf32>
    %539 = arith.mulf %530, %513 : vector<8x32xf32>
    %540 = arith.mulf %524, %532 : vector<8x32xf32>
    %541 = arith.addf %539, %540 : vector<8x32xf32>
    %542 = math.tanh %541 : vector<8x32xf32>
    %543 = arith.mulf %538, %542 : vector<8x32xf32>
    %cst_114 = arith.constant dense<0.000000e+00> : vector<8x128xf32>
    %544 = tpu.matmul %543, %480, %cst_114 {dimension_numbers = #tpu.dot_dimension_numbers<[1], [0], [0], [1], [0, 0, 1, 1], [], []>} : vector<8x32xf32>, vector<32x128xf32>, vector<8x128xf32> -> vector<8x128xf32>
    %545 = vector.extract_strided_slice %485 {offsets = [16, 0], sizes = [8, 128], strides = [1, 1]} : vector<64x128xf32> to vector<8x128xf32>
    %546 = arith.addf %544, %545 : vector<8x128xf32>
    %547 = vector.extract_strided_slice %546 {offsets = [0, 0], sizes = [8, 32], strides = [1, 1]} : vector<8x128xf32> to vector<8x32xf32>
    %548 = arith.negf %547 : vector<8x32xf32>
    %549 = math.exp %548 : vector<8x32xf32>
    %cst_115 = arith.constant 1.000000e+00 : f32
    %550 = vector.broadcast %cst_115 : f32 to vector<8x32xf32>
    %551 = arith.addf %550, %549 : vector<8x32xf32>
    %552 = arith.divf %550, %551 : vector<8x32xf32>
    %553 = vector.extract_strided_slice %546 {offsets = [0, 32], sizes = [8, 32], strides = [1, 1]} : vector<8x128xf32> to vector<8x32xf32>
    %554 = arith.negf %553 : vector<8x32xf32>
    %555 = math.exp %554 : vector<8x32xf32>
    %cst_116 = arith.constant 1.000000e+00 : f32
    %556 = vector.broadcast %cst_116 : f32 to vector<8x32xf32>
    %557 = arith.addf %556, %555 : vector<8x32xf32>
    %558 = arith.divf %556, %557 : vector<8x32xf32>
    %559 = vector.extract_strided_slice %546 {offsets = [0, 64], sizes = [8, 32], strides = [1, 1]} : vector<8x128xf32> to vector<8x32xf32>
    %560 = math.tanh %559 : vector<8x32xf32>
    %561 = vector.extract_strided_slice %546 {offsets = [0, 96], sizes = [8, 32], strides = [1, 1]} : vector<8x128xf32> to vector<8x32xf32>
    %562 = arith.negf %561 : vector<8x32xf32>
    %563 = math.exp %562 : vector<8x32xf32>
    %cst_117 = arith.constant 1.000000e+00 : f32
    %564 = vector.broadcast %cst_117 : f32 to vector<8x32xf32>
    %565 = arith.addf %564, %563 : vector<8x32xf32>
    %566 = arith.divf %564, %565 : vector<8x32xf32>
    %567 = arith.mulf %558, %541 : vector<8x32xf32>
    %568 = arith.mulf %552, %560 : vector<8x32xf32>
    %569 = arith.addf %567, %568 : vector<8x32xf32>
    %570 = math.tanh %569 : vector<8x32xf32>
    %571 = arith.mulf %566, %570 : vector<8x32xf32>
    %cst_118 = arith.constant dense<0.000000e+00> : vector<8x128xf32>
    %572 = tpu.matmul %571, %480, %cst_118 {dimension_numbers = #tpu.dot_dimension_numbers<[1], [0], [0], [1], [0, 0, 1, 1], [], []>} : vector<8x32xf32>, vector<32x128xf32>, vector<8x128xf32> -> vector<8x128xf32>
    %573 = vector.extract_strided_slice %485 {offsets = [24, 0], sizes = [8, 128], strides = [1, 1]} : vector<64x128xf32> to vector<8x128xf32>
    %574 = arith.addf %572, %573 : vector<8x128xf32>
    %575 = vector.extract_strided_slice %574 {offsets = [0, 0], sizes = [8, 32], strides = [1, 1]} : vector<8x128xf32> to vector<8x32xf32>
    %576 = arith.negf %575 : vector<8x32xf32>
    %577 = math.exp %576 : vector<8x32xf32>
    %cst_119 = arith.constant 1.000000e+00 : f32
    %578 = vector.broadcast %cst_119 : f32 to vector<8x32xf32>
    %579 = arith.addf %578, %577 : vector<8x32xf32>
    %580 = arith.divf %578, %579 : vector<8x32xf32>
    %581 = vector.extract_strided_slice %574 {offsets = [0, 32], sizes = [8, 32], strides = [1, 1]} : vector<8x128xf32> to vector<8x32xf32>
    %582 = arith.negf %581 : vector<8x32xf32>
    %583 = math.exp %582 : vector<8x32xf32>
    %cst_120 = arith.constant 1.000000e+00 : f32
    %584 = vector.broadcast %cst_120 : f32 to vector<8x32xf32>
    %585 = arith.addf %584, %583 : vector<8x32xf32>
    %586 = arith.divf %584, %585 : vector<8x32xf32>
    %587 = vector.extract_strided_slice %574 {offsets = [0, 64], sizes = [8, 32], strides = [1, 1]} : vector<8x128xf32> to vector<8x32xf32>
    %588 = math.tanh %587 : vector<8x32xf32>
    %589 = vector.extract_strided_slice %574 {offsets = [0, 96], sizes = [8, 32], strides = [1, 1]} : vector<8x128xf32> to vector<8x32xf32>
    %590 = arith.negf %589 : vector<8x32xf32>
    %591 = math.exp %590 : vector<8x32xf32>
    %cst_121 = arith.constant 1.000000e+00 : f32
    %592 = vector.broadcast %cst_121 : f32 to vector<8x32xf32>
    %593 = arith.addf %592, %591 : vector<8x32xf32>
    %594 = arith.divf %592, %593 : vector<8x32xf32>
    %595 = arith.mulf %586, %569 : vector<8x32xf32>
    %596 = arith.mulf %580, %588 : vector<8x32xf32>
    %597 = arith.addf %595, %596 : vector<8x32xf32>
    %598 = math.tanh %597 : vector<8x32xf32>
    %599 = arith.mulf %594, %598 : vector<8x32xf32>
    %cst_122 = arith.constant dense<0.000000e+00> : vector<8x128xf32>
    %600 = tpu.matmul %599, %480, %cst_122 {dimension_numbers = #tpu.dot_dimension_numbers<[1], [0], [0], [1], [0, 0, 1, 1], [], []>} : vector<8x32xf32>, vector<32x128xf32>, vector<8x128xf32> -> vector<8x128xf32>
    %601 = vector.extract_strided_slice %485 {offsets = [32, 0], sizes = [8, 128], strides = [1, 1]} : vector<64x128xf32> to vector<8x128xf32>
    %602 = arith.addf %600, %601 : vector<8x128xf32>
    %603 = vector.extract_strided_slice %602 {offsets = [0, 0], sizes = [8, 32], strides = [1, 1]} : vector<8x128xf32> to vector<8x32xf32>
    %604 = arith.negf %603 : vector<8x32xf32>
    %605 = math.exp %604 : vector<8x32xf32>
    %cst_123 = arith.constant 1.000000e+00 : f32
    %606 = vector.broadcast %cst_123 : f32 to vector<8x32xf32>
    %607 = arith.addf %606, %605 : vector<8x32xf32>
    %608 = arith.divf %606, %607 : vector<8x32xf32>
    %609 = vector.extract_strided_slice %602 {offsets = [0, 32], sizes = [8, 32], strides = [1, 1]} : vector<8x128xf32> to vector<8x32xf32>
    %610 = arith.negf %609 : vector<8x32xf32>
    %611 = math.exp %610 : vector<8x32xf32>
    %cst_124 = arith.constant 1.000000e+00 : f32
    %612 = vector.broadcast %cst_124 : f32 to vector<8x32xf32>
    %613 = arith.addf %612, %611 : vector<8x32xf32>
    %614 = arith.divf %612, %613 : vector<8x32xf32>
    %615 = vector.extract_strided_slice %602 {offsets = [0, 64], sizes = [8, 32], strides = [1, 1]} : vector<8x128xf32> to vector<8x32xf32>
    %616 = math.tanh %615 : vector<8x32xf32>
    %617 = vector.extract_strided_slice %602 {offsets = [0, 96], sizes = [8, 32], strides = [1, 1]} : vector<8x128xf32> to vector<8x32xf32>
    %618 = arith.negf %617 : vector<8x32xf32>
    %619 = math.exp %618 : vector<8x32xf32>
    %cst_125 = arith.constant 1.000000e+00 : f32
    %620 = vector.broadcast %cst_125 : f32 to vector<8x32xf32>
    %621 = arith.addf %620, %619 : vector<8x32xf32>
    %622 = arith.divf %620, %621 : vector<8x32xf32>
    %623 = arith.mulf %614, %597 : vector<8x32xf32>
    %624 = arith.mulf %608, %616 : vector<8x32xf32>
    %625 = arith.addf %623, %624 : vector<8x32xf32>
    %626 = math.tanh %625 : vector<8x32xf32>
    %627 = arith.mulf %622, %626 : vector<8x32xf32>
    %cst_126 = arith.constant dense<0.000000e+00> : vector<8x128xf32>
    %628 = tpu.matmul %627, %480, %cst_126 {dimension_numbers = #tpu.dot_dimension_numbers<[1], [0], [0], [1], [0, 0, 1, 1], [], []>} : vector<8x32xf32>, vector<32x128xf32>, vector<8x128xf32> -> vector<8x128xf32>
    %629 = vector.extract_strided_slice %485 {offsets = [40, 0], sizes = [8, 128], strides = [1, 1]} : vector<64x128xf32> to vector<8x128xf32>
    %630 = arith.addf %628, %629 : vector<8x128xf32>
    %631 = vector.extract_strided_slice %630 {offsets = [0, 0], sizes = [8, 32], strides = [1, 1]} : vector<8x128xf32> to vector<8x32xf32>
    %632 = arith.negf %631 : vector<8x32xf32>
    %633 = math.exp %632 : vector<8x32xf32>
    %cst_127 = arith.constant 1.000000e+00 : f32
    %634 = vector.broadcast %cst_127 : f32 to vector<8x32xf32>
    %635 = arith.addf %634, %633 : vector<8x32xf32>
    %636 = arith.divf %634, %635 : vector<8x32xf32>
    %637 = vector.extract_strided_slice %630 {offsets = [0, 32], sizes = [8, 32], strides = [1, 1]} : vector<8x128xf32> to vector<8x32xf32>
    %638 = arith.negf %637 : vector<8x32xf32>
    %639 = math.exp %638 : vector<8x32xf32>
    %cst_128 = arith.constant 1.000000e+00 : f32
    %640 = vector.broadcast %cst_128 : f32 to vector<8x32xf32>
    %641 = arith.addf %640, %639 : vector<8x32xf32>
    %642 = arith.divf %640, %641 : vector<8x32xf32>
    %643 = vector.extract_strided_slice %630 {offsets = [0, 64], sizes = [8, 32], strides = [1, 1]} : vector<8x128xf32> to vector<8x32xf32>
    %644 = math.tanh %643 : vector<8x32xf32>
    %645 = vector.extract_strided_slice %630 {offsets = [0, 96], sizes = [8, 32], strides = [1, 1]} : vector<8x128xf32> to vector<8x32xf32>
    %646 = arith.negf %645 : vector<8x32xf32>
    %647 = math.exp %646 : vector<8x32xf32>
    %cst_129 = arith.constant 1.000000e+00 : f32
    %648 = vector.broadcast %cst_129 : f32 to vector<8x32xf32>
    %649 = arith.addf %648, %647 : vector<8x32xf32>
    %650 = arith.divf %648, %649 : vector<8x32xf32>
    %651 = arith.mulf %642, %625 : vector<8x32xf32>
    %652 = arith.mulf %636, %644 : vector<8x32xf32>
    %653 = arith.addf %651, %652 : vector<8x32xf32>
    %654 = math.tanh %653 : vector<8x32xf32>
    %655 = arith.mulf %650, %654 : vector<8x32xf32>
    %cst_130 = arith.constant dense<0.000000e+00> : vector<8x128xf32>
    %656 = tpu.matmul %655, %480, %cst_130 {dimension_numbers = #tpu.dot_dimension_numbers<[1], [0], [0], [1], [0, 0, 1, 1], [], []>} : vector<8x32xf32>, vector<32x128xf32>, vector<8x128xf32> -> vector<8x128xf32>
    %657 = vector.extract_strided_slice %485 {offsets = [48, 0], sizes = [8, 128], strides = [1, 1]} : vector<64x128xf32> to vector<8x128xf32>
    %658 = arith.addf %656, %657 : vector<8x128xf32>
    %659 = vector.extract_strided_slice %658 {offsets = [0, 0], sizes = [8, 32], strides = [1, 1]} : vector<8x128xf32> to vector<8x32xf32>
    %660 = arith.negf %659 : vector<8x32xf32>
    %661 = math.exp %660 : vector<8x32xf32>
    %cst_131 = arith.constant 1.000000e+00 : f32
    %662 = vector.broadcast %cst_131 : f32 to vector<8x32xf32>
    %663 = arith.addf %662, %661 : vector<8x32xf32>
    %664 = arith.divf %662, %663 : vector<8x32xf32>
    %665 = vector.extract_strided_slice %658 {offsets = [0, 32], sizes = [8, 32], strides = [1, 1]} : vector<8x128xf32> to vector<8x32xf32>
    %666 = arith.negf %665 : vector<8x32xf32>
    %667 = math.exp %666 : vector<8x32xf32>
    %cst_132 = arith.constant 1.000000e+00 : f32
    %668 = vector.broadcast %cst_132 : f32 to vector<8x32xf32>
    %669 = arith.addf %668, %667 : vector<8x32xf32>
    %670 = arith.divf %668, %669 : vector<8x32xf32>
    %671 = vector.extract_strided_slice %658 {offsets = [0, 64], sizes = [8, 32], strides = [1, 1]} : vector<8x128xf32> to vector<8x32xf32>
    %672 = math.tanh %671 : vector<8x32xf32>
    %673 = vector.extract_strided_slice %658 {offsets = [0, 96], sizes = [8, 32], strides = [1, 1]} : vector<8x128xf32> to vector<8x32xf32>
    %674 = arith.negf %673 : vector<8x32xf32>
    %675 = math.exp %674 : vector<8x32xf32>
    %cst_133 = arith.constant 1.000000e+00 : f32
    %676 = vector.broadcast %cst_133 : f32 to vector<8x32xf32>
    %677 = arith.addf %676, %675 : vector<8x32xf32>
    %678 = arith.divf %676, %677 : vector<8x32xf32>
    %679 = arith.mulf %670, %653 : vector<8x32xf32>
    %680 = arith.mulf %664, %672 : vector<8x32xf32>
    %681 = arith.addf %679, %680 : vector<8x32xf32>
    %682 = math.tanh %681 : vector<8x32xf32>
    %683 = arith.mulf %678, %682 : vector<8x32xf32>
    %cst_134 = arith.constant dense<0.000000e+00> : vector<8x128xf32>
    %684 = tpu.matmul %683, %480, %cst_134 {dimension_numbers = #tpu.dot_dimension_numbers<[1], [0], [0], [1], [0, 0, 1, 1], [], []>} : vector<8x32xf32>, vector<32x128xf32>, vector<8x128xf32> -> vector<8x128xf32>
    %685 = vector.extract_strided_slice %485 {offsets = [56, 0], sizes = [8, 128], strides = [1, 1]} : vector<64x128xf32> to vector<8x128xf32>
    %686 = arith.addf %684, %685 : vector<8x128xf32>
    %687 = vector.extract_strided_slice %686 {offsets = [0, 0], sizes = [8, 32], strides = [1, 1]} : vector<8x128xf32> to vector<8x32xf32>
    %688 = arith.negf %687 : vector<8x32xf32>
    %689 = math.exp %688 : vector<8x32xf32>
    %cst_135 = arith.constant 1.000000e+00 : f32
    %690 = vector.broadcast %cst_135 : f32 to vector<8x32xf32>
    %691 = arith.addf %690, %689 : vector<8x32xf32>
    %692 = arith.divf %690, %691 : vector<8x32xf32>
    %693 = vector.extract_strided_slice %686 {offsets = [0, 32], sizes = [8, 32], strides = [1, 1]} : vector<8x128xf32> to vector<8x32xf32>
    %694 = arith.negf %693 : vector<8x32xf32>
    %695 = math.exp %694 : vector<8x32xf32>
    %cst_136 = arith.constant 1.000000e+00 : f32
    %696 = vector.broadcast %cst_136 : f32 to vector<8x32xf32>
    %697 = arith.addf %696, %695 : vector<8x32xf32>
    %698 = arith.divf %696, %697 : vector<8x32xf32>
    %699 = vector.extract_strided_slice %686 {offsets = [0, 64], sizes = [8, 32], strides = [1, 1]} : vector<8x128xf32> to vector<8x32xf32>
    %700 = math.tanh %699 : vector<8x32xf32>
    %701 = vector.extract_strided_slice %686 {offsets = [0, 96], sizes = [8, 32], strides = [1, 1]} : vector<8x128xf32> to vector<8x32xf32>
    %702 = arith.negf %701 : vector<8x32xf32>
    %703 = math.exp %702 : vector<8x32xf32>
    %cst_137 = arith.constant 1.000000e+00 : f32
    %704 = vector.broadcast %cst_137 : f32 to vector<8x32xf32>
    %705 = arith.addf %704, %703 : vector<8x32xf32>
    %706 = arith.divf %704, %705 : vector<8x32xf32>
    %707 = arith.mulf %698, %681 : vector<8x32xf32>
    %708 = arith.mulf %692, %700 : vector<8x32xf32>
    %709 = arith.addf %707, %708 : vector<8x32xf32>
    %710 = math.tanh %709 : vector<8x32xf32>
    %711 = arith.mulf %706, %710 : vector<8x32xf32>
    %712 = tpu.concatenate %515, %543, %571, %599, %627, %655, %683, %711 in 0 : vector<8x32xf32>, vector<8x32xf32>, vector<8x32xf32>, vector<8x32xf32>, vector<8x32xf32>, vector<8x32xf32>, vector<8x32xf32>, vector<8x32xf32> -> vector<64x32xf32>
    %c0_138 = arith.constant 0 : index
    %c0_139 = arith.constant 0 : index
    %713 = vector.load %arg4[%c0_138, %c0_139] : memref<64x32xf32, #tpu.memory_space<vmem>>, vector<64x32xf32>
    tpu.vector_store %arg4[%c0_138, %c0_139], %712 {strides = array<i32>} : memref<64x32xf32, #tpu.memory_space<vmem>>, vector<64x32xf32>,
    %c0_140 = arith.constant 0 : index
    %c0_141 = arith.constant 0 : index
    %714 = vector.load %arg4[%c0_140, %c0_141] : memref<64x32xf32, #tpu.memory_space<vmem>>, vector<64x32xf32>
    %c3 = arith.constant 3 : index
    %c0_142 = arith.constant 0 : index
    %c0_143 = arith.constant 0 : index
    %715 = vector.load %arg1[%c3, %c0_142, %c0_143] : memref<5x32x128xf32, #tpu.memory_space<vmem>>, vector<1x32x128xf32>
    %716 = vector.shape_cast %715 : vector<1x32x128xf32> to vector<32x128xf32>
    %c3_144 = arith.constant 3 : index
    %c0_145 = arith.constant 0 : index
    %c0_146 = arith.constant 0 : index
    %717 = vector.load %arg2[%c3_144, %c0_145, %c0_146] : memref<5x32x128xf32, #tpu.memory_space<vmem>>, vector<1x32x128xf32>
    %718 = vector.shape_cast %717 : vector<1x32x128xf32> to vector<32x128xf32>
    %c3_147 = arith.constant 3 : index
    %c0_148 = arith.constant 0 : index
    %c0_149 = arith.constant 0 : index
    %719 = vector.load %arg3[%c3_147, %c0_148, %c0_149] : memref<5x1x128xf32, #tpu.memory_space<vmem>>, vector<1x1x128xf32>
    %720 = vector.shape_cast %719 : vector<1x1x128xf32> to vector<1x128xf32>
    %cst_150 = arith.constant dense<0.000000e+00> : vector<64x128xf32>
    %721 = tpu.matmul %714, %716, %cst_150 {dimension_numbers = #tpu.dot_dimension_numbers<[1], [0], [0], [1], [0, 0, 1, 1], [], []>} : vector<64x32xf32>, vector<32x128xf32>, vector<64x128xf32> -> vector<64x128xf32>
    %722 = vector.broadcast %720 : vector<1x128xf32> to vector<64x128xf32>
    %723 = arith.addf %721, %722 : vector<64x128xf32>
    %cst_151 = arith.constant 0.000000e+00 : f32
    %724 = vector.broadcast %cst_151 : f32 to vector<8x32xf32>
    %cst_152 = arith.constant 0.000000e+00 : f32
    %725 = vector.broadcast %cst_152 : f32 to vector<8x32xf32>
    %cst_153 = arith.constant dense<0.000000e+00> : vector<8x128xf32>
    %726 = tpu.matmul %724, %718, %cst_153 {dimension_numbers = #tpu.dot_dimension_numbers<[1], [0], [0], [1], [0, 0, 1, 1], [], []>} : vector<8x32xf32>, vector<32x128xf32>, vector<8x128xf32> -> vector<8x128xf32>
    %727 = vector.extract_strided_slice %723 {offsets = [0, 0], sizes = [8, 128], strides = [1, 1]} : vector<64x128xf32> to vector<8x128xf32>
    %728 = arith.addf %726, %727 : vector<8x128xf32>
    %729 = vector.extract_strided_slice %728 {offsets = [0, 0], sizes = [8, 32], strides = [1, 1]} : vector<8x128xf32> to vector<8x32xf32>
    %730 = arith.negf %729 : vector<8x32xf32>
    %731 = math.exp %730 : vector<8x32xf32>
    %cst_154 = arith.constant 1.000000e+00 : f32
    %732 = vector.broadcast %cst_154 : f32 to vector<8x32xf32>
    %733 = arith.addf %732, %731 : vector<8x32xf32>
    %734 = arith.divf %732, %733 : vector<8x32xf32>
    %735 = vector.extract_strided_slice %728 {offsets = [0, 32], sizes = [8, 32], strides = [1, 1]} : vector<8x128xf32> to vector<8x32xf32>
    %736 = arith.negf %735 : vector<8x32xf32>
    %737 = math.exp %736 : vector<8x32xf32>
    %cst_155 = arith.constant 1.000000e+00 : f32
    %738 = vector.broadcast %cst_155 : f32 to vector<8x32xf32>
    %739 = arith.addf %738, %737 : vector<8x32xf32>
    %740 = arith.divf %738, %739 : vector<8x32xf32>
    %741 = vector.extract_strided_slice %728 {offsets = [0, 64], sizes = [8, 32], strides = [1, 1]} : vector<8x128xf32> to vector<8x32xf32>
    %742 = math.tanh %741 : vector<8x32xf32>
    %743 = vector.extract_strided_slice %728 {offsets = [0, 96], sizes = [8, 32], strides = [1, 1]} : vector<8x128xf32> to vector<8x32xf32>
    %744 = arith.negf %743 : vector<8x32xf32>
    %745 = math.exp %744 : vector<8x32xf32>
    %cst_156 = arith.constant 1.000000e+00 : f32
    %746 = vector.broadcast %cst_156 : f32 to vector<8x32xf32>
    %747 = arith.addf %746, %745 : vector<8x32xf32>
    %748 = arith.divf %746, %747 : vector<8x32xf32>
    %749 = arith.mulf %740, %725 : vector<8x32xf32>
    %750 = arith.mulf %734, %742 : vector<8x32xf32>
    %751 = arith.addf %749, %750 : vector<8x32xf32>
    %752 = math.tanh %751 : vector<8x32xf32>
    %753 = arith.mulf %748, %752 : vector<8x32xf32>
    %cst_157 = arith.constant dense<0.000000e+00> : vector<8x128xf32>
    %754 = tpu.matmul %753, %718, %cst_157 {dimension_numbers = #tpu.dot_dimension_numbers<[1], [0], [0], [1], [0, 0, 1, 1], [], []>} : vector<8x32xf32>, vector<32x128xf32>, vector<8x128xf32> -> vector<8x128xf32>
    %755 = vector.extract_strided_slice %723 {offsets = [8, 0], sizes = [8, 128], strides = [1, 1]} : vector<64x128xf32> to vector<8x128xf32>
    %756 = arith.addf %754, %755 : vector<8x128xf32>
    %757 = vector.extract_strided_slice %756 {offsets = [0, 0], sizes = [8, 32], strides = [1, 1]} : vector<8x128xf32> to vector<8x32xf32>
    %758 = arith.negf %757 : vector<8x32xf32>
    %759 = math.exp %758 : vector<8x32xf32>
    %cst_158 = arith.constant 1.000000e+00 : f32
    %760 = vector.broadcast %cst_158 : f32 to vector<8x32xf32>
    %761 = arith.addf %760, %759 : vector<8x32xf32>
    %762 = arith.divf %760, %761 : vector<8x32xf32>
    %763 = vector.extract_strided_slice %756 {offsets = [0, 32], sizes = [8, 32], strides = [1, 1]} : vector<8x128xf32> to vector<8x32xf32>
    %764 = arith.negf %763 : vector<8x32xf32>
    %765 = math.exp %764 : vector<8x32xf32>
    %cst_159 = arith.constant 1.000000e+00 : f32
    %766 = vector.broadcast %cst_159 : f32 to vector<8x32xf32>
    %767 = arith.addf %766, %765 : vector<8x32xf32>
    %768 = arith.divf %766, %767 : vector<8x32xf32>
    %769 = vector.extract_strided_slice %756 {offsets = [0, 64], sizes = [8, 32], strides = [1, 1]} : vector<8x128xf32> to vector<8x32xf32>
    %770 = math.tanh %769 : vector<8x32xf32>
    %771 = vector.extract_strided_slice %756 {offsets = [0, 96], sizes = [8, 32], strides = [1, 1]} : vector<8x128xf32> to vector<8x32xf32>
    %772 = arith.negf %771 : vector<8x32xf32>
    %773 = math.exp %772 : vector<8x32xf32>
    %cst_160 = arith.constant 1.000000e+00 : f32
    %774 = vector.broadcast %cst_160 : f32 to vector<8x32xf32>
    %775 = arith.addf %774, %773 : vector<8x32xf32>
    %776 = arith.divf %774, %775 : vector<8x32xf32>
    %777 = arith.mulf %768, %751 : vector<8x32xf32>
    %778 = arith.mulf %762, %770 : vector<8x32xf32>
    %779 = arith.addf %777, %778 : vector<8x32xf32>
    %780 = math.tanh %779 : vector<8x32xf32>
    %781 = arith.mulf %776, %780 : vector<8x32xf32>
    %cst_161 = arith.constant dense<0.000000e+00> : vector<8x128xf32>
    %782 = tpu.matmul %781, %718, %cst_161 {dimension_numbers = #tpu.dot_dimension_numbers<[1], [0], [0], [1], [0, 0, 1, 1], [], []>} : vector<8x32xf32>, vector<32x128xf32>, vector<8x128xf32> -> vector<8x128xf32>
    %783 = vector.extract_strided_slice %723 {offsets = [16, 0], sizes = [8, 128], strides = [1, 1]} : vector<64x128xf32> to vector<8x128xf32>
    %784 = arith.addf %782, %783 : vector<8x128xf32>
    %785 = vector.extract_strided_slice %784 {offsets = [0, 0], sizes = [8, 32], strides = [1, 1]} : vector<8x128xf32> to vector<8x32xf32>
    %786 = arith.negf %785 : vector<8x32xf32>
    %787 = math.exp %786 : vector<8x32xf32>
    %cst_162 = arith.constant 1.000000e+00 : f32
    %788 = vector.broadcast %cst_162 : f32 to vector<8x32xf32>
    %789 = arith.addf %788, %787 : vector<8x32xf32>
    %790 = arith.divf %788, %789 : vector<8x32xf32>
    %791 = vector.extract_strided_slice %784 {offsets = [0, 32], sizes = [8, 32], strides = [1, 1]} : vector<8x128xf32> to vector<8x32xf32>
    %792 = arith.negf %791 : vector<8x32xf32>
    %793 = math.exp %792 : vector<8x32xf32>
    %cst_163 = arith.constant 1.000000e+00 : f32
    %794 = vector.broadcast %cst_163 : f32 to vector<8x32xf32>
    %795 = arith.addf %794, %793 : vector<8x32xf32>
    %796 = arith.divf %794, %795 : vector<8x32xf32>
    %797 = vector.extract_strided_slice %784 {offsets = [0, 64], sizes = [8, 32], strides = [1, 1]} : vector<8x128xf32> to vector<8x32xf32>
    %798 = math.tanh %797 : vector<8x32xf32>
    %799 = vector.extract_strided_slice %784 {offsets = [0, 96], sizes = [8, 32], strides = [1, 1]} : vector<8x128xf32> to vector<8x32xf32>
    %800 = arith.negf %799 : vector<8x32xf32>
    %801 = math.exp %800 : vector<8x32xf32>
    %cst_164 = arith.constant 1.000000e+00 : f32
    %802 = vector.broadcast %cst_164 : f32 to vector<8x32xf32>
    %803 = arith.addf %802, %801 : vector<8x32xf32>
    %804 = arith.divf %802, %803 : vector<8x32xf32>
    %805 = arith.mulf %796, %779 : vector<8x32xf32>
    %806 = arith.mulf %790, %798 : vector<8x32xf32>
    %807 = arith.addf %805, %806 : vector<8x32xf32>
    %808 = math.tanh %807 : vector<8x32xf32>
    %809 = arith.mulf %804, %808 : vector<8x32xf32>
    %cst_165 = arith.constant dense<0.000000e+00> : vector<8x128xf32>
    %810 = tpu.matmul %809, %718, %cst_165 {dimension_numbers = #tpu.dot_dimension_numbers<[1], [0], [0], [1], [0, 0, 1, 1], [], []>} : vector<8x32xf32>, vector<32x128xf32>, vector<8x128xf32> -> vector<8x128xf32>
    %811 = vector.extract_strided_slice %723 {offsets = [24, 0], sizes = [8, 128], strides = [1, 1]} : vector<64x128xf32> to vector<8x128xf32>
    %812 = arith.addf %810, %811 : vector<8x128xf32>
    %813 = vector.extract_strided_slice %812 {offsets = [0, 0], sizes = [8, 32], strides = [1, 1]} : vector<8x128xf32> to vector<8x32xf32>
    %814 = arith.negf %813 : vector<8x32xf32>
    %815 = math.exp %814 : vector<8x32xf32>
    %cst_166 = arith.constant 1.000000e+00 : f32
    %816 = vector.broadcast %cst_166 : f32 to vector<8x32xf32>
    %817 = arith.addf %816, %815 : vector<8x32xf32>
    %818 = arith.divf %816, %817 : vector<8x32xf32>
    %819 = vector.extract_strided_slice %812 {offsets = [0, 32], sizes = [8, 32], strides = [1, 1]} : vector<8x128xf32> to vector<8x32xf32>
    %820 = arith.negf %819 : vector<8x32xf32>
    %821 = math.exp %820 : vector<8x32xf32>
    %cst_167 = arith.constant 1.000000e+00 : f32
    %822 = vector.broadcast %cst_167 : f32 to vector<8x32xf32>
    %823 = arith.addf %822, %821 : vector<8x32xf32>
    %824 = arith.divf %822, %823 : vector<8x32xf32>
    %825 = vector.extract_strided_slice %812 {offsets = [0, 64], sizes = [8, 32], strides = [1, 1]} : vector<8x128xf32> to vector<8x32xf32>
    %826 = math.tanh %825 : vector<8x32xf32>
    %827 = vector.extract_strided_slice %812 {offsets = [0, 96], sizes = [8, 32], strides = [1, 1]} : vector<8x128xf32> to vector<8x32xf32>
    %828 = arith.negf %827 : vector<8x32xf32>
    %829 = math.exp %828 : vector<8x32xf32>
    %cst_168 = arith.constant 1.000000e+00 : f32
    %830 = vector.broadcast %cst_168 : f32 to vector<8x32xf32>
    %831 = arith.addf %830, %829 : vector<8x32xf32>
    %832 = arith.divf %830, %831 : vector<8x32xf32>
    %833 = arith.mulf %824, %807 : vector<8x32xf32>
    %834 = arith.mulf %818, %826 : vector<8x32xf32>
    %835 = arith.addf %833, %834 : vector<8x32xf32>
    %836 = math.tanh %835 : vector<8x32xf32>
    %837 = arith.mulf %832, %836 : vector<8x32xf32>
    %cst_169 = arith.constant dense<0.000000e+00> : vector<8x128xf32>
    %838 = tpu.matmul %837, %718, %cst_169 {dimension_numbers = #tpu.dot_dimension_numbers<[1], [0], [0], [1], [0, 0, 1, 1], [], []>} : vector<8x32xf32>, vector<32x128xf32>, vector<8x128xf32> -> vector<8x128xf32>
    %839 = vector.extract_strided_slice %723 {offsets = [32, 0], sizes = [8, 128], strides = [1, 1]} : vector<64x128xf32> to vector<8x128xf32>
    %840 = arith.addf %838, %839 : vector<8x128xf32>
    %841 = vector.extract_strided_slice %840 {offsets = [0, 0], sizes = [8, 32], strides = [1, 1]} : vector<8x128xf32> to vector<8x32xf32>
    %842 = arith.negf %841 : vector<8x32xf32>
    %843 = math.exp %842 : vector<8x32xf32>
    %cst_170 = arith.constant 1.000000e+00 : f32
    %844 = vector.broadcast %cst_170 : f32 to vector<8x32xf32>
    %845 = arith.addf %844, %843 : vector<8x32xf32>
    %846 = arith.divf %844, %845 : vector<8x32xf32>
    %847 = vector.extract_strided_slice %840 {offsets = [0, 32], sizes = [8, 32], strides = [1, 1]} : vector<8x128xf32> to vector<8x32xf32>
    %848 = arith.negf %847 : vector<8x32xf32>
    %849 = math.exp %848 : vector<8x32xf32>
    %cst_171 = arith.constant 1.000000e+00 : f32
    %850 = vector.broadcast %cst_171 : f32 to vector<8x32xf32>
    %851 = arith.addf %850, %849 : vector<8x32xf32>
    %852 = arith.divf %850, %851 : vector<8x32xf32>
    %853 = vector.extract_strided_slice %840 {offsets = [0, 64], sizes = [8, 32], strides = [1, 1]} : vector<8x128xf32> to vector<8x32xf32>
    %854 = math.tanh %853 : vector<8x32xf32>
    %855 = vector.extract_strided_slice %840 {offsets = [0, 96], sizes = [8, 32], strides = [1, 1]} : vector<8x128xf32> to vector<8x32xf32>
    %856 = arith.negf %855 : vector<8x32xf32>
    %857 = math.exp %856 : vector<8x32xf32>
    %cst_172 = arith.constant 1.000000e+00 : f32
    %858 = vector.broadcast %cst_172 : f32 to vector<8x32xf32>
    %859 = arith.addf %858, %857 : vector<8x32xf32>
    %860 = arith.divf %858, %859 : vector<8x32xf32>
    %861 = arith.mulf %852, %835 : vector<8x32xf32>
    %862 = arith.mulf %846, %854 : vector<8x32xf32>
    %863 = arith.addf %861, %862 : vector<8x32xf32>
    %864 = math.tanh %863 : vector<8x32xf32>
    %865 = arith.mulf %860, %864 : vector<8x32xf32>
    %cst_173 = arith.constant dense<0.000000e+00> : vector<8x128xf32>
    %866 = tpu.matmul %865, %718, %cst_173 {dimension_numbers = #tpu.dot_dimension_numbers<[1], [0], [0], [1], [0, 0, 1, 1], [], []>} : vector<8x32xf32>, vector<32x128xf32>, vector<8x128xf32> -> vector<8x128xf32>
    %867 = vector.extract_strided_slice %723 {offsets = [40, 0], sizes = [8, 128], strides = [1, 1]} : vector<64x128xf32> to vector<8x128xf32>
    %868 = arith.addf %866, %867 : vector<8x128xf32>
    %869 = vector.extract_strided_slice %868 {offsets = [0, 0], sizes = [8, 32], strides = [1, 1]} : vector<8x128xf32> to vector<8x32xf32>
    %870 = arith.negf %869 : vector<8x32xf32>
    %871 = math.exp %870 : vector<8x32xf32>
    %cst_174 = arith.constant 1.000000e+00 : f32
    %872 = vector.broadcast %cst_174 : f32 to vector<8x32xf32>
    %873 = arith.addf %872, %871 : vector<8x32xf32>
    %874 = arith.divf %872, %873 : vector<8x32xf32>
    %875 = vector.extract_strided_slice %868 {offsets = [0, 32], sizes = [8, 32], strides = [1, 1]} : vector<8x128xf32> to vector<8x32xf32>
    %876 = arith.negf %875 : vector<8x32xf32>
    %877 = math.exp %876 : vector<8x32xf32>
    %cst_175 = arith.constant 1.000000e+00 : f32
    %878 = vector.broadcast %cst_175 : f32 to vector<8x32xf32>
    %879 = arith.addf %878, %877 : vector<8x32xf32>
    %880 = arith.divf %878, %879 : vector<8x32xf32>
    %881 = vector.extract_strided_slice %868 {offsets = [0, 64], sizes = [8, 32], strides = [1, 1]} : vector<8x128xf32> to vector<8x32xf32>
    %882 = math.tanh %881 : vector<8x32xf32>
    %883 = vector.extract_strided_slice %868 {offsets = [0, 96], sizes = [8, 32], strides = [1, 1]} : vector<8x128xf32> to vector<8x32xf32>
    %884 = arith.negf %883 : vector<8x32xf32>
    %885 = math.exp %884 : vector<8x32xf32>
    %cst_176 = arith.constant 1.000000e+00 : f32
    %886 = vector.broadcast %cst_176 : f32 to vector<8x32xf32>
    %887 = arith.addf %886, %885 : vector<8x32xf32>
    %888 = arith.divf %886, %887 : vector<8x32xf32>
    %889 = arith.mulf %880, %863 : vector<8x32xf32>
    %890 = arith.mulf %874, %882 : vector<8x32xf32>
    %891 = arith.addf %889, %890 : vector<8x32xf32>
    %892 = math.tanh %891 : vector<8x32xf32>
    %893 = arith.mulf %888, %892 : vector<8x32xf32>
    %cst_177 = arith.constant dense<0.000000e+00> : vector<8x128xf32>
    %894 = tpu.matmul %893, %718, %cst_177 {dimension_numbers = #tpu.dot_dimension_numbers<[1], [0], [0], [1], [0, 0, 1, 1], [], []>} : vector<8x32xf32>, vector<32x128xf32>, vector<8x128xf32> -> vector<8x128xf32>
    %895 = vector.extract_strided_slice %723 {offsets = [48, 0], sizes = [8, 128], strides = [1, 1]} : vector<64x128xf32> to vector<8x128xf32>
    %896 = arith.addf %894, %895 : vector<8x128xf32>
    %897 = vector.extract_strided_slice %896 {offsets = [0, 0], sizes = [8, 32], strides = [1, 1]} : vector<8x128xf32> to vector<8x32xf32>
    %898 = arith.negf %897 : vector<8x32xf32>
    %899 = math.exp %898 : vector<8x32xf32>
    %cst_178 = arith.constant 1.000000e+00 : f32
    %900 = vector.broadcast %cst_178 : f32 to vector<8x32xf32>
    %901 = arith.addf %900, %899 : vector<8x32xf32>
    %902 = arith.divf %900, %901 : vector<8x32xf32>
    %903 = vector.extract_strided_slice %896 {offsets = [0, 32], sizes = [8, 32], strides = [1, 1]} : vector<8x128xf32> to vector<8x32xf32>
    %904 = arith.negf %903 : vector<8x32xf32>
    %905 = math.exp %904 : vector<8x32xf32>
    %cst_179 = arith.constant 1.000000e+00 : f32
    %906 = vector.broadcast %cst_179 : f32 to vector<8x32xf32>
    %907 = arith.addf %906, %905 : vector<8x32xf32>
    %908 = arith.divf %906, %907 : vector<8x32xf32>
    %909 = vector.extract_strided_slice %896 {offsets = [0, 64], sizes = [8, 32], strides = [1, 1]} : vector<8x128xf32> to vector<8x32xf32>
    %910 = math.tanh %909 : vector<8x32xf32>
    %911 = vector.extract_strided_slice %896 {offsets = [0, 96], sizes = [8, 32], strides = [1, 1]} : vector<8x128xf32> to vector<8x32xf32>
    %912 = arith.negf %911 : vector<8x32xf32>
    %913 = math.exp %912 : vector<8x32xf32>
    %cst_180 = arith.constant 1.000000e+00 : f32
    %914 = vector.broadcast %cst_180 : f32 to vector<8x32xf32>
    %915 = arith.addf %914, %913 : vector<8x32xf32>
    %916 = arith.divf %914, %915 : vector<8x32xf32>
    %917 = arith.mulf %908, %891 : vector<8x32xf32>
    %918 = arith.mulf %902, %910 : vector<8x32xf32>
    %919 = arith.addf %917, %918 : vector<8x32xf32>
    %920 = math.tanh %919 : vector<8x32xf32>
    %921 = arith.mulf %916, %920 : vector<8x32xf32>
    %cst_181 = arith.constant dense<0.000000e+00> : vector<8x128xf32>
    %922 = tpu.matmul %921, %718, %cst_181 {dimension_numbers = #tpu.dot_dimension_numbers<[1], [0], [0], [1], [0, 0, 1, 1], [], []>} : vector<8x32xf32>, vector<32x128xf32>, vector<8x128xf32> -> vector<8x128xf32>
    %923 = vector.extract_strided_slice %723 {offsets = [56, 0], sizes = [8, 128], strides = [1, 1]} : vector<64x128xf32> to vector<8x128xf32>
    %924 = arith.addf %922, %923 : vector<8x128xf32>
    %925 = vector.extract_strided_slice %924 {offsets = [0, 0], sizes = [8, 32], strides = [1, 1]} : vector<8x128xf32> to vector<8x32xf32>
    %926 = arith.negf %925 : vector<8x32xf32>
    %927 = math.exp %926 : vector<8x32xf32>
    %cst_182 = arith.constant 1.000000e+00 : f32
    %928 = vector.broadcast %cst_182 : f32 to vector<8x32xf32>
    %929 = arith.addf %928, %927 : vector<8x32xf32>
    %930 = arith.divf %928, %929 : vector<8x32xf32>
    %931 = vector.extract_strided_slice %924 {offsets = [0, 32], sizes = [8, 32], strides = [1, 1]} : vector<8x128xf32> to vector<8x32xf32>
    %932 = arith.negf %931 : vector<8x32xf32>
    %933 = math.exp %932 : vector<8x32xf32>
    %cst_183 = arith.constant 1.000000e+00 : f32
    %934 = vector.broadcast %cst_183 : f32 to vector<8x32xf32>
    %935 = arith.addf %934, %933 : vector<8x32xf32>
    %936 = arith.divf %934, %935 : vector<8x32xf32>
    %937 = vector.extract_strided_slice %924 {offsets = [0, 64], sizes = [8, 32], strides = [1, 1]} : vector<8x128xf32> to vector<8x32xf32>
    %938 = math.tanh %937 : vector<8x32xf32>
    %939 = vector.extract_strided_slice %924 {offsets = [0, 96], sizes = [8, 32], strides = [1, 1]} : vector<8x128xf32> to vector<8x32xf32>
    %940 = arith.negf %939 : vector<8x32xf32>
    %941 = math.exp %940 : vector<8x32xf32>
    %cst_184 = arith.constant 1.000000e+00 : f32
    %942 = vector.broadcast %cst_184 : f32 to vector<8x32xf32>
    %943 = arith.addf %942, %941 : vector<8x32xf32>
    %944 = arith.divf %942, %943 : vector<8x32xf32>
    %945 = arith.mulf %936, %919 : vector<8x32xf32>
    %946 = arith.mulf %930, %938 : vector<8x32xf32>
    %947 = arith.addf %945, %946 : vector<8x32xf32>
    %948 = math.tanh %947 : vector<8x32xf32>
    %949 = arith.mulf %944, %948 : vector<8x32xf32>
    %950 = tpu.concatenate %753, %781, %809, %837, %865, %893, %921, %949 in 0 : vector<8x32xf32>, vector<8x32xf32>, vector<8x32xf32>, vector<8x32xf32>, vector<8x32xf32>, vector<8x32xf32>, vector<8x32xf32>, vector<8x32xf32> -> vector<64x32xf32>
    %c0_185 = arith.constant 0 : index
    %c0_186 = arith.constant 0 : index
    %951 = vector.load %arg4[%c0_185, %c0_186] : memref<64x32xf32, #tpu.memory_space<vmem>>, vector<64x32xf32>
    tpu.vector_store %arg4[%c0_185, %c0_186], %950 {strides = array<i32>} : memref<64x32xf32, #tpu.memory_space<vmem>>, vector<64x32xf32>,
    %c0_187 = arith.constant 0 : index
    %c0_188 = arith.constant 0 : index
    %952 = vector.load %arg4[%c0_187, %c0_188] : memref<64x32xf32, #tpu.memory_space<vmem>>, vector<64x32xf32>
    %c4 = arith.constant 4 : index
    %c0_189 = arith.constant 0 : index
    %c0_190 = arith.constant 0 : index
    %953 = vector.load %arg1[%c4, %c0_189, %c0_190] : memref<5x32x128xf32, #tpu.memory_space<vmem>>, vector<1x32x128xf32>
    %954 = vector.shape_cast %953 : vector<1x32x128xf32> to vector<32x128xf32>
    %c4_191 = arith.constant 4 : index
    %c0_192 = arith.constant 0 : index
    %c0_193 = arith.constant 0 : index
    %955 = vector.load %arg2[%c4_191, %c0_192, %c0_193] : memref<5x32x128xf32, #tpu.memory_space<vmem>>, vector<1x32x128xf32>
    %956 = vector.shape_cast %955 : vector<1x32x128xf32> to vector<32x128xf32>
    %c4_194 = arith.constant 4 : index
    %c0_195 = arith.constant 0 : index
    %c0_196 = arith.constant 0 : index
    %957 = vector.load %arg3[%c4_194, %c0_195, %c0_196] : memref<5x1x128xf32, #tpu.memory_space<vmem>>, vector<1x1x128xf32>
    %958 = vector.shape_cast %957 : vector<1x1x128xf32> to vector<1x128xf32>
    %cst_197 = arith.constant dense<0.000000e+00> : vector<64x128xf32>
    %959 = tpu.matmul %952, %954, %cst_197 {dimension_numbers = #tpu.dot_dimension_numbers<[1], [0], [0], [1], [0, 0, 1, 1], [], []>} : vector<64x32xf32>, vector<32x128xf32>, vector<64x128xf32> -> vector<64x128xf32>
    %960 = vector.broadcast %958 : vector<1x128xf32> to vector<64x128xf32>
    %961 = arith.addf %959, %960 : vector<64x128xf32>
    %cst_198 = arith.constant 0.000000e+00 : f32
    %962 = vector.broadcast %cst_198 : f32 to vector<8x32xf32>
    %cst_199 = arith.constant 0.000000e+00 : f32
    %963 = vector.broadcast %cst_199 : f32 to vector<8x32xf32>
    %cst_200 = arith.constant dense<0.000000e+00> : vector<8x128xf32>
    %964 = tpu.matmul %962, %956, %cst_200 {dimension_numbers = #tpu.dot_dimension_numbers<[1], [0], [0], [1], [0, 0, 1, 1], [], []>} : vector<8x32xf32>, vector<32x128xf32>, vector<8x128xf32> -> vector<8x128xf32>
    %965 = vector.extract_strided_slice %961 {offsets = [0, 0], sizes = [8, 128], strides = [1, 1]} : vector<64x128xf32> to vector<8x128xf32>
    %966 = arith.addf %964, %965 : vector<8x128xf32>
    %967 = vector.extract_strided_slice %966 {offsets = [0, 0], sizes = [8, 32], strides = [1, 1]} : vector<8x128xf32> to vector<8x32xf32>
    %968 = arith.negf %967 : vector<8x32xf32>
    %969 = math.exp %968 : vector<8x32xf32>
    %cst_201 = arith.constant 1.000000e+00 : f32
    %970 = vector.broadcast %cst_201 : f32 to vector<8x32xf32>
    %971 = arith.addf %970, %969 : vector<8x32xf32>
    %972 = arith.divf %970, %971 : vector<8x32xf32>
    %973 = vector.extract_strided_slice %966 {offsets = [0, 32], sizes = [8, 32], strides = [1, 1]} : vector<8x128xf32> to vector<8x32xf32>
    %974 = arith.negf %973 : vector<8x32xf32>
    %975 = math.exp %974 : vector<8x32xf32>
    %cst_202 = arith.constant 1.000000e+00 : f32
    %976 = vector.broadcast %cst_202 : f32 to vector<8x32xf32>
    %977 = arith.addf %976, %975 : vector<8x32xf32>
    %978 = arith.divf %976, %977 : vector<8x32xf32>
    %979 = vector.extract_strided_slice %966 {offsets = [0, 64], sizes = [8, 32], strides = [1, 1]} : vector<8x128xf32> to vector<8x32xf32>
    %980 = math.tanh %979 : vector<8x32xf32>
    %981 = vector.extract_strided_slice %966 {offsets = [0, 96], sizes = [8, 32], strides = [1, 1]} : vector<8x128xf32> to vector<8x32xf32>
    %982 = arith.negf %981 : vector<8x32xf32>
    %983 = math.exp %982 : vector<8x32xf32>
    %cst_203 = arith.constant 1.000000e+00 : f32
    %984 = vector.broadcast %cst_203 : f32 to vector<8x32xf32>
    %985 = arith.addf %984, %983 : vector<8x32xf32>
    %986 = arith.divf %984, %985 : vector<8x32xf32>
    %987 = arith.mulf %978, %963 : vector<8x32xf32>
    %988 = arith.mulf %972, %980 : vector<8x32xf32>
    %989 = arith.addf %987, %988 : vector<8x32xf32>
    %990 = math.tanh %989 : vector<8x32xf32>
    %991 = arith.mulf %986, %990 : vector<8x32xf32>
    %cst_204 = arith.constant dense<0.000000e+00> : vector<8x128xf32>
    %992 = tpu.matmul %991, %956, %cst_204 {dimension_numbers = #tpu.dot_dimension_numbers<[1], [0], [0], [1], [0, 0, 1, 1], [], []>} : vector<8x32xf32>, vector<32x128xf32>, vector<8x128xf32> -> vector<8x128xf32>
    %993 = vector.extract_strided_slice %961 {offsets = [8, 0], sizes = [8, 128], strides = [1, 1]} : vector<64x128xf32> to vector<8x128xf32>
    %994 = arith.addf %992, %993 : vector<8x128xf32>
    %995 = vector.extract_strided_slice %994 {offsets = [0, 0], sizes = [8, 32], strides = [1, 1]} : vector<8x128xf32> to vector<8x32xf32>
    %996 = arith.negf %995 : vector<8x32xf32>
    %997 = math.exp %996 : vector<8x32xf32>
    %cst_205 = arith.constant 1.000000e+00 : f32
    %998 = vector.broadcast %cst_205 : f32 to vector<8x32xf32>
    %999 = arith.addf %998, %997 : vector<8x32xf32>
    %1000 = arith.divf %998, %999 : vector<8x32xf32>
    %1001 = vector.extract_strided_slice %994 {offsets = [0, 32], sizes = [8, 32], strides = [1, 1]} : vector<8x128xf32> to vector<8x32xf32>
    %1002 = arith.negf %1001 : vector<8x32xf32>
    %1003 = math.exp %1002 : vector<8x32xf32>
    %cst_206 = arith.constant 1.000000e+00 : f32
    %1004 = vector.broadcast %cst_206 : f32 to vector<8x32xf32>
    %1005 = arith.addf %1004, %1003 : vector<8x32xf32>
    %1006 = arith.divf %1004, %1005 : vector<8x32xf32>
    %1007 = vector.extract_strided_slice %994 {offsets = [0, 64], sizes = [8, 32], strides = [1, 1]} : vector<8x128xf32> to vector<8x32xf32>
    %1008 = math.tanh %1007 : vector<8x32xf32>
    %1009 = vector.extract_strided_slice %994 {offsets = [0, 96], sizes = [8, 32], strides = [1, 1]} : vector<8x128xf32> to vector<8x32xf32>
    %1010 = arith.negf %1009 : vector<8x32xf32>
    %1011 = math.exp %1010 : vector<8x32xf32>
    %cst_207 = arith.constant 1.000000e+00 : f32
    %1012 = vector.broadcast %cst_207 : f32 to vector<8x32xf32>
    %1013 = arith.addf %1012, %1011 : vector<8x32xf32>
    %1014 = arith.divf %1012, %1013 : vector<8x32xf32>
    %1015 = arith.mulf %1006, %989 : vector<8x32xf32>
    %1016 = arith.mulf %1000, %1008 : vector<8x32xf32>
    %1017 = arith.addf %1015, %1016 : vector<8x32xf32>
    %1018 = math.tanh %1017 : vector<8x32xf32>
    %1019 = arith.mulf %1014, %1018 : vector<8x32xf32>
    %cst_208 = arith.constant dense<0.000000e+00> : vector<8x128xf32>
    %1020 = tpu.matmul %1019, %956, %cst_208 {dimension_numbers = #tpu.dot_dimension_numbers<[1], [0], [0], [1], [0, 0, 1, 1], [], []>} : vector<8x32xf32>, vector<32x128xf32>, vector<8x128xf32> -> vector<8x128xf32>
    %1021 = vector.extract_strided_slice %961 {offsets = [16, 0], sizes = [8, 128], strides = [1, 1]} : vector<64x128xf32> to vector<8x128xf32>
    %1022 = arith.addf %1020, %1021 : vector<8x128xf32>
    %1023 = vector.extract_strided_slice %1022 {offsets = [0, 0], sizes = [8, 32], strides = [1, 1]} : vector<8x128xf32> to vector<8x32xf32>
    %1024 = arith.negf %1023 : vector<8x32xf32>
    %1025 = math.exp %1024 : vector<8x32xf32>
    %cst_209 = arith.constant 1.000000e+00 : f32
    %1026 = vector.broadcast %cst_209 : f32 to vector<8x32xf32>
    %1027 = arith.addf %1026, %1025 : vector<8x32xf32>
    %1028 = arith.divf %1026, %1027 : vector<8x32xf32>
    %1029 = vector.extract_strided_slice %1022 {offsets = [0, 32], sizes = [8, 32], strides = [1, 1]} : vector<8x128xf32> to vector<8x32xf32>
    %1030 = arith.negf %1029 : vector<8x32xf32>
    %1031 = math.exp %1030 : vector<8x32xf32>
    %cst_210 = arith.constant 1.000000e+00 : f32
    %1032 = vector.broadcast %cst_210 : f32 to vector<8x32xf32>
    %1033 = arith.addf %1032, %1031 : vector<8x32xf32>
    %1034 = arith.divf %1032, %1033 : vector<8x32xf32>
    %1035 = vector.extract_strided_slice %1022 {offsets = [0, 64], sizes = [8, 32], strides = [1, 1]} : vector<8x128xf32> to vector<8x32xf32>
    %1036 = math.tanh %1035 : vector<8x32xf32>
    %1037 = vector.extract_strided_slice %1022 {offsets = [0, 96], sizes = [8, 32], strides = [1, 1]} : vector<8x128xf32> to vector<8x32xf32>
    %1038 = arith.negf %1037 : vector<8x32xf32>
    %1039 = math.exp %1038 : vector<8x32xf32>
    %cst_211 = arith.constant 1.000000e+00 : f32
    %1040 = vector.broadcast %cst_211 : f32 to vector<8x32xf32>
    %1041 = arith.addf %1040, %1039 : vector<8x32xf32>
    %1042 = arith.divf %1040, %1041 : vector<8x32xf32>
    %1043 = arith.mulf %1034, %1017 : vector<8x32xf32>
    %1044 = arith.mulf %1028, %1036 : vector<8x32xf32>
    %1045 = arith.addf %1043, %1044 : vector<8x32xf32>
    %1046 = math.tanh %1045 : vector<8x32xf32>
    %1047 = arith.mulf %1042, %1046 : vector<8x32xf32>
    %cst_212 = arith.constant dense<0.000000e+00> : vector<8x128xf32>
    %1048 = tpu.matmul %1047, %956, %cst_212 {dimension_numbers = #tpu.dot_dimension_numbers<[1], [0], [0], [1], [0, 0, 1, 1], [], []>} : vector<8x32xf32>, vector<32x128xf32>, vector<8x128xf32> -> vector<8x128xf32>
    %1049 = vector.extract_strided_slice %961 {offsets = [24, 0], sizes = [8, 128], strides = [1, 1]} : vector<64x128xf32> to vector<8x128xf32>
    %1050 = arith.addf %1048, %1049 : vector<8x128xf32>
    %1051 = vector.extract_strided_slice %1050 {offsets = [0, 0], sizes = [8, 32], strides = [1, 1]} : vector<8x128xf32> to vector<8x32xf32>
    %1052 = arith.negf %1051 : vector<8x32xf32>
    %1053 = math.exp %1052 : vector<8x32xf32>
    %cst_213 = arith.constant 1.000000e+00 : f32
    %1054 = vector.broadcast %cst_213 : f32 to vector<8x32xf32>
    %1055 = arith.addf %1054, %1053 : vector<8x32xf32>
    %1056 = arith.divf %1054, %1055 : vector<8x32xf32>
    %1057 = vector.extract_strided_slice %1050 {offsets = [0, 32], sizes = [8, 32], strides = [1, 1]} : vector<8x128xf32> to vector<8x32xf32>
    %1058 = arith.negf %1057 : vector<8x32xf32>
    %1059 = math.exp %1058 : vector<8x32xf32>
    %cst_214 = arith.constant 1.000000e+00 : f32
    %1060 = vector.broadcast %cst_214 : f32 to vector<8x32xf32>
    %1061 = arith.addf %1060, %1059 : vector<8x32xf32>
    %1062 = arith.divf %1060, %1061 : vector<8x32xf32>
    %1063 = vector.extract_strided_slice %1050 {offsets = [0, 64], sizes = [8, 32], strides = [1, 1]} : vector<8x128xf32> to vector<8x32xf32>
    %1064 = math.tanh %1063 : vector<8x32xf32>
    %1065 = vector.extract_strided_slice %1050 {offsets = [0, 96], sizes = [8, 32], strides = [1, 1]} : vector<8x128xf32> to vector<8x32xf32>
    %1066 = arith.negf %1065 : vector<8x32xf32>
    %1067 = math.exp %1066 : vector<8x32xf32>
    %cst_215 = arith.constant 1.000000e+00 : f32
    %1068 = vector.broadcast %cst_215 : f32 to vector<8x32xf32>
    %1069 = arith.addf %1068, %1067 : vector<8x32xf32>
    %1070 = arith.divf %1068, %1069 : vector<8x32xf32>
    %1071 = arith.mulf %1062, %1045 : vector<8x32xf32>
    %1072 = arith.mulf %1056, %1064 : vector<8x32xf32>
    %1073 = arith.addf %1071, %1072 : vector<8x32xf32>
    %1074 = math.tanh %1073 : vector<8x32xf32>
    %1075 = arith.mulf %1070, %1074 : vector<8x32xf32>
    %cst_216 = arith.constant dense<0.000000e+00> : vector<8x128xf32>
    %1076 = tpu.matmul %1075, %956, %cst_216 {dimension_numbers = #tpu.dot_dimension_numbers<[1], [0], [0], [1], [0, 0, 1, 1], [], []>} : vector<8x32xf32>, vector<32x128xf32>, vector<8x128xf32> -> vector<8x128xf32>
    %1077 = vector.extract_strided_slice %961 {offsets = [32, 0], sizes = [8, 128], strides = [1, 1]} : vector<64x128xf32> to vector<8x128xf32>
    %1078 = arith.addf %1076, %1077 : vector<8x128xf32>
    %1079 = vector.extract_strided_slice %1078 {offsets = [0, 0], sizes = [8, 32], strides = [1, 1]} : vector<8x128xf32> to vector<8x32xf32>
    %1080 = arith.negf %1079 : vector<8x32xf32>
    %1081 = math.exp %1080 : vector<8x32xf32>
    %cst_217 = arith.constant 1.000000e+00 : f32
    %1082 = vector.broadcast %cst_217 : f32 to vector<8x32xf32>
    %1083 = arith.addf %1082, %1081 : vector<8x32xf32>
    %1084 = arith.divf %1082, %1083 : vector<8x32xf32>
    %1085 = vector.extract_strided_slice %1078 {offsets = [0, 32], sizes = [8, 32], strides = [1, 1]} : vector<8x128xf32> to vector<8x32xf32>
    %1086 = arith.negf %1085 : vector<8x32xf32>
    %1087 = math.exp %1086 : vector<8x32xf32>
    %cst_218 = arith.constant 1.000000e+00 : f32
    %1088 = vector.broadcast %cst_218 : f32 to vector<8x32xf32>
    %1089 = arith.addf %1088, %1087 : vector<8x32xf32>
    %1090 = arith.divf %1088, %1089 : vector<8x32xf32>
    %1091 = vector.extract_strided_slice %1078 {offsets = [0, 64], sizes = [8, 32], strides = [1, 1]} : vector<8x128xf32> to vector<8x32xf32>
    %1092 = math.tanh %1091 : vector<8x32xf32>
    %1093 = vector.extract_strided_slice %1078 {offsets = [0, 96], sizes = [8, 32], strides = [1, 1]} : vector<8x128xf32> to vector<8x32xf32>
    %1094 = arith.negf %1093 : vector<8x32xf32>
    %1095 = math.exp %1094 : vector<8x32xf32>
    %cst_219 = arith.constant 1.000000e+00 : f32
    %1096 = vector.broadcast %cst_219 : f32 to vector<8x32xf32>
    %1097 = arith.addf %1096, %1095 : vector<8x32xf32>
    %1098 = arith.divf %1096, %1097 : vector<8x32xf32>
    %1099 = arith.mulf %1090, %1073 : vector<8x32xf32>
    %1100 = arith.mulf %1084, %1092 : vector<8x32xf32>
    %1101 = arith.addf %1099, %1100 : vector<8x32xf32>
    %1102 = math.tanh %1101 : vector<8x32xf32>
    %1103 = arith.mulf %1098, %1102 : vector<8x32xf32>
    %cst_220 = arith.constant dense<0.000000e+00> : vector<8x128xf32>
    %1104 = tpu.matmul %1103, %956, %cst_220 {dimension_numbers = #tpu.dot_dimension_numbers<[1], [0], [0], [1], [0, 0, 1, 1], [], []>} : vector<8x32xf32>, vector<32x128xf32>, vector<8x128xf32> -> vector<8x128xf32>
    %1105 = vector.extract_strided_slice %961 {offsets = [40, 0], sizes = [8, 128], strides = [1, 1]} : vector<64x128xf32> to vector<8x128xf32>
    %1106 = arith.addf %1104, %1105 : vector<8x128xf32>
    %1107 = vector.extract_strided_slice %1106 {offsets = [0, 0], sizes = [8, 32], strides = [1, 1]} : vector<8x128xf32> to vector<8x32xf32>
    %1108 = arith.negf %1107 : vector<8x32xf32>
    %1109 = math.exp %1108 : vector<8x32xf32>
    %cst_221 = arith.constant 1.000000e+00 : f32
    %1110 = vector.broadcast %cst_221 : f32 to vector<8x32xf32>
    %1111 = arith.addf %1110, %1109 : vector<8x32xf32>
    %1112 = arith.divf %1110, %1111 : vector<8x32xf32>
    %1113 = vector.extract_strided_slice %1106 {offsets = [0, 32], sizes = [8, 32], strides = [1, 1]} : vector<8x128xf32> to vector<8x32xf32>
    %1114 = arith.negf %1113 : vector<8x32xf32>
    %1115 = math.exp %1114 : vector<8x32xf32>
    %cst_222 = arith.constant 1.000000e+00 : f32
    %1116 = vector.broadcast %cst_222 : f32 to vector<8x32xf32>
    %1117 = arith.addf %1116, %1115 : vector<8x32xf32>
    %1118 = arith.divf %1116, %1117 : vector<8x32xf32>
    %1119 = vector.extract_strided_slice %1106 {offsets = [0, 64], sizes = [8, 32], strides = [1, 1]} : vector<8x128xf32> to vector<8x32xf32>
    %1120 = math.tanh %1119 : vector<8x32xf32>
    %1121 = vector.extract_strided_slice %1106 {offsets = [0, 96], sizes = [8, 32], strides = [1, 1]} : vector<8x128xf32> to vector<8x32xf32>
    %1122 = arith.negf %1121 : vector<8x32xf32>
    %1123 = math.exp %1122 : vector<8x32xf32>
    %cst_223 = arith.constant 1.000000e+00 : f32
    %1124 = vector.broadcast %cst_223 : f32 to vector<8x32xf32>
    %1125 = arith.addf %1124, %1123 : vector<8x32xf32>
    %1126 = arith.divf %1124, %1125 : vector<8x32xf32>
    %1127 = arith.mulf %1118, %1101 : vector<8x32xf32>
    %1128 = arith.mulf %1112, %1120 : vector<8x32xf32>
    %1129 = arith.addf %1127, %1128 : vector<8x32xf32>
    %1130 = math.tanh %1129 : vector<8x32xf32>
    %1131 = arith.mulf %1126, %1130 : vector<8x32xf32>
    %cst_224 = arith.constant dense<0.000000e+00> : vector<8x128xf32>
    %1132 = tpu.matmul %1131, %956, %cst_224 {dimension_numbers = #tpu.dot_dimension_numbers<[1], [0], [0], [1], [0, 0, 1, 1], [], []>} : vector<8x32xf32>, vector<32x128xf32>, vector<8x128xf32> -> vector<8x128xf32>
    %1133 = vector.extract_strided_slice %961 {offsets = [48, 0], sizes = [8, 128], strides = [1, 1]} : vector<64x128xf32> to vector<8x128xf32>
    %1134 = arith.addf %1132, %1133 : vector<8x128xf32>
    %1135 = vector.extract_strided_slice %1134 {offsets = [0, 0], sizes = [8, 32], strides = [1, 1]} : vector<8x128xf32> to vector<8x32xf32>
    %1136 = arith.negf %1135 : vector<8x32xf32>
    %1137 = math.exp %1136 : vector<8x32xf32>
    %cst_225 = arith.constant 1.000000e+00 : f32
    %1138 = vector.broadcast %cst_225 : f32 to vector<8x32xf32>
    %1139 = arith.addf %1138, %1137 : vector<8x32xf32>
    %1140 = arith.divf %1138, %1139 : vector<8x32xf32>
    %1141 = vector.extract_strided_slice %1134 {offsets = [0, 32], sizes = [8, 32], strides = [1, 1]} : vector<8x128xf32> to vector<8x32xf32>
    %1142 = arith.negf %1141 : vector<8x32xf32>
    %1143 = math.exp %1142 : vector<8x32xf32>
    %cst_226 = arith.constant 1.000000e+00 : f32
    %1144 = vector.broadcast %cst_226 : f32 to vector<8x32xf32>
    %1145 = arith.addf %1144, %1143 : vector<8x32xf32>
    %1146 = arith.divf %1144, %1145 : vector<8x32xf32>
    %1147 = vector.extract_strided_slice %1134 {offsets = [0, 64], sizes = [8, 32], strides = [1, 1]} : vector<8x128xf32> to vector<8x32xf32>
    %1148 = math.tanh %1147 : vector<8x32xf32>
    %1149 = vector.extract_strided_slice %1134 {offsets = [0, 96], sizes = [8, 32], strides = [1, 1]} : vector<8x128xf32> to vector<8x32xf32>
    %1150 = arith.negf %1149 : vector<8x32xf32>
    %1151 = math.exp %1150 : vector<8x32xf32>
    %cst_227 = arith.constant 1.000000e+00 : f32
    %1152 = vector.broadcast %cst_227 : f32 to vector<8x32xf32>
    %1153 = arith.addf %1152, %1151 : vector<8x32xf32>
    %1154 = arith.divf %1152, %1153 : vector<8x32xf32>
    %1155 = arith.mulf %1146, %1129 : vector<8x32xf32>
    %1156 = arith.mulf %1140, %1148 : vector<8x32xf32>
    %1157 = arith.addf %1155, %1156 : vector<8x32xf32>
    %1158 = math.tanh %1157 : vector<8x32xf32>
    %1159 = arith.mulf %1154, %1158 : vector<8x32xf32>
    %cst_228 = arith.constant dense<0.000000e+00> : vector<8x128xf32>
    %1160 = tpu.matmul %1159, %956, %cst_228 {dimension_numbers = #tpu.dot_dimension_numbers<[1], [0], [0], [1], [0, 0, 1, 1], [], []>} : vector<8x32xf32>, vector<32x128xf32>, vector<8x128xf32> -> vector<8x128xf32>
    %1161 = vector.extract_strided_slice %961 {offsets = [56, 0], sizes = [8, 128], strides = [1, 1]} : vector<64x128xf32> to vector<8x128xf32>
    %1162 = arith.addf %1160, %1161 : vector<8x128xf32>
    %1163 = vector.extract_strided_slice %1162 {offsets = [0, 0], sizes = [8, 32], strides = [1, 1]} : vector<8x128xf32> to vector<8x32xf32>
    %1164 = arith.negf %1163 : vector<8x32xf32>
    %1165 = math.exp %1164 : vector<8x32xf32>
    %cst_229 = arith.constant 1.000000e+00 : f32
    %1166 = vector.broadcast %cst_229 : f32 to vector<8x32xf32>
    %1167 = arith.addf %1166, %1165 : vector<8x32xf32>
    %1168 = arith.divf %1166, %1167 : vector<8x32xf32>
    %1169 = vector.extract_strided_slice %1162 {offsets = [0, 32], sizes = [8, 32], strides = [1, 1]} : vector<8x128xf32> to vector<8x32xf32>
    %1170 = arith.negf %1169 : vector<8x32xf32>
    %1171 = math.exp %1170 : vector<8x32xf32>
    %cst_230 = arith.constant 1.000000e+00 : f32
    %1172 = vector.broadcast %cst_230 : f32 to vector<8x32xf32>
    %1173 = arith.addf %1172, %1171 : vector<8x32xf32>
    %1174 = arith.divf %1172, %1173 : vector<8x32xf32>
    %1175 = vector.extract_strided_slice %1162 {offsets = [0, 64], sizes = [8, 32], strides = [1, 1]} : vector<8x128xf32> to vector<8x32xf32>
    %1176 = math.tanh %1175 : vector<8x32xf32>
    %1177 = vector.extract_strided_slice %1162 {offsets = [0, 96], sizes = [8, 32], strides = [1, 1]} : vector<8x128xf32> to vector<8x32xf32>
    %1178 = arith.negf %1177 : vector<8x32xf32>
    %1179 = math.exp %1178 : vector<8x32xf32>
    %cst_231 = arith.constant 1.000000e+00 : f32
    %1180 = vector.broadcast %cst_231 : f32 to vector<8x32xf32>
    %1181 = arith.addf %1180, %1179 : vector<8x32xf32>
    %1182 = arith.divf %1180, %1181 : vector<8x32xf32>
    %1183 = arith.mulf %1174, %1157 : vector<8x32xf32>
    %1184 = arith.mulf %1168, %1176 : vector<8x32xf32>
    %1185 = arith.addf %1183, %1184 : vector<8x32xf32>
    %1186 = math.tanh %1185 : vector<8x32xf32>
    %1187 = arith.mulf %1182, %1186 : vector<8x32xf32>
    %1188 = tpu.concatenate %991, %1019, %1047, %1075, %1103, %1131, %1159, %1187 in 0 : vector<8x32xf32>, vector<8x32xf32>, vector<8x32xf32>, vector<8x32xf32>, vector<8x32xf32>, vector<8x32xf32>, vector<8x32xf32>, vector<8x32xf32> -> vector<64x32xf32>
    %c0_232 = arith.constant 0 : index
    %c0_233 = arith.constant 0 : index
    %1189 = vector.load %arg4[%c0_232, %c0_233] : memref<64x32xf32, #tpu.memory_space<vmem>>, vector<64x32xf32>
    tpu.vector_store %arg4[%c0_232, %c0_233], %1188 {strides = array<i32>} : memref<64x32xf32, #tpu.memory_space<vmem>>, vector<64x32xf32>,
    %c0_234 = arith.constant 0 : index
    %c0_235 = arith.constant 0 : index
    %1190 = vector.load %arg5[%c0_234, %c0_235] : memref<8x32xf32, #tpu.memory_space<vmem>>, vector<8x32xf32>
    tpu.vector_store %arg5[%c0_234, %c0_235], %1187 {strides = array<i32>} : memref<8x32xf32, #tpu.memory_space<vmem>>, vector<8x32xf32>,
    %c0_236 = arith.constant 0 : index
    %c0_237 = arith.constant 0 : index
    %1191 = vector.load %arg6[%c0_236, %c0_237] : memref<8x32xf32, #tpu.memory_space<vmem>>, vector<8x32xf32>
    tpu.vector_store %arg6[%c0_236, %c0_237], %1185 {strides = array<i32>} : memref<8x32xf32, #tpu.memory_space<vmem>>, vector<8x32xf32>,
    return
  }
}

</mosaic_0001>

<bundles_post_ra>
// kernel: encoder_forward.1
= control target key start
LH: loop header
LB: loop body
LE: loop exit
PB: predicated region body
PF: predicated region fallthrough
CT: control target
= control target key end

     0   :  { %12 = vsyncpa [#allocation3], 0  ;;  %s7490_s0 = inlined_call_operand.vmem [shape: f32[64,32], index: 0, kind: input, shape index: {}]   ;;  %s7491_s1 = inlined_call_operand.hbm [shape: f32[5,32,128], index: 1, kind: input, shape index: {}]   ;;  %s7492_s2 = inlined_call_operand.hbm [shape: f32[5,32,128], index: 2, kind: input, shape index: {}]   ;;  %s7493_s3 = inlined_call_operand.vmem [shape: f32[5,1,128], index: 3, kind: input, shape index: {}]   ;;  %s7494_s4 = inlined_call_operand.vmem [shape: f32[64,32], index: 4, kind: output, shape index: {0}]   ;;  %s7495_s5 = inlined_call_operand.vmem [shape: f32[8,32], index: 5, kind: output, shape index: {1}]   ;;  %s7496_s6 = inlined_call_operand.vmem [shape: f32[8,32], index: 6, kind: output, shape index: {2}]  }
   0x1   :  { %13 = vsyncpa [#allocation5], 0  ;;  %s6456_s21 = smov [#allocation2]   ;;  %s6408_s25 = scalar_lea.hbm %s7491_s1, 2560 }
   0x2   :  { %s21_s22 = sshll.u32 %s6456_s21, 4  ;;  %p6409_p0 = scmp.ne.s32.totalorder %s7491_s1, %s6408_s25  ;;  %s22_s22 = int_to_ptr.vmem [resolvable:$true] %s21_s22 }
   0x3   :  { %p6412_p1 = scmp.lt.u32.totalorder %s6408_s25, %s7491_s1 }
   0x5   :  { %p6414_p2 = pnand %p6412_p1, %p6409_p0 }
   0x7   :  { %6417 = shalt.err (!%p6414_p2)
}
   0x8   :  { %s6418_s30 = scalar_lea.vmem %s22_s22, 2560  ;;  %p6423_p4 = scmp.lt.s32.totalorder %s22_s22, %s22_s22 }
   0x9   :  { %p6419_p3 = scmp.ne.s32.totalorder %s22_s22, %s6418_s30  ;;  %p6424_p5 = scmp.lt.s32.totalorder %s6418_s30, %s6418_s30 }
   0xb   :  { %p6425_p6 = por %p6424_p5, %p6423_p4 }
   0xd   :  { %p6426_p7 = pnand %p6425_p6, %p6419_p3 }
   0xf   :  { %6429 = shalt.err (!%p6426_p7)
}
  0x10   :  { %s6457_s7 = smov 128   ;;  %s6458_s8 = smov 8  }
  0x11   :  { %27 = dma.hbm_to_vmem [thread:$0]  %s7491_s1, 2560, %s22_s22, [#allocation3], %s6457_s7, %s6457_s7, %s6458_s8  }
  0x12   :  { %s6459_s11 = smov [#allocation4]   ;;  %s6430_s15 = scalar_lea.hbm %s7492_s2, 2560 }
  0x13   :  { %s33_s12 = sshll.u32 %s6459_s11, 4  ;;  %p6431_p8 = scmp.ne.s32.totalorder %s7492_s2, %s6430_s15  ;;  %s34_s12 = int_to_ptr.vmem [resolvable:$true] %s33_s12 }
  0x14   :  { %p6434_p9 = scmp.lt.u32.totalorder %s6430_s15, %s7492_s2 }
  0x16   :  { %p6436_p10 = pnand %p6434_p9, %p6431_p8 }
  0x18   :  { %6439 = shalt.err (!%p6436_p10)
}
  0x19   :  { %s6440_s20 = scalar_lea.vmem %s34_s12, 2560  ;;  %p6445_p12 = scmp.lt.s32.totalorder %s34_s12, %s34_s12 }
  0x1a   :  { %p6441_p11 = scmp.ne.s32.totalorder %s34_s12, %s6440_s20  ;;  %p6446_p13 = scmp.lt.s32.totalorder %s6440_s20, %s6440_s20 }
  0x1c   :  { %p6447_p0 = por %p6446_p13, %p6445_p12 }
  0x1e   :  { %p6448_p1 = pnand %p6447_p0, %p6441_p11 }
  0x20   :  { %6451 = shalt.err (!%p6448_p1)
}
  0x21   :  { %39 = dma.hbm_to_vmem [thread:$0]  %s7492_s2, 2560, %s34_s12, [#allocation5], %s6457_s7, %s6457_s7, %s6458_s8  }
  0x22   :  { %6452 = dma.done.wait [#allocation3], 2560  }
  0x23   :  { %6453 = vsyncadd [#allocation3], 4294964736 }
  0x24   :  { %6454 = dma.done.wait [#allocation5], 2560  }
  0x25   :  { %6455 = vsyncadd [#allocation5], 4294964736  ;;  %v6460_v0 = vmov 0.0|0.0   ;;  %vm6461_vm0 = vmmov 0   ;;  %v6462_v1 = vmov 0.0   ;;  %v56_v2 = vld [vmem:[#allocation2] sm:$0xff] }
  0x26   :  { %5806 = vmatprep.subr.bf16.mxu1 %v6460_v0  ;;  %5286 = vmatprep.mubr.msk.f32.mxu1 %vm6461_vm0, %v6462_v1  ;;  %v57_v3 = vld [vmem:[#allocation2 + $0x8] sm:$0xff]  ;;  %v60_v4 = vld [vmem:[#allocation4] sm:$0xff]  ;;  %vm71_vm1 = vcmask 261120   ;;  %v58_v7 = vld [vmem:[#allocation2 + $0x10] sm:$0xff]  ;;  %s6463_s27 = smov 64   ;;  %s6464_s28 = smov 32  }
  0x27   :  { %v5798_v5 = vpack.c.bf16 %v57_v3, %v56_v2  ;;  %v61_v6 = vld [vmem:[#allocation4 + $0x8] sm:$0xff]  ;;  %v59_v8 = vld [vmem:[#allocation2 + $0x18] sm:$0xff]  ;;  %v48_v11 = vld [vmem:[%s7490_s0] sm:$0xff]  ;;  %s6465_s16 = smov 96  }
  0x28   :  { %v6528_v9 = vpack.c.bf16 %v61_v6, %v60_v4  ;;  %v5802_v10 = vpack.c.bf16 %v59_v8, %v58_v7  ;;  %v62_v12 = vld [vmem:[#allocation4 + $0x10] sm:$0xff]  ;;  %v63_v13 = vld [vmem:[#allocation4 + $0x18] sm:$0xff]  ;;  %5266 = vmatprep.mubr.msk.f32.mxu0 %vm71_vm1, %v48_v11  ;;  %v49_v15 = vld [vmem:[%s7490_s0 + $0x8] sm:$0xff] }
  0x29   :  { %5799 = vmatprep.subr.bf16.mxu0 %v5798_v5  ;;  %v6535_v14 = vpack.c.bf16 %v63_v13, %v62_v12  ;;  %v6559_v16 = vld [vmem:[%s7493_s3] ss:$0 sm:$0xff]  ;;  %v50_v51 = vld [vmem:[%s7490_s0 + $0x10] sm:$0xff]  ;;  %v51_v52 = vld [vmem:[%s7490_s0 + $0x18] sm:$0xff] }
  0x2a   :  { %5801 = vmatpush3.bf16.msra.mxu0 %v5798_v5  ;;  %5808 = vmatpush3.bf16.msra.mxu1 %v6528_v9  ;;  %v52_v53 = vld [vmem:[%s7490_s0 + $0x20] sm:$0xff]  ;;  %v53_v54 = vld [vmem:[%s7490_s0 + $0x28] sm:$0xff]  ;;  %v54_v55 = vld [vmem:[%s7490_s0 + $0x30] sm:$0xff] }
  0x2b   :  { %5803 = vmatprep.subr.bf16.mxu0 %v5802_v10  ;;  %5809 = vmatprep.subr.bf16.mxu1 %v6460_v0  ;;  %v55_v56 = vld [vmem:[%s7490_s0 + $0x38] sm:$0xff] }
  0x2e   :  { %5805 = vmatpush3.bf16.msra.mxu0 %v5802_v10  ;;  %5811 = vmatpush3.bf16.msra.mxu1 %v6535_v14 }
  0x2f   :  { %5812 = vmatprep.subr.bf16.mxu1 %v6460_v0  ;;  %5818 = vmatprep.subr.bf16.mxu0 %v6460_v0 }
  0x31   :  { %5267 = vmatmul.mubr.msk.f32.vlgmr.msra.gmra.mrb[0].mxu0 %vm71_vm1, %v49_v15  ;;  %5287 = vmatmul.mubr.f32.vlgmr.msra.gmra.mrb[0].mxu1 %v6462_v1 }
  0x32   :  { %5814 = vmatpush3.bf16.msra.mxu1 %v6528_v9  ;;  %5297 = vmatprep.mubr.msk.f32.mxu1 %vm6461_vm0, %v6462_v1 }
  0x33   :  { %5815 = vmatprep.subr.bf16.mxu1 %v6460_v0  ;;  %5820 = vmatpush3.bf16.msra.mxu0 %v6528_v9 }
  0x34   :  { %5821 = vmatprep.subr.bf16.mxu0 %v6460_v0  ;;  %5269 = vmatprep.mubr.msk.f32.mxu0 %vm71_vm1, %v50_v51 }
  0x35   :  { %5270 = vmatmul.mubr.msk.f32.gmra.mrb[2].mxu0 %vm71_vm1, %v51_v52 }
  0x36   :  { %5817 = vmatpush3.bf16.msra.mxu1 %v6535_v14  ;;  %5272 = vmatprep.mubr.msk.f32.mxu0 %vm71_vm1, %v52_v53 }
  0x37   :  { %5823 = vmatpush3.bf16.msra.mxu0 %v6535_v14  ;;  %5824 = vmatprep.subr.bf16.mxu1 %v6460_v0 }
  0x38   :  { %5830 = vmatprep.subr.bf16.mxu0 %v6460_v0 }
  0x39   :  { %5273 = vmatmul.mubr.msk.f32.gmra.mrb[4].mxu0 %vm71_vm1, %v53_v54 }
  0x3a   :  { %5275 = vmatprep.mubr.msk.f32.mxu0 %vm71_vm1, %v54_v55 }
  0x3d   :  { %5276 = vmatmul.mubr.msk.f32.gmra.mrb[6].mxu0 %vm71_vm1, %v55_v56 }
  0x3e   :  { %5308 = vmatprep.mubr.msk.f32.mxu0 %vm6461_vm0, %v6462_v1 }
 0x104   :  { %v5268_v17 = vpop.f32.mrb[0].mxu0  ;;  %v270_v18 = vpop.f32.mrb[0].mxu1 }
 0x105   :  { %v162_v19 = vpop.f32.mrb[1].mxu0  ;;  %v5288_v20 = vpop.f32.mrb[1].mxu1  ;;  %v168_v37 = vadd.f32 %v5268_v17, %v6559_v16 }
 0x106   :  { %v163_v21 = vadd.f32 %v6559_v16, %v162_v19 }
 0x108   :  { %v271_v22 = vadd.f32 %v270_v18, %v163_v21  ;;  %v5271_v60 = vpop.f32.mrb[2].mxu0 }
 0x109   :  { %v172_v61 = vpop.f32.mrb[3].mxu0 }
 0x10a   :  { %6088 = vtanh.f32 %v271_v22  ;;  %v4883_v24 = vmul.f32 -1.442695, %v271_v22  ;;  %v173_v5 = vadd.f32 %v6559_v16, %v172_v61 }
 0x10c   :  { %6090 = vpow2.f32 %v4883_v24  ;;  %v6608_v62 = vpop.f32.mrb[4].mxu0 }
 0x10d   :  { %v6610_v63 = vpop.f32.mrb[5].mxu0 }
 0x110   :  { %v6612_v2 = vpop.f32.mrb[6].mxu0 }
 0x111   :  { %v6614_v3 = vpop.f32.mrb[7].mxu0 }
 0x114   :  { %v6089_v23 = vpop.eup %6088 }
 0x115   :  { %283 = vrot.lane.b32.xlu0 %v6089_v23, %s6463_s27 }
 0x116   :  { %v6091_v25 = vpop.eup %6090 }
 0x117   :  { %v277_v26 = vadd.f32 1.0, %v6091_v25 }
 0x119   :  { %6092 = vrcp.f32 %v277_v26  ;;  %v178_v26 = vadd.f32 %v5271_v60, %v6559_v16 }
 0x123   :  { %v6093_v27 = vpop.eup %6092 }
 0x124   :  { %v281_v30 = vmul.f32 0.0, %v6093_v27 }
 0x187   :  { %v284_v28 = vpop.permute.xlu0 %283 }
 0x188   :  { %v286_v29 = vmul.f32 %v6093_v27, %v284_v28 }
 0x18a   :  { %288 = vrot.lane.b32.xlu0 %v286_v29, %s6464_s28 }
 0x1fc   :  { %v289_v31 = vpop.permute.xlu0 %288 }
 0x1fd   :  { %v291_v32 = vadd.f32 %v289_v31, %v281_v30 }
 0x1ff   :  { %6094 = vtanh.f32 %v291_v32 }
 0x209   :  { %v6095_v33 = vpop.eup %6094 }
 0x20a   :  { %294 = vrot.lane.b32.xlu1 %v6095_v33, %s6463_s27 }
 0x27c   :  { %v295_v34 = vpop.permute.xlu1 %294 }
 0x27d   :  { %v297_v35 = vmul.f32 %v6093_v27, %v295_v34 }
 0x27f   :  { %299 = vrot.lane.b32.xlu1 %v297_v35, %s6464_s28 }
 0x2f1   :  { %v300_v36 = vpop.permute.xlu1 %299 }
 0x2f2   :  { %1002 = vst.msk [vmem:[%s7494_s4] sm:$0xff] %vm71_vm1, %v300_v36  ;;  %5298 = vmatmul.mubr.msk.f32.vlgmr.msra.gmra.mrb[2].mxu1 %vm71_vm1, %v300_v36 }
 0x2f3   :  { %5826 = vmatpush3.bf16.msra.mxu1 %v6528_v9  ;;  %5319 = vmatprep.mubr.msk.f32.mxu1 %vm6461_vm0, %v6462_v1 }
 0x2f4   :  { %5827 = vmatprep.subr.bf16.mxu1 %v6460_v0 }
 0x2f7   :  { %5829 = vmatpush3.bf16.msra.mxu1 %v6535_v14 }
 0x2f8   :  { %5836 = vmatprep.subr.bf16.mxu1 %v6460_v0 }
 0x3c5   :  { %v369_v38 = vpop.f32.mrb[2].mxu1 }
 0x3c6   :  { %v370_v39 = vadd.f32 %v369_v38, %v168_v37  ;;  %v5299_v40 = vpop.f32.mrb[3].mxu1 }
 0x3c8   :  { %6096 = vtanh.f32 %v370_v39  ;;  %v4885_v42 = vmul.f32 -1.442695, %v370_v39 }
 0x3ca   :  { %6098 = vpow2.f32 %v4885_v42 }
 0x3d2   :  { %v6097_v41 = vpop.eup %6096 }
 0x3d3   :  { %382 = vrot.lane.b32.xlu0 %v6097_v41, %s6463_s27 }
 0x3d4   :  { %v6099_v43 = vpop.eup %6098 }
 0x3d5   :  { %v376_v44 = vadd.f32 1.0, %v6099_v43 }
 0x3d7   :  { %6100 = vrcp.f32 %v376_v44  ;;  %v183_v44 = vadd.f32 %v6559_v16, %v6610_v63  ;;  %v188_v63 = vadd.f32 %v6608_v62, %v6559_v16 }
 0x3e1   :  { %v6101_v45 = vpop.eup %6100 }
 0x3e2   :  { %v380_v48 = vmul.f32 %v6101_v45, %v291_v32 }
 0x445   :  { %v383_v46 = vpop.permute.xlu0 %382 }
 0x446   :  { %v385_v47 = vmul.f32 %v6101_v45, %v383_v46 }
 0x448   :  { %387 = vrot.lane.b32.xlu1 %v385_v47, %s6464_s28 }
 0x4ba   :  { %v388_v49 = vpop.permute.xlu1 %387 }
 0x4bb   :  { %v390_v50 = vadd.f32 %v388_v49, %v380_v48 }
 0x4bd   :  { %6102 = vtanh.f32 %v390_v50 }
 0x4c7   :  { %v6103_v57 = vpop.eup %6102 }
 0x4c8   :  { %393 = vrot.lane.b32.xlu0 %v6103_v57, %s6463_s27 }
 0x53a   :  { %v394_v58 = vpop.permute.xlu0 %393 }
 0x53b   :  { %v396_v59 = vmul.f32 %v6101_v45, %v394_v58 }
 0x53d   :  { %398 = vrot.lane.b32.xlu1 %v396_v59, %s6464_s28 }
 0x5af   :  { %v399_v4 = vpop.permute.xlu1 %398 }
 0x5b0   :  { %1003 = vst.msk [vmem:[%s7494_s4 + $0x8] sm:$0xff] %vm71_vm1, %v399_v4  ;;  %5309 = vmatmul.mubr.msk.f32.vlgmr.msra.gmra.mrb[8].mxu0 %vm71_vm1, %v399_v4 }
 0x5b1   :  { %5832 = vmatpush3.bf16.msra.mxu0 %v6528_v9  ;;  %5330 = vmatprep.mubr.msk.f32.mxu0 %vm6461_vm0, %v6462_v1 }
 0x5b2   :  { %5833 = vmatprep.subr.bf16.mxu0 %v6460_v0 }
 0x5b5   :  { %5835 = vmatpush3.bf16.msra.mxu0 %v6535_v14 }
 0x5b6   :  { %5842 = vmatprep.subr.bf16.mxu0 %v6460_v0 }
 0x683   :  { %v468_v6 = vpop.f32.mrb[8].mxu0 }
 0x684   :  { %v469_v7 = vadd.f32 %v468_v6, %v173_v5  ;;  %v5310_v8 = vpop.f32.mrb[9].mxu0 }
 0x686   :  { %6104 = vtanh.f32 %v469_v7  ;;  %v4887_v11 = vmul.f32 -1.442695, %v469_v7 }
 0x688   :  { %6106 = vpow2.f32 %v4887_v11 }
 0x690   :  { %v6105_v10 = vpop.eup %6104 }
 0x691   :  { %481 = vrot.lane.b32.xlu0 %v6105_v10, %s6463_s27 }
 0x692   :  { %v6107_v12 = vpop.eup %6106 }
 0x693   :  { %v475_v13 = vadd.f32 1.0, %v6107_v12 }
 0x695   :  { %6108 = vrcp.f32 %v475_v13 }
 0x69f   :  { %v6109_v15 = vpop.eup %6108 }
 0x6a0   :  { %v479_v19 = vmul.f32 %v6109_v15, %v390_v50 }
 0x703   :  { %v482_v17 = vpop.permute.xlu0 %481 }
 0x704   :  { %v484_v18 = vmul.f32 %v6109_v15, %v482_v17  ;;  %v1019_v17 = vld [vmem:[#allocation2 + $0x20] sm:$0xff] }
 0x706   :  { %486 = vrot.lane.b32.xlu1 %v484_v18, %s6464_s28  ;;  %v1020_v18 = vld [vmem:[#allocation2 + $0x28] sm:$0xff] }
 0x778   :  { %v487_v20 = vpop.permute.xlu1 %486 }
 0x779   :  { %v489_v21 = vadd.f32 %v487_v20, %v479_v19  ;;  %v5854_v19 = vpack.c.bf16 %v1020_v18, %v1019_v17 }
 0x77b   :  { %6110 = vtanh.f32 %v489_v21 }
 0x785   :  { %v6111_v22 = vpop.eup %6110 }
 0x786   :  { %492 = vrot.lane.b32.xlu0 %v6111_v22, %s6463_s27 }
 0x7f8   :  { %v493_v23 = vpop.permute.xlu0 %492 }
 0x7f9   :  { %v495_v24 = vmul.f32 %v6109_v15, %v493_v23  ;;  %v1021_v23 = vld [vmem:[#allocation2 + $0x30] sm:$0xff] }
 0x7fb   :  { %497 = vrot.lane.b32.xlu1 %v495_v24, %s6464_s28  ;;  %v1022_v24 = vld [vmem:[#allocation2 + $0x38] sm:$0xff] }
 0x86d   :  { %v498_v25 = vpop.permute.xlu1 %497 }
 0x86e   :  { %1004 = vst.msk [vmem:[%s7494_s4 + $0x10] sm:$0xff] %vm71_vm1, %v498_v25  ;;  %5320 = vmatmul.mubr.msk.f32.vlgmr.msra.gmra.mrb[4].mxu1 %vm71_vm1, %v498_v25  ;;  %v5858_v25 = vpack.c.bf16 %v1022_v24, %v1021_v23 }
 0x86f   :  { %5838 = vmatpush3.bf16.msra.mxu1 %v6528_v9  ;;  %5341 = vmatprep.mubr.msk.f32.mxu1 %vm6461_vm0, %v6462_v1 }
 0x870   :  { %5839 = vmatprep.subr.bf16.mxu1 %v6460_v0 }
 0x873   :  { %5841 = vmatpush3.bf16.msra.mxu1 %v6535_v14 }
 0x874   :  { %5848 = vmatprep.subr.bf16.mxu1 %v6460_v0 }
 0x941   :  { %v567_v27 = vpop.f32.mrb[4].mxu1 }
 0x942   :  { %v568_v28 = vadd.f32 %v567_v27, %v178_v26  ;;  %v5321_v29 = vpop.f32.mrb[5].mxu1  ;;  %v1010_v27 = vld [vmem:[%s7494_s4] sm:$0xff] }
 0x943   :  { %v1012_v29 = vld [vmem:[%s7494_s4 + $0x10] sm:$0xff] }
 0x944   :  { %6112 = vtanh.f32 %v568_v28  ;;  %v4889_v31 = vmul.f32 -1.442695, %v568_v28  ;;  %v1011_v28 = vld [vmem:[%s7494_s4 + $0x8] sm:$0xff] }
 0x946   :  { %6114 = vpow2.f32 %v4889_v31 }
 0x94e   :  { %v6113_v30 = vpop.eup %6112 }
 0x94f   :  { %580 = vrot.lane.b32.xlu0 %v6113_v30, %s6463_s27 }
 0x950   :  { %v6115_v32 = vpop.eup %6114 }
 0x951   :  { %v574_v33 = vadd.f32 1.0, %v6115_v32 }
 0x953   :  { %6116 = vrcp.f32 %v574_v33  ;;  %v193_v33 = vadd.f32 %v6559_v16, %v6614_v3 }
 0x95d   :  { %v6117_v34 = vpop.eup %6116 }
 0x95e   :  { %v578_v37 = vmul.f32 %v6117_v34, %v489_v21 }
 0x9c1   :  { %v581_v35 = vpop.permute.xlu0 %580 }
 0x9c2   :  { %v583_v36 = vmul.f32 %v6117_v34, %v581_v35 }
 0x9c4   :  { %585 = vrot.lane.b32.xlu1 %v583_v36, %s6464_s28 }
 0xa36   :  { %v586_v38 = vpop.permute.xlu1 %585 }
 0xa37   :  { %v588_v39 = vadd.f32 %v586_v38, %v578_v37 }
 0xa39   :  { %6118 = vtanh.f32 %v588_v39 }
 0xa43   :  { %v6119_v40 = vpop.eup %6118 }
 0xa44   :  { %591 = vrot.lane.b32.xlu0 %v6119_v40, %s6463_s27 }
 0xab6   :  { %v592_v41 = vpop.permute.xlu0 %591 }
 0xab7   :  { %v594_v42 = vmul.f32 %v6117_v34, %v592_v41 }
 0xab9   :  { %596 = vrot.lane.b32.xlu1 %v594_v42, %s6464_s28 }
 0xb2b   :  { %v597_v43 = vpop.permute.xlu1 %596 }
 0xb2c   :  { %1005 = vst.msk [vmem:[%s7494_s4 + $0x18] sm:$0xff] %vm71_vm1, %v597_v43  ;;  %5331 = vmatmul.mubr.msk.f32.vlgmr.msra.gmra.mrb[10].mxu0 %vm71_vm1, %v597_v43 }
 0xb2d   :  { %5844 = vmatpush3.bf16.msra.mxu0 %v6528_v9  ;;  %5352 = vmatprep.mubr.msk.f32.mxu0 %vm6461_vm0, %v6462_v1 }
 0xb2e   :  { %5845 = vmatprep.subr.bf16.mxu0 %v6460_v0 }
 0xb31   :  { %5847 = vmatpush3.bf16.msra.mxu0 %v6535_v14 }
 0xb32   :  { %5855 = vmatprep.subr.bf16.mxu0 %v5854_v19 }
 0xb33   :  { %v1013_v30 = vld [vmem:[%s7494_s4 + $0x18] sm:$0xff] }
 0xbff   :  { %v666_v45 = vpop.f32.mrb[10].mxu0 }
 0xc00   :  { %v667_v46 = vadd.f32 %v666_v45, %v183_v44  ;;  %v5332_v47 = vpop.f32.mrb[11].mxu0 }
 0xc02   :  { %6120 = vtanh.f32 %v667_v46  ;;  %v4891_v49 = vmul.f32 -1.442695, %v667_v46 }
 0xc04   :  { %6122 = vpow2.f32 %v4891_v49 }
 0xc0c   :  { %v6121_v48 = vpop.eup %6120 }
 0xc0d   :  { %679 = vrot.lane.b32.xlu0 %v6121_v48, %s6463_s27 }
 0xc0e   :  { %v6123_v50 = vpop.eup %6122 }
 0xc0f   :  { %v673_v51 = vadd.f32 1.0, %v6123_v50 }
 0xc11   :  { %6124 = vrcp.f32 %v673_v51 }
 0xc1b   :  { %v6125_v52 = vpop.eup %6124 }
 0xc1c   :  { %v677_v55 = vmul.f32 %v6125_v52, %v588_v39 }
 0xc7f   :  { %v680_v53 = vpop.permute.xlu0 %679 }
 0xc80   :  { %v682_v54 = vmul.f32 %v6125_v52, %v680_v53  ;;  %v1024_v53 = vld [vmem:[#allocation4 + $0x20] sm:$0xff] }
 0xc82   :  { %684 = vrot.lane.b32.xlu1 %v682_v54, %s6464_s28  ;;  %v1025_v54 = vld [vmem:[#allocation4 + $0x28] sm:$0xff] }
 0xcf4   :  { %v685_v56 = vpop.permute.xlu1 %684 }
 0xcf5   :  { %v687_v57 = vadd.f32 %v685_v56, %v677_v55  ;;  %v6729_v55 = vpack.c.bf16 %v1025_v54, %v1024_v53  ;;  %v1026_v56 = vld [vmem:[#allocation4 + $0x30] sm:$0xff] }
 0xcf7   :  { %6126 = vtanh.f32 %v687_v57 }
 0xd01   :  { %v6127_v58 = vpop.eup %6126 }
 0xd02   :  { %690 = vrot.lane.b32.xlu0 %v6127_v58, %s6463_s27 }
 0xd74   :  { %v691_v59 = vpop.permute.xlu0 %690 }
 0xd75   :  { %v693_v60 = vmul.f32 %v6125_v52, %v691_v59 }
 0xd77   :  { %695 = vrot.lane.b32.xlu1 %v693_v60, %s6464_s28 }
 0xde9   :  { %v696_v61 = vpop.permute.xlu1 %695 }
 0xdea   :  { %1006 = vst.msk [vmem:[%s7494_s4 + $0x20] sm:$0xff] %vm71_vm1, %v696_v61  ;;  %5342 = vmatmul.mubr.msk.f32.vlgmr.msra.gmra.mrb[6].mxu1 %vm71_vm1, %v696_v61 }
 0xdeb   :  { %5850 = vmatpush3.bf16.msra.mxu1 %v6528_v9  ;;  %5363 = vmatprep.mubr.msk.f32.mxu1 %vm6461_vm0, %v6462_v1 }
 0xdec   :  { %5851 = vmatprep.subr.bf16.mxu1 %v6460_v0 }
 0xdef   :  { %5853 = vmatpush3.bf16.msra.mxu1 %v6535_v14 }
 0xdf0   :  { %5862 = vmatprep.subr.bf16.mxu1 %v6460_v0 }
 0xdf1   :  { %v1014_v31 = vld [vmem:[%s7494_s4 + $0x20] sm:$0xff] }
 0xebd   :  { %v765_v4 = vpop.f32.mrb[6].mxu1 }
 0xebe   :  { %v766_v5 = vadd.f32 %v765_v4, %v188_v63  ;;  %v5343_v6 = vpop.f32.mrb[7].mxu1  ;;  %v198_v4 = vadd.f32 %v6612_v2, %v6559_v16 }
 0xec0   :  { %6128 = vtanh.f32 %v766_v5  ;;  %v4893_v9 = vmul.f32 -1.442695, %v766_v5 }
 0xec2   :  { %6130 = vpow2.f32 %v4893_v9  ;;  %v6765_v9 = vld [vmem:[%s7493_s3 + $0x1] ss:$0 sm:$0xff] }
 0xeca   :  { %v6129_v7 = vpop.eup %6128 }
 0xecb   :  { %778 = vrot.lane.b32.xlu0 %v6129_v7, %s6463_s27 }
 0xecc   :  { %v6131_v8 = vpop.eup %6130 }
 0xecd   :  { %v772_v10 = vadd.f32 1.0, %v6131_v8 }
 0xecf   :  { %6132 = vrcp.f32 %v772_v10 }
 0xed9   :  { %v6133_v11 = vpop.eup %6132 }
 0xeda   :  { %v776_v13 = vmul.f32 %v6133_v11, %v687_v57  ;;  %v1027_v57 = vld [vmem:[#allocation4 + $0x38] sm:$0xff] }
 0xedb   :  { %v6733_v58 = vpack.c.bf16 %v1027_v57, %v1026_v56 }
 0xf3d   :  { %v779_v12 = vpop.permute.xlu0 %778 }
 0xf3e   :  { %v781_v14 = vmul.f32 %v6133_v11, %v779_v12 }
 0xf40   :  { %783 = vrot.lane.b32.xlu1 %v781_v14, %s6464_s28 }
 0xfb2   :  { %v784_v15 = vpop.permute.xlu1 %783 }
 0xfb3   :  { %v786_v62 = vadd.f32 %v784_v15, %v776_v13 }
 0xfb5   :  { %6134 = vtanh.f32 %v786_v62 }
 0xfbf   :  { %v6135_v20 = vpop.eup %6134 }
 0xfc0   :  { %789 = vrot.lane.b32.xlu0 %v6135_v20, %s6463_s27 }
0x1032   :  { %v790_v21 = vpop.permute.xlu0 %789 }
0x1033   :  { %v792_v22 = vmul.f32 %v6133_v11, %v790_v21 }
0x1035   :  { %794 = vrot.lane.b32.xlu1 %v792_v22, %s6464_s28 }
0x10a7   :  { %v795_v26 = vpop.permute.xlu1 %794 }
0x10a8   :  { %1007 = vst.msk [vmem:[%s7494_s4 + $0x28] sm:$0xff] %vm71_vm1, %v795_v26  ;;  %5353 = vmatmul.mubr.msk.f32.vlgmr.msra.gmra.mrb[12].mxu0 %vm71_vm1, %v795_v26 }
0x10a9   :  { %5857 = vmatpush3.bf16.msra.mxu0 %v5854_v19  ;;  %5374 = vmatprep.mubr.msk.f32.mxu0 %vm71_vm1, %v1010_v27 }
0x10aa   :  { %5859 = vmatprep.subr.bf16.mxu0 %v5858_v25 }
0x10ad   :  { %5861 = vmatpush3.bf16.msra.mxu0 %v5858_v25 }
0x10ae   :  { %5874 = vmatprep.subr.bf16.mxu0 %v6460_v0 }
0x10af   :  { %v1015_v32 = vld [vmem:[%s7494_s4 + $0x28] sm:$0xff] }
0x10b0   :  { %5375 = vmatmul.mubr.msk.f32.vlgmr.msra.gmra.mrb[14].mxu0 %vm71_vm1, %v1011_v28 }
0x10b1   :  { %5377 = vmatprep.mubr.msk.f32.mxu0 %vm71_vm1, %v1012_v29  ;;  %5876 = vmatpush3.bf16.msra.mxu0 %v6729_v55 }
0x10b2   :  { %5877 = vmatprep.subr.bf16.mxu0 %v6460_v0 }
0x10b4   :  { %5378 = vmatmul.mubr.msk.f32.gmra.mrb[16].mxu0 %vm71_vm1, %v1013_v30 }
0x10b5   :  { %5380 = vmatprep.mubr.msk.f32.mxu0 %vm71_vm1, %v1014_v31  ;;  %5879 = vmatpush3.bf16.msra.mxu0 %v6733_v58 }
0x10b6   :  { %5886 = vmatprep.subr.bf16.mxu0 %v6460_v0 }
0x10b8   :  { %5381 = vmatmul.mubr.msk.f32.gmra.mrb[18].mxu0 %vm71_vm1, %v1015_v32 }
0x117b   :  { %v864_v34 = vpop.f32.mrb[12].mxu0 }
0x117c   :  { %v865_v35 = vadd.f32 %v864_v34, %v193_v33  ;;  %v5354_v36 = vpop.f32.mrb[13].mxu0 }
0x117e   :  { %6136 = vtanh.f32 %v865_v35  ;;  %v4895_v44 = vmul.f32 -1.442695, %v865_v35 }
0x1180   :  { %6138 = vpow2.f32 %v4895_v44 }
0x1183   :  { %v6713_v37 = vpop.f32.mrb[14].mxu0 }
0x1184   :  { %v1126_v38 = vpop.f32.mrb[15].mxu0 }
0x1185   :  { %v1127_v8 = vadd.f32 %v6765_v9, %v1126_v38 }
0x1187   :  { %v6715_v39 = vpop.f32.mrb[16].mxu0 }
0x1188   :  { %v6137_v40 = vpop.eup %6136  ;;  %v6717_v41 = vpop.f32.mrb[17].mxu0 }
0x1189   :  { %877 = vrot.lane.b32.xlu0 %v6137_v40, %s6463_s27  ;;  %v1132_v40 = vadd.f32 %v6713_v37, %v6765_v9 }
0x118a   :  { %v6139_v3 = vpop.eup %6138 }
0x118b   :  { %v6720_v42 = vpop.f32.mrb[18].mxu0  ;;  %v871_v45 = vadd.f32 1.0, %v6139_v3 }
0x118c   :  { %v6722_v43 = vpop.f32.mrb[19].mxu0 }
0x118d   :  { %6140 = vrcp.f32 %v871_v45 }
0x1197   :  { %v6141_v46 = vpop.eup %6140 }
0x1198   :  { %v875_v49 = vmul.f32 %v6141_v46, %v786_v62 }
0x11fb   :  { %v878_v47 = vpop.permute.xlu0 %877 }
0x11fc   :  { %v880_v48 = vmul.f32 %v6141_v46, %v878_v47 }
0x11fe   :  { %882 = vrot.lane.b32.xlu1 %v880_v48, %s6464_s28 }
0x1270   :  { %v883_v50 = vpop.permute.xlu1 %882 }
0x1271   :  { %v6725_v51 = vadd.f32 %v883_v50, %v875_v49 }
0x1273   :  { %6142 = vtanh.f32 %v6725_v51 }
0x127d   :  { %v6143_v52 = vpop.eup %6142 }
0x127e   :  { %888 = vrot.lane.b32.xlu0 %v6143_v52, %s6463_s27 }
0x12f0   :  { %v889_v59 = vpop.permute.xlu0 %888 }
0x12f1   :  { %v891_v60 = vmul.f32 %v6141_v46, %v889_v59 }
0x12f3   :  { %893 = vrot.lane.b32.xlu1 %v891_v60, %s6464_s28 }
0x1365   :  { %v894_v61 = vpop.permute.xlu1 %893 }
0x1366   :  { %1008 = vst.msk [vmem:[%s7494_s4 + $0x30] sm:$0xff] %vm71_vm1, %v894_v61  ;;  %5364 = vmatmul.mubr.msk.f32.vlgmr.msra.gmra.mrb[8].mxu1 %vm71_vm1, %v894_v61 }
0x1367   :  { %5864 = vmatpush3.bf16.msra.mxu1 %v6729_v55  ;;  %5394 = vmatprep.mubr.msk.f32.mxu1 %vm6461_vm0, %v6462_v1 }
0x1368   :  { %5865 = vmatprep.subr.bf16.mxu1 %v6460_v0 }
0x136b   :  { %5867 = vmatpush3.bf16.msra.mxu1 %v6733_v58 }
0x136c   :  { %5868 = vmatprep.subr.bf16.mxu1 %v6460_v0 }
0x136d   :  { %v1016_v63 = vld [vmem:[%s7494_s4 + $0x30] sm:$0xff] }
0x136e   :  { %5395 = vmatmul.mubr.f32.vlgmr.msra.gmra.mrb[10].mxu1 %v6462_v1  ;;  %5383 = vmatprep.mubr.msk.f32.mxu0 %vm71_vm1, %v1016_v63 }
0x136f   :  { %5870 = vmatpush3.bf16.msra.mxu1 %v6729_v55  ;;  %5405 = vmatprep.mubr.msk.f32.mxu1 %vm6461_vm0, %v6462_v1 }
0x1370   :  { %5871 = vmatprep.subr.bf16.mxu1 %v6460_v0 }
0x1373   :  { %5873 = vmatpush3.bf16.msra.mxu1 %v6733_v58 }
0x1374   :  { %5880 = vmatprep.subr.bf16.mxu1 %v6460_v0 }
0x1439   :  { %v963_v5 = vpop.f32.mrb[8].mxu1 }
0x143a   :  { %v964_v6 = vadd.f32 %v963_v5, %v198_v4  ;;  %v5365_v7 = vpop.f32.mrb[9].mxu1 }
0x143c   :  { %v4897_v23 = vmul.f32 -1.442695, %v964_v6 }
0x1441   :  { %v1231_v10 = vpop.f32.mrb[10].mxu1 }
0x1442   :  { %v1232_v11 = vadd.f32 %v1231_v10, %v1127_v8  ;;  %v5396_v12 = vpop.f32.mrb[11].mxu1 }
0x1444   :  { %6144 = vtanh.f32 %v1232_v11  ;;  %v4908_v13 = vmul.f32 -1.442695, %v1232_v11 }
0x1446   :  { %6146 = vpow2.f32 %v4908_v13 }
0x144e   :  { %v6145_v14 = vpop.eup %6144 }
0x144f   :  { %1244 = vrot.lane.b32.xlu0 %v6145_v14, %s6463_s27 }
0x1450   :  { %v6147_v16 = vpop.eup %6146 }
0x1451   :  { %v1238_v2 = vadd.f32 1.0, %v6147_v16 }
0x1453   :  { %6148 = vrcp.f32 %v1238_v2 }
0x145d   :  { %v6149_v15 = vpop.eup %6148 }
0x145e   :  { %v1242_v18 = vmul.f32 0.0, %v6149_v15 }
0x14c1   :  { %v1245_v62 = vpop.permute.xlu0 %1244 }
0x14c2   :  { %v1247_v17 = vmul.f32 %v6149_v15, %v1245_v62 }
0x14c4   :  { %1249 = vrot.lane.b32.xlu1 %v1247_v17, %s6464_s28 }
0x1536   :  { %v1250_v19 = vpop.permute.xlu1 %1249 }
0x1537   :  { %v1252_v20 = vadd.f32 %v1250_v19, %v1242_v18 }
0x1539   :  { %6150 = vtanh.f32 %v1252_v20 }
0x153a   :  { %6152 = vtanh.f32 %v964_v6  ;;  %v1137_v6 = vadd.f32 %v6765_v9, %v6717_v41 }
0x153b   :  { %6154 = vpow2.f32 %v4897_v23 }
0x1543   :  { %v6151_v21 = vpop.eup %6150 }
0x1544   :  { %1255 = vrot.lane.b32.xlu0 %v6151_v21, %s6463_s27  ;;  %v6153_v22 = vpop.eup %6152 }
0x1545   :  { %v6155_v24 = vpop.eup %6154 }
0x1546   :  { %v970_v25 = vadd.f32 1.0, %v6155_v24 }
0x1548   :  { %976 = vrot.lane.b32.xlu0 %v6153_v22, %s6463_s27  ;;  %6156 = vrcp.f32 %v970_v25  ;;  %v1142_v22 = vadd.f32 %v6715_v39, %v6765_v9 }
0x1552   :  { %v6157_v28 = vpop.eup %6156 }
0x1553   :  { %v974_v32 = vmul.f32 %v6157_v28, %v6725_v51 }
0x15b6   :  { %v1256_v26 = vpop.permute.xlu0 %1255 }
0x15b7   :  { %v1258_v27 = vmul.f32 %v6149_v15, %v1256_v26 }
0x15b9   :  { %1260 = vrot.lane.b32.xlu1 %v1258_v27, %s6464_s28 }
0x15ba   :  { %v977_v29 = vpop.permute.xlu0 %976 }
0x15bb   :  { %v979_v30 = vmul.f32 %v6157_v28, %v977_v29 }
0x15bd   :  { %981 = vrot.lane.b32.xlu0 %v979_v30, %s6464_s28 }
0x162b   :  { %v1261_v31 = vpop.permute.xlu1 %1260 }
0x162c   :  { %1963 = vst.msk [vmem:[%s7494_s4] sm:$0xff] %vm71_vm1, %v1261_v31  ;;  %5406 = vmatmul.mubr.msk.f32.vlgmr.msra.gmra.mrb[12].mxu1 %vm71_vm1, %v1261_v31 }
0x162d   :  { %5882 = vmatpush3.bf16.msra.mxu1 %v6729_v55  ;;  %5427 = vmatprep.mubr.msk.f32.mxu1 %vm6461_vm0, %v6462_v1 }
0x162e   :  { %5883 = vmatprep.subr.bf16.mxu1 %v6460_v0 }
0x162f   :  { %v982_v33 = vpop.permute.xlu0 %981 }
0x1630   :  { %v984_v34 = vadd.f32 %v982_v33, %v974_v32 }
0x1631   :  { %5885 = vmatpush3.bf16.msra.mxu1 %v6733_v58 }
0x1632   :  { %6158 = vtanh.f32 %v984_v34  ;;  %5892 = vmatprep.subr.bf16.mxu1 %v6460_v0 }
0x163c   :  { %v6159_v35 = vpop.eup %6158 }
0x163d   :  { %987 = vrot.lane.b32.xlu0 %v6159_v35, %s6463_s27 }
0x16af   :  { %v988_v36 = vpop.permute.xlu0 %987 }
0x16b0   :  { %v990_v38 = vmul.f32 %v6157_v28, %v988_v36 }
0x16b2   :  { %992 = vrot.lane.b32.xlu0 %v990_v38, %s6464_s28 }
0x16ff   :  { %v1330_v44 = vpop.f32.mrb[12].mxu1 }
0x1700   :  { %v1331_v3 = vadd.f32 %v1330_v44, %v1132_v40  ;;  %v5407_v45 = vpop.f32.mrb[13].mxu1  ;;  %v1147_v44 = vadd.f32 %v6765_v9, %v6722_v43 }
0x1702   :  { %6160 = vtanh.f32 %v1331_v3  ;;  %v4910_v37 = vmul.f32 -1.442695, %v1331_v3 }
0x1704   :  { %6162 = vpow2.f32 %v4910_v37 }
0x170c   :  { %v6161_v46 = vpop.eup %6160 }
0x170d   :  { %1343 = vrot.lane.b32.xlu1 %v6161_v46, %s6463_s27 }
0x170e   :  { %v6163_v49 = vpop.eup %6162 }
0x170f   :  { %v1337_v50 = vadd.f32 1.0, %v6163_v49 }
0x1711   :  { %6164 = vrcp.f32 %v1337_v50 }
0x171b   :  { %v6165_v51 = vpop.eup %6164 }
0x171c   :  { %v1341_v54 = vmul.f32 %v6165_v51, %v1252_v20 }
0x1724   :  { %v993_v47 = vpop.permute.xlu0 %992 }
0x1725   :  { %1009 = vst.msk [vmem:[%s7494_s4 + $0x38] sm:$0xff] %vm71_vm1, %v993_v47 }
0x172c   :  { %v1017_v48 = vld [vmem:[%s7494_s4 + $0x38] sm:$0xff] }
0x172d   :  { %5384 = vmatmul.mubr.msk.f32.gmra.mrb[20].mxu0 %vm71_vm1, %v1017_v48 }
0x172e   :  { %5416 = vmatprep.mubr.msk.f32.mxu0 %vm6461_vm0, %v6462_v1 }
0x177f   :  { %v1344_v52 = vpop.permute.xlu1 %1343 }
0x1780   :  { %v1346_v53 = vmul.f32 %v6165_v51, %v1344_v52 }
0x1782   :  { %1348 = vrot.lane.b32.xlu1 %v1346_v53, %s6464_s28 }
0x17f4   :  { %v1349_v56 = vpop.permute.xlu1 %1348 }
0x17f5   :  { %v1351_v57 = vadd.f32 %v1349_v56, %v1341_v54 }
0x17f7   :  { %6166 = vtanh.f32 %v1351_v57 }
0x1800   :  { %v6802_v59 = vpop.f32.mrb[20].mxu0 }
0x1801   :  { %v6167_v60 = vpop.eup %6166  ;;  %v6804_v61 = vpop.f32.mrb[21].mxu0 }
0x1802   :  { %1354 = vrot.lane.b32.xlu1 %v6167_v60, %s6463_s27 }
0x1874   :  { %v1355_v63 = vpop.permute.xlu1 %1354 }
0x1875   :  { %v1357_v4 = vmul.f32 %v6165_v51, %v1355_v63 }
0x1877   :  { %1359 = vrot.lane.b32.xlu1 %v1357_v4, %s6464_s28  ;;  %v1152_v4 = vadd.f32 %v6720_v42, %v6765_v9 }
0x18e9   :  { %v1360_v5 = vpop.permute.xlu1 %1359 }
0x18ea   :  { %1964 = vst.msk [vmem:[%s7494_s4 + $0x8] sm:$0xff] %vm71_vm1, %v1360_v5  ;;  %5417 = vmatmul.mubr.msk.f32.vlgmr.msra.gmra.mrb[22].mxu0 %vm71_vm1, %v1360_v5 }
0x18eb   :  { %5888 = vmatpush3.bf16.msra.mxu0 %v6729_v55  ;;  %5438 = vmatprep.mubr.msk.f32.mxu0 %vm6461_vm0, %v6462_v1 }
0x18ec   :  { %5889 = vmatprep.subr.bf16.mxu0 %v6460_v0 }
0x18ef   :  { %5891 = vmatpush3.bf16.msra.mxu0 %v6733_v58 }
0x18f0   :  { %5898 = vmatprep.subr.bf16.mxu0 %v6460_v0 }
0x19bd   :  { %v1429_v7 = vpop.f32.mrb[22].mxu0 }
0x19be   :  { %v1430_v8 = vadd.f32 %v1429_v7, %v1137_v6  ;;  %v5418_v10 = vpop.f32.mrb[23].mxu0 }
0x19c0   :  { %6168 = vtanh.f32 %v1430_v8  ;;  %v4912_v12 = vmul.f32 -1.442695, %v1430_v8 }
0x19c2   :  { %6170 = vpow2.f32 %v4912_v12 }
0x19ca   :  { %v6169_v11 = vpop.eup %6168 }
0x19cb   :  { %1442 = vrot.lane.b32.xlu0 %v6169_v11, %s6463_s27 }
0x19cc   :  { %v6171_v14 = vpop.eup %6170 }
0x19cd   :  { %v1436_v13 = vadd.f32 1.0, %v6171_v14 }
0x19cf   :  { %6172 = vrcp.f32 %v1436_v13 }
0x19d9   :  { %v6173_v16 = vpop.eup %6172 }
0x19da   :  { %v1440_v62 = vmul.f32 %v6173_v16, %v1351_v57 }
0x1a3d   :  { %v1443_v2 = vpop.permute.xlu0 %1442 }
0x1a3e   :  { %v1445_v15 = vmul.f32 %v6173_v16, %v1443_v2  ;;  %v1980_v2 = vld [vmem:[#allocation2 + $0x40] sm:$0xff] }
0x1a40   :  { %1447 = vrot.lane.b32.xlu1 %v1445_v15, %s6464_s28  ;;  %v1981_v15 = vld [vmem:[#allocation2 + $0x48] sm:$0xff] }
0x1ab2   :  { %v1448_v17 = vpop.permute.xlu1 %1447 }
0x1ab3   :  { %v1450_v41 = vadd.f32 %v1448_v17, %v1440_v62  ;;  %v5910_v62 = vpack.c.bf16 %v1981_v15, %v1980_v2 }
0x1ab5   :  { %6174 = vtanh.f32 %v1450_v41 }
0x1abf   :  { %v6175_v18 = vpop.eup %6174 }
0x1ac0   :  { %1453 = vrot.lane.b32.xlu0 %v6175_v18, %s6463_s27 }
0x1b32   :  { %v1454_v19 = vpop.permute.xlu0 %1453 }
0x1b33   :  { %v1456_v20 = vmul.f32 %v6173_v16, %v1454_v19  ;;  %v1982_v19 = vld [vmem:[#allocation2 + $0x50] sm:$0xff] }
0x1b35   :  { %1458 = vrot.lane.b32.xlu1 %v1456_v20, %s6464_s28  ;;  %v1983_v20 = vld [vmem:[#allocation2 + $0x58] sm:$0xff] }
0x1ba7   :  { %v1459_v21 = vpop.permute.xlu1 %1458 }
0x1ba8   :  { %1965 = vst.msk [vmem:[%s7494_s4 + $0x10] sm:$0xff] %vm71_vm1, %v1459_v21  ;;  %5428 = vmatmul.mubr.msk.f32.vlgmr.msra.gmra.mrb[14].mxu1 %vm71_vm1, %v1459_v21  ;;  %v5914_v21 = vpack.c.bf16 %v1983_v20, %v1982_v19 }
0x1ba9   :  { %5894 = vmatpush3.bf16.msra.mxu1 %v6729_v55  ;;  %5449 = vmatprep.mubr.msk.f32.mxu1 %vm6461_vm0, %v6462_v1 }
0x1baa   :  { %5895 = vmatprep.subr.bf16.mxu1 %v6460_v0 }
0x1bad   :  { %5897 = vmatpush3.bf16.msra.mxu1 %v6733_v58 }
0x1bae   :  { %5904 = vmatprep.subr.bf16.mxu1 %v6460_v0 }
0x1c7b   :  { %v1528_v23 = vpop.f32.mrb[14].mxu1 }
0x1c7c   :  { %v1529_v24 = vadd.f32 %v1528_v23, %v1142_v22  ;;  %v5429_v25 = vpop.f32.mrb[15].mxu1  ;;  %v1971_v23 = vld [vmem:[%s7494_s4] sm:$0xff] }
0x1c7d   :  { %v1973_v25 = vld [vmem:[%s7494_s4 + $0x10] sm:$0xff] }
0x1c7e   :  { %6176 = vtanh.f32 %v1529_v24  ;;  %v4914_v27 = vmul.f32 -1.442695, %v1529_v24  ;;  %v1972_v24 = vld [vmem:[%s7494_s4 + $0x8] sm:$0xff] }
0x1c80   :  { %6178 = vpow2.f32 %v4914_v27 }
0x1c88   :  { %v6177_v26 = vpop.eup %6176 }
0x1c89   :  { %1541 = vrot.lane.b32.xlu0 %v6177_v26, %s6463_s27 }
0x1c8a   :  { %v6179_v28 = vpop.eup %6178 }
0x1c8b   :  { %v1535_v29 = vadd.f32 1.0, %v6179_v28 }
0x1c8d   :  { %6180 = vrcp.f32 %v1535_v29  ;;  %v1157_v29 = vadd.f32 %v6765_v9, %v6804_v61 }
0x1c97   :  { %v6181_v30 = vpop.eup %6180 }
0x1c98   :  { %v1539_v33 = vmul.f32 %v6181_v30, %v1450_v41 }
0x1cfb   :  { %v1542_v31 = vpop.permute.xlu0 %1541 }
0x1cfc   :  { %v1544_v32 = vmul.f32 %v6181_v30, %v1542_v31 }
0x1cfe   :  { %1546 = vrot.lane.b32.xlu1 %v1544_v32, %s6464_s28 }
0x1d70   :  { %v1547_v34 = vpop.permute.xlu1 %1546 }
0x1d71   :  { %v1549_v39 = vadd.f32 %v1547_v34, %v1539_v33 }
0x1d73   :  { %6182 = vtanh.f32 %v1549_v39 }
0x1d7d   :  { %v6183_v35 = vpop.eup %6182 }
0x1d7e   :  { %1552 = vrot.lane.b32.xlu0 %v6183_v35, %s6463_s27 }
0x1df0   :  { %v1553_v36 = vpop.permute.xlu0 %1552 }
0x1df1   :  { %v1555_v38 = vmul.f32 %v6181_v30, %v1553_v36 }
0x1df3   :  { %1557 = vrot.lane.b32.xlu1 %v1555_v38, %s6464_s28 }
0x1e65   :  { %v1558_v40 = vpop.permute.xlu1 %1557 }
0x1e66   :  { %1966 = vst.msk [vmem:[%s7494_s4 + $0x18] sm:$0xff] %vm71_vm1, %v1558_v40  ;;  %5439 = vmatmul.mubr.msk.f32.vlgmr.msra.gmra.mrb[24].mxu0 %vm71_vm1, %v1558_v40 }
0x1e67   :  { %5900 = vmatpush3.bf16.msra.mxu0 %v6729_v55  ;;  %5460 = vmatprep.mubr.msk.f32.mxu0 %vm6461_vm0, %v6462_v1 }
0x1e68   :  { %5901 = vmatprep.subr.bf16.mxu0 %v6460_v0 }
0x1e6b   :  { %5903 = vmatpush3.bf16.msra.mxu0 %v6733_v58 }
0x1e6c   :  { %5911 = vmatprep.subr.bf16.mxu0 %v5910_v62 }
0x1e6d   :  { %v1974_v26 = vld [vmem:[%s7494_s4 + $0x18] sm:$0xff] }
0x1f39   :  { %v1627_v3 = vpop.f32.mrb[24].mxu0 }
0x1f3a   :  { %v1628_v45 = vadd.f32 %v1627_v3, %v1147_v44  ;;  %v5440_v46 = vpop.f32.mrb[25].mxu0 }
0x1f3c   :  { %6184 = vtanh.f32 %v1628_v45  ;;  %v4916_v48 = vmul.f32 -1.442695, %v1628_v45 }
0x1f3e   :  { %6186 = vpow2.f32 %v4916_v48 }
0x1f46   :  { %v6185_v47 = vpop.eup %6184 }
0x1f47   :  { %1640 = vrot.lane.b32.xlu0 %v6185_v47, %s6463_s27 }
0x1f48   :  { %v6187_v37 = vpop.eup %6186 }
0x1f49   :  { %v1634_v49 = vadd.f32 1.0, %v6187_v37 }
0x1f4b   :  { %6188 = vrcp.f32 %v1634_v49 }
0x1f55   :  { %v6189_v50 = vpop.eup %6188 }
0x1f56   :  { %v1638_v53 = vmul.f32 %v6189_v50, %v1549_v39 }
0x1fb9   :  { %v1641_v51 = vpop.permute.xlu0 %1640 }
0x1fba   :  { %v1643_v52 = vmul.f32 %v6189_v50, %v1641_v51  ;;  %v1985_v51 = vld [vmem:[#allocation4 + $0x40] sm:$0xff] }
0x1fbc   :  { %1645 = vrot.lane.b32.xlu1 %v1643_v52, %s6464_s28  ;;  %v1986_v52 = vld [vmem:[#allocation4 + $0x48] sm:$0xff] }
0x202e   :  { %v1646_v54 = vpop.permute.xlu1 %1645 }
0x202f   :  { %v1648_v43 = vadd.f32 %v1646_v54, %v1638_v53  ;;  %v6923_v53 = vpack.c.bf16 %v1986_v52, %v1985_v51  ;;  %v1987_v54 = vld [vmem:[#allocation4 + $0x50] sm:$0xff] }
0x2031   :  { %6190 = vtanh.f32 %v1648_v43 }
0x203b   :  { %v6191_v56 = vpop.eup %6190 }
0x203c   :  { %1651 = vrot.lane.b32.xlu0 %v6191_v56, %s6463_s27 }
0x20ae   :  { %v1652_v57 = vpop.permute.xlu0 %1651 }
0x20af   :  { %v1654_v60 = vmul.f32 %v6189_v50, %v1652_v57 }
0x20b1   :  { %1656 = vrot.lane.b32.xlu1 %v1654_v60, %s6464_s28 }
0x2123   :  { %v1657_v63 = vpop.permute.xlu1 %1656 }
0x2124   :  { %1967 = vst.msk [vmem:[%s7494_s4 + $0x20] sm:$0xff] %vm71_vm1, %v1657_v63  ;;  %5450 = vmatmul.mubr.msk.f32.vlgmr.msra.gmra.mrb[16].mxu1 %vm71_vm1, %v1657_v63 }
0x2125   :  { %5906 = vmatpush3.bf16.msra.mxu1 %v6729_v55  ;;  %5471 = vmatprep.mubr.msk.f32.mxu1 %vm6461_vm0, %v6462_v1 }
0x2126   :  { %5907 = vmatprep.subr.bf16.mxu1 %v6460_v0 }
0x2129   :  { %5909 = vmatpush3.bf16.msra.mxu1 %v6733_v58 }
0x212a   :  { %5918 = vmatprep.subr.bf16.mxu1 %v6460_v0 }
0x212b   :  { %v1975_v27 = vld [vmem:[%s7494_s4 + $0x20] sm:$0xff] }
0x21f7   :  { %v1726_v5 = vpop.f32.mrb[16].mxu1 }
0x21f8   :  { %v1727_v6 = vadd.f32 %v1726_v5, %v1152_v4  ;;  %v5451_v7 = vpop.f32.mrb[17].mxu1  ;;  %v1162_v5 = vadd.f32 %v6802_v59, %v6765_v9 }
0x21fa   :  { %6192 = vtanh.f32 %v1727_v6  ;;  %v4918_v55 = vmul.f32 -1.442695, %v1727_v6 }
0x21fc   :  { %6194 = vpow2.f32 %v4918_v55  ;;  %v6959_v55 = vld [vmem:[%s7493_s3 + $0x2] ss:$0 sm:$0xff] }
0x2204   :  { %v6193_v8 = vpop.eup %6192 }
0x2205   :  { %1739 = vrot.lane.b32.xlu0 %v6193_v8, %s6463_s27 }
0x2206   :  { %v6195_v10 = vpop.eup %6194 }
0x2207   :  { %v1733_v11 = vadd.f32 1.0, %v6195_v10 }
0x2209   :  { %6196 = vrcp.f32 %v1733_v11 }
0x2213   :  { %v6197_v12 = vpop.eup %6196 }
0x2214   :  { %v1737_v13 = vmul.f32 %v6197_v12, %v1648_v43  ;;  %v1988_v43 = vld [vmem:[#allocation4 + $0x58] sm:$0xff] }
0x2215   :  { %v6927_v56 = vpack.c.bf16 %v1988_v43, %v1987_v54 }
0x2277   :  { %v1740_v14 = vpop.permute.xlu0 %1739 }
0x2278   :  { %v1742_v58 = vmul.f32 %v6197_v12, %v1740_v14 }
0x227a   :  { %1744 = vrot.lane.b32.xlu1 %v1742_v58, %s6464_s28 }
0x22ec   :  { %v1745_v16 = vpop.permute.xlu1 %1744 }
0x22ed   :  { %v1747_v42 = vadd.f32 %v1745_v16, %v1737_v13 }
0x22ef   :  { %6198 = vtanh.f32 %v1747_v42 }
0x22f9   :  { %v6199_v17 = vpop.eup %6198 }
0x22fa   :  { %1750 = vrot.lane.b32.xlu0 %v6199_v17, %s6463_s27 }
0x236c   :  { %v1751_v41 = vpop.permute.xlu0 %1750 }
0x236d   :  { %v1753_v18 = vmul.f32 %v6197_v12, %v1751_v41 }
0x236f   :  { %1755 = vrot.lane.b32.xlu1 %v1753_v18, %s6464_s28 }
0x23e1   :  { %v1756_v22 = vpop.permute.xlu1 %1755 }
0x23e2   :  { %1968 = vst.msk [vmem:[%s7494_s4 + $0x28] sm:$0xff] %vm71_vm1, %v1756_v22  ;;  %5461 = vmatmul.mubr.msk.f32.vlgmr.msra.gmra.mrb[26].mxu0 %vm71_vm1, %v1756_v22 }
0x23e3   :  { %5913 = vmatpush3.bf16.msra.mxu0 %v5910_v62  ;;  %5482 = vmatprep.mubr.msk.f32.mxu0 %vm71_vm1, %v1971_v23 }
0x23e4   :  { %5915 = vmatprep.subr.bf16.mxu0 %v5914_v21 }
0x23e7   :  { %5917 = vmatpush3.bf16.msra.mxu0 %v5914_v21 }
0x23e8   :  { %5930 = vmatprep.subr.bf16.mxu0 %v6460_v0 }
0x23e9   :  { %v1976_v28 = vld [vmem:[%s7494_s4 + $0x28] sm:$0xff] }
0x23ea   :  { %5483 = vmatmul.mubr.msk.f32.vlgmr.msra.gmra.mrb[28].mxu0 %vm71_vm1, %v1972_v24 }
0x23eb   :  { %5485 = vmatprep.mubr.msk.f32.mxu0 %vm71_vm1, %v1973_v25  ;;  %5932 = vmatpush3.bf16.msra.mxu0 %v6923_v53 }
0x23ec   :  { %5933 = vmatprep.subr.bf16.mxu0 %v6460_v0 }
0x23ee   :  { %5486 = vmatmul.mubr.msk.f32.gmra.mrb[30].mxu0 %vm71_vm1, %v1974_v26 }
0x23ef   :  { %5488 = vmatprep.mubr.msk.f32.mxu0 %vm71_vm1, %v1975_v27  ;;  %5935 = vmatpush3.bf16.msra.mxu0 %v6927_v56 }
0x23f0   :  { %5942 = vmatprep.subr.bf16.mxu0 %v6460_v0 }
0x23f2   :  { %5489 = vmatmul.mubr.msk.f32.gmra.mrb[32].mxu0 %vm71_vm1, %v1976_v28 }
0x24b5   :  { %v1825_v30 = vpop.f32.mrb[26].mxu0 }
0x24b6   :  { %v1826_v31 = vadd.f32 %v1825_v30, %v1157_v29  ;;  %v5462_v32 = vpop.f32.mrb[27].mxu0 }
0x24b8   :  { %6200 = vtanh.f32 %v1826_v31  ;;  %v4920_v44 = vmul.f32 -1.442695, %v1826_v31 }
0x24ba   :  { %6202 = vpow2.f32 %v4920_v44 }
0x24bd   :  { %v6907_v33 = vpop.f32.mrb[28].mxu0 }
0x24be   :  { %v2087_v34 = vpop.f32.mrb[29].mxu0 }
0x24bf   :  { %v2088_v10 = vadd.f32 %v6959_v55, %v2087_v34 }
0x24c1   :  { %v6909_v39 = vpop.f32.mrb[30].mxu0 }
0x24c2   :  { %v6201_v35 = vpop.eup %6200  ;;  %v6911_v36 = vpop.f32.mrb[31].mxu0 }
0x24c3   :  { %1838 = vrot.lane.b32.xlu0 %v6201_v35, %s6463_s27  ;;  %v2093_v35 = vadd.f32 %v6907_v33, %v6959_v55 }
0x24c4   :  { %v6203_v61 = vpop.eup %6202 }
0x24c5   :  { %v6914_v38 = vpop.f32.mrb[32].mxu0  ;;  %v1832_v3 = vadd.f32 1.0, %v6203_v61 }
0x24c6   :  { %v6916_v40 = vpop.f32.mrb[33].mxu0 }
0x24c7   :  { %6204 = vrcp.f32 %v1832_v3 }
0x24d1   :  { %v6205_v45 = vpop.eup %6204 }
0x24d2   :  { %v1836_v48 = vmul.f32 %v6205_v45, %v1747_v42 }
0x2535   :  { %v1839_v46 = vpop.permute.xlu0 %1838 }
0x2536   :  { %v1841_v47 = vmul.f32 %v6205_v45, %v1839_v46 }
0x2538   :  { %1843 = vrot.lane.b32.xlu1 %v1841_v47, %s6464_s28 }
0x25aa   :  { %v1844_v37 = vpop.permute.xlu1 %1843 }
0x25ab   :  { %v6919_v49 = vadd.f32 %v1844_v37, %v1836_v48 }
0x25ad   :  { %6206 = vtanh.f32 %v6919_v49 }
0x25b7   :  { %v6207_v50 = vpop.eup %6206 }
0x25b8   :  { %1849 = vrot.lane.b32.xlu0 %v6207_v50, %s6463_s27 }
0x262a   :  { %v1850_v57 = vpop.permute.xlu0 %1849 }
0x262b   :  { %v1852_v60 = vmul.f32 %v6205_v45, %v1850_v57 }
0x262d   :  { %1854 = vrot.lane.b32.xlu1 %v1852_v60, %s6464_s28 }
0x269f   :  { %v1855_v63 = vpop.permute.xlu1 %1854 }
0x26a0   :  { %1969 = vst.msk [vmem:[%s7494_s4 + $0x30] sm:$0xff] %vm71_vm1, %v1855_v63  ;;  %5472 = vmatmul.mubr.msk.f32.vlgmr.msra.gmra.mrb[18].mxu1 %vm71_vm1, %v1855_v63 }
0x26a1   :  { %5920 = vmatpush3.bf16.msra.mxu1 %v6923_v53  ;;  %5502 = vmatprep.mubr.msk.f32.mxu1 %vm6461_vm0, %v6462_v1 }
0x26a2   :  { %5921 = vmatprep.subr.bf16.mxu1 %v6460_v0 }
0x26a5   :  { %5923 = vmatpush3.bf16.msra.mxu1 %v6927_v56 }
0x26a6   :  { %5924 = vmatprep.subr.bf16.mxu1 %v6460_v0 }
0x26a7   :  { %v1977_v4 = vld [vmem:[%s7494_s4 + $0x30] sm:$0xff] }
0x26a8   :  { %5503 = vmatmul.mubr.f32.vlgmr.msra.gmra.mrb[20].mxu1 %v6462_v1  ;;  %5491 = vmatprep.mubr.msk.f32.mxu0 %vm71_vm1, %v1977_v4 }
0x26a9   :  { %5926 = vmatpush3.bf16.msra.mxu1 %v6923_v53  ;;  %5513 = vmatprep.mubr.msk.f32.mxu1 %vm6461_vm0, %v6462_v1 }
0x26aa   :  { %5927 = vmatprep.subr.bf16.mxu1 %v6460_v0 }
0x26ad   :  { %5929 = vmatpush3.bf16.msra.mxu1 %v6927_v56 }
0x26ae   :  { %5936 = vmatprep.subr.bf16.mxu1 %v6460_v0 }
0x2773   :  { %v1924_v6 = vpop.f32.mrb[18].mxu1 }
0x2774   :  { %v1925_v7 = vadd.f32 %v1924_v6, %v1162_v5  ;;  %v5473_v8 = vpop.f32.mrb[19].mxu1 }
0x2776   :  { %v4922_v19 = vmul.f32 -1.442695, %v1925_v7 }
0x277b   :  { %v2192_v11 = vpop.f32.mrb[20].mxu1 }
0x277c   :  { %v2193_v12 = vadd.f32 %v2192_v11, %v2088_v10  ;;  %v5504_v14 = vpop.f32.mrb[21].mxu1 }
0x277e   :  { %6208 = vtanh.f32 %v2193_v12  ;;  %v4933_v13 = vmul.f32 -1.442695, %v2193_v12 }
0x2780   :  { %6210 = vpow2.f32 %v4933_v13 }
0x2788   :  { %v6209_v58 = vpop.eup %6208 }
0x2789   :  { %2205 = vrot.lane.b32.xlu0 %v6209_v58, %s6463_s27 }
0x278a   :  { %v6211_v9 = vpop.eup %6210 }
0x278b   :  { %v2199_v59 = vadd.f32 1.0, %v6211_v9 }
0x278d   :  { %6212 = vrcp.f32 %v2199_v59 }
0x2797   :  { %v6213_v16 = vpop.eup %6212 }
0x2798   :  { %v2203_v15 = vmul.f32 0.0, %v6213_v16 }
0x27fb   :  { %v2206_v42 = vpop.permute.xlu0 %2205 }
0x27fc   :  { %v2208_v2 = vmul.f32 %v6213_v16, %v2206_v42 }
0x27fe   :  { %2210 = vrot.lane.b32.xlu1 %v2208_v2, %s6464_s28 }
0x2870   :  { %v2211_v62 = vpop.permute.xlu1 %2210 }
0x2871   :  { %v2213_v17 = vadd.f32 %v2211_v62, %v2203_v15 }
0x2873   :  { %6214 = vtanh.f32 %v2213_v17 }
0x2874   :  { %6216 = vtanh.f32 %v1925_v7  ;;  %v2098_v7 = vadd.f32 %v6959_v55, %v6911_v36 }
0x2875   :  { %6218 = vpow2.f32 %v4922_v19 }
0x287d   :  { %v6215_v41 = vpop.eup %6214 }
0x287e   :  { %2216 = vrot.lane.b32.xlu0 %v6215_v41, %s6463_s27  ;;  %v6217_v18 = vpop.eup %6216 }
0x287f   :  { %v6219_v20 = vpop.eup %6218 }
0x2880   :  { %v1931_v21 = vadd.f32 1.0, %v6219_v20 }
0x2882   :  { %1937 = vrot.lane.b32.xlu0 %v6217_v18, %s6463_s27  ;;  %6220 = vrcp.f32 %v1931_v21  ;;  %v2103_v18 = vadd.f32 %v6909_v39, %v6959_v55 }
0x288c   :  { %v6221_v24 = vpop.eup %6220 }
0x288d   :  { %v1935_v28 = vmul.f32 %v6221_v24, %v6919_v49 }
0x28f0   :  { %v2217_v22 = vpop.permute.xlu0 %2216 }
0x28f1   :  { %v2219_v23 = vmul.f32 %v6213_v16, %v2217_v22 }
0x28f3   :  { %2221 = vrot.lane.b32.xlu1 %v2219_v23, %s6464_s28 }
0x28f4   :  { %v1938_v25 = vpop.permute.xlu0 %1937 }
0x28f5   :  { %v1940_v26 = vmul.f32 %v6221_v24, %v1938_v25 }
0x28f7   :  { %1942 = vrot.lane.b32.xlu0 %v1940_v26, %s6464_s28 }
0x2965   :  { %v2222_v27 = vpop.permute.xlu1 %2221 }
0x2966   :  { %2924 = vst.msk [vmem:[%s7494_s4] sm:$0xff] %vm71_vm1, %v2222_v27  ;;  %5514 = vmatmul.mubr.msk.f32.vlgmr.msra.gmra.mrb[22].mxu1 %vm71_vm1, %v2222_v27 }
0x2967   :  { %5938 = vmatpush3.bf16.msra.mxu1 %v6923_v53  ;;  %5535 = vmatprep.mubr.msk.f32.mxu1 %vm6461_vm0, %v6462_v1 }
0x2968   :  { %5939 = vmatprep.subr.bf16.mxu1 %v6460_v0 }
0x2969   :  { %v1943_v29 = vpop.permute.xlu0 %1942 }
0x296a   :  { %v1945_v30 = vadd.f32 %v1943_v29, %v1935_v28 }
0x296b   :  { %5941 = vmatpush3.bf16.msra.mxu1 %v6927_v56 }
0x296c   :  { %6222 = vtanh.f32 %v1945_v30  ;;  %5948 = vmatprep.subr.bf16.mxu1 %v6460_v0 }
0x2976   :  { %v6223_v31 = vpop.eup %6222 }
0x2977   :  { %1948 = vrot.lane.b32.xlu0 %v6223_v31, %s6463_s27 }
0x29e9   :  { %v1949_v32 = vpop.permute.xlu0 %1948 }
0x29ea   :  { %v1951_v34 = vmul.f32 %v6221_v24, %v1949_v32 }
0x29ec   :  { %1953 = vrot.lane.b32.xlu0 %v1951_v34, %s6464_s28 }
0x2a39   :  { %v2291_v44 = vpop.f32.mrb[22].mxu1 }
0x2a3a   :  { %v2292_v61 = vadd.f32 %v2291_v44, %v2093_v35  ;;  %v5515_v3 = vpop.f32.mrb[23].mxu1  ;;  %v2108_v44 = vadd.f32 %v6959_v55, %v6916_v40 }
0x2a3c   :  { %6224 = vtanh.f32 %v2292_v61  ;;  %v4935_v33 = vmul.f32 -1.442695, %v2292_v61 }
0x2a3e   :  { %6226 = vpow2.f32 %v4935_v33 }
0x2a46   :  { %v6225_v45 = vpop.eup %6224 }
0x2a47   :  { %2304 = vrot.lane.b32.xlu1 %v6225_v45, %s6463_s27 }
0x2a48   :  { %v6227_v48 = vpop.eup %6226 }
0x2a49   :  { %v2298_v37 = vadd.f32 1.0, %v6227_v48 }
0x2a4b   :  { %6228 = vrcp.f32 %v2298_v37 }
0x2a55   :  { %v6229_v49 = vpop.eup %6228 }
0x2a56   :  { %v2302_v52 = vmul.f32 %v6229_v49, %v2213_v17 }
0x2a5e   :  { %v1954_v46 = vpop.permute.xlu0 %1953 }
0x2a5f   :  { %1970 = vst.msk [vmem:[%s7494_s4 + $0x38] sm:$0xff] %vm71_vm1, %v1954_v46 }
0x2a66   :  { %v1978_v47 = vld [vmem:[%s7494_s4 + $0x38] sm:$0xff] }
0x2a67   :  { %5492 = vmatmul.mubr.msk.f32.gmra.mrb[34].mxu0 %vm71_vm1, %v1978_v47 }
0x2a68   :  { %5524 = vmatprep.mubr.msk.f32.mxu0 %vm6461_vm0, %v6462_v1 }
0x2ab9   :  { %v2305_v50 = vpop.permute.xlu1 %2304 }
0x2aba   :  { %v2307_v51 = vmul.f32 %v6229_v49, %v2305_v50 }
0x2abc   :  { %2309 = vrot.lane.b32.xlu1 %v2307_v51, %s6464_s28 }
0x2b2e   :  { %v2310_v54 = vpop.permute.xlu1 %2309 }
0x2b2f   :  { %v2312_v43 = vadd.f32 %v2310_v54, %v2302_v52 }
0x2b31   :  { %6230 = vtanh.f32 %v2312_v43 }
0x2b3a   :  { %v6996_v57 = vpop.f32.mrb[34].mxu0 }
0x2b3b   :  { %v6231_v60 = vpop.eup %6230  ;;  %v6998_v63 = vpop.f32.mrb[35].mxu0 }
0x2b3c   :  { %2315 = vrot.lane.b32.xlu1 %v6231_v60, %s6463_s27 }
0x2bae   :  { %v2316_v4 = vpop.permute.xlu1 %2315 }
0x2baf   :  { %v2318_v5 = vmul.f32 %v6229_v49, %v2316_v4 }
0x2bb1   :  { %2320 = vrot.lane.b32.xlu1 %v2318_v5, %s6464_s28  ;;  %v2113_v5 = vadd.f32 %v6914_v38, %v6959_v55 }
0x2c23   :  { %v2321_v6 = vpop.permute.xlu1 %2320 }
0x2c24   :  { %2925 = vst.msk [vmem:[%s7494_s4 + $0x8] sm:$0xff] %vm71_vm1, %v2321_v6  ;;  %5525 = vmatmul.mubr.msk.f32.vlgmr.msra.gmra.mrb[36].mxu0 %vm71_vm1, %v2321_v6 }
0x2c25   :  { %5944 = vmatpush3.bf16.msra.mxu0 %v6923_v53  ;;  %5546 = vmatprep.mubr.msk.f32.mxu0 %vm6461_vm0, %v6462_v1 }
0x2c26   :  { %5945 = vmatprep.subr.bf16.mxu0 %v6460_v0 }
0x2c29   :  { %5947 = vmatpush3.bf16.msra.mxu0 %v6927_v56 }
0x2c2a   :  { %5954 = vmatprep.subr.bf16.mxu0 %v6460_v0 }
0x2cf7   :  { %v2390_v8 = vpop.f32.mrb[36].mxu0 }
0x2cf8   :  { %v2391_v10 = vadd.f32 %v2390_v8, %v2098_v7  ;;  %v5526_v11 = vpop.f32.mrb[37].mxu0 }
0x2cfa   :  { %6232 = vtanh.f32 %v2391_v10  ;;  %v4937_v14 = vmul.f32 -1.442695, %v2391_v10 }
0x2cfc   :  { %6234 = vpow2.f32 %v4937_v14 }
0x2d04   :  { %v6233_v12 = vpop.eup %6232 }
0x2d05   :  { %2403 = vrot.lane.b32.xlu0 %v6233_v12, %s6463_s27 }
0x2d06   :  { %v6235_v58 = vpop.eup %6234 }
0x2d07   :  { %v2397_v13 = vadd.f32 1.0, %v6235_v58 }
0x2d09   :  { %6236 = vrcp.f32 %v2397_v13 }
0x2d13   :  { %v6237_v9 = vpop.eup %6236 }
0x2d14   :  { %v2401_v42 = vmul.f32 %v6237_v9, %v2312_v43 }
0x2d77   :  { %v2404_v59 = vpop.permute.xlu0 %2403 }
0x2d78   :  { %v2406_v16 = vmul.f32 %v6237_v9, %v2404_v59  ;;  %v2941_v59 = vld [vmem:[#allocation2 + $0x60] sm:$0xff] }
0x2d7a   :  { %2408 = vrot.lane.b32.xlu1 %v2406_v16, %s6464_s28  ;;  %v2942_v16 = vld [vmem:[#allocation2 + $0x68] sm:$0xff] }
0x2dec   :  { %v2409_v2 = vpop.permute.xlu1 %2408 }
0x2ded   :  { %v2411_v36 = vadd.f32 %v2409_v2, %v2401_v42  ;;  %v5966_v42 = vpack.c.bf16 %v2942_v16, %v2941_v59 }
0x2def   :  { %6238 = vtanh.f32 %v2411_v36 }
0x2df9   :  { %v6239_v15 = vpop.eup %6238 }
0x2dfa   :  { %2414 = vrot.lane.b32.xlu0 %v6239_v15, %s6463_s27 }
0x2e6c   :  { %v2415_v62 = vpop.permute.xlu0 %2414 }
0x2e6d   :  { %v2417_v17 = vmul.f32 %v6237_v9, %v2415_v62  ;;  %v2943_v62 = vld [vmem:[#allocation2 + $0x70] sm:$0xff] }
0x2e6f   :  { %2419 = vrot.lane.b32.xlu1 %v2417_v17, %s6464_s28  ;;  %v2944_v17 = vld [vmem:[#allocation2 + $0x78] sm:$0xff] }
0x2ee1   :  { %v2420_v41 = vpop.permute.xlu1 %2419 }
0x2ee2   :  { %2926 = vst.msk [vmem:[%s7494_s4 + $0x10] sm:$0xff] %vm71_vm1, %v2420_v41  ;;  %5536 = vmatmul.mubr.msk.f32.vlgmr.msra.gmra.mrb[24].mxu1 %vm71_vm1, %v2420_v41  ;;  %v5970_v41 = vpack.c.bf16 %v2944_v17, %v2943_v62 }
0x2ee3   :  { %5950 = vmatpush3.bf16.msra.mxu1 %v6923_v53  ;;  %5557 = vmatprep.mubr.msk.f32.mxu1 %vm6461_vm0, %v6462_v1 }
0x2ee4   :  { %5951 = vmatprep.subr.bf16.mxu1 %v6460_v0 }
0x2ee7   :  { %5953 = vmatpush3.bf16.msra.mxu1 %v6927_v56 }
0x2ee8   :  { %5960 = vmatprep.subr.bf16.mxu1 %v6460_v0 }
0x2fb5   :  { %v2489_v19 = vpop.f32.mrb[24].mxu1 }
0x2fb6   :  { %v2490_v20 = vadd.f32 %v2489_v19, %v2103_v18  ;;  %v5537_v21 = vpop.f32.mrb[25].mxu1  ;;  %v2932_v19 = vld [vmem:[%s7494_s4] sm:$0xff] }
0x2fb7   :  { %v2934_v21 = vld [vmem:[%s7494_s4 + $0x10] sm:$0xff] }
0x2fb8   :  { %6240 = vtanh.f32 %v2490_v20  ;;  %v4939_v23 = vmul.f32 -1.442695, %v2490_v20  ;;  %v2933_v20 = vld [vmem:[%s7494_s4 + $0x8] sm:$0xff] }
0x2fba   :  { %6242 = vpow2.f32 %v4939_v23 }
0x2fc2   :  { %v6241_v22 = vpop.eup %6240 }
0x2fc3   :  { %2502 = vrot.lane.b32.xlu0 %v6241_v22, %s6463_s27 }
0x2fc4   :  { %v6243_v24 = vpop.eup %6242 }
0x2fc5   :  { %v2496_v25 = vadd.f32 1.0, %v6243_v24 }
0x2fc7   :  { %6244 = vrcp.f32 %v2496_v25  ;;  %v2118_v25 = vadd.f32 %v6959_v55, %v6998_v63 }
0x2fd1   :  { %v6245_v26 = vpop.eup %6244 }
0x2fd2   :  { %v2500_v29 = vmul.f32 %v6245_v26, %v2411_v36 }
0x3035   :  { %v2503_v27 = vpop.permute.xlu0 %2502 }
0x3036   :  { %v2505_v28 = vmul.f32 %v6245_v26, %v2503_v27 }
0x3038   :  { %2507 = vrot.lane.b32.xlu1 %v2505_v28, %s6464_s28 }
0x30aa   :  { %v2508_v30 = vpop.permute.xlu1 %2507 }
0x30ab   :  { %v2510_v39 = vadd.f32 %v2508_v30, %v2500_v29 }
0x30ad   :  { %6246 = vtanh.f32 %v2510_v39 }
0x30b7   :  { %v6247_v31 = vpop.eup %6246 }
0x30b8   :  { %2513 = vrot.lane.b32.xlu0 %v6247_v31, %s6463_s27 }
0x312a   :  { %v2514_v32 = vpop.permute.xlu0 %2513 }
0x312b   :  { %v2516_v34 = vmul.f32 %v6245_v26, %v2514_v32 }
0x312d   :  { %2518 = vrot.lane.b32.xlu1 %v2516_v34, %s6464_s28 }
0x319f   :  { %v2519_v35 = vpop.permute.xlu1 %2518 }
0x31a0   :  { %2927 = vst.msk [vmem:[%s7494_s4 + $0x18] sm:$0xff] %vm71_vm1, %v2519_v35  ;;  %5547 = vmatmul.mubr.msk.f32.vlgmr.msra.gmra.mrb[38].mxu0 %vm71_vm1, %v2519_v35 }
0x31a1   :  { %5956 = vmatpush3.bf16.msra.mxu0 %v6923_v53  ;;  %5568 = vmatprep.mubr.msk.f32.mxu0 %vm6461_vm0, %v6462_v1 }
0x31a2   :  { %5957 = vmatprep.subr.bf16.mxu0 %v6460_v0 }
0x31a5   :  { %5959 = vmatpush3.bf16.msra.mxu0 %v6927_v56 }
0x31a6   :  { %5967 = vmatprep.subr.bf16.mxu0 %v5966_v42 }
0x31a7   :  { %v2935_v22 = vld [vmem:[%s7494_s4 + $0x18] sm:$0xff] }
0x3273   :  { %v2588_v61 = vpop.f32.mrb[38].mxu0 }
0x3274   :  { %v2589_v3 = vadd.f32 %v2588_v61, %v2108_v44  ;;  %v5548_v45 = vpop.f32.mrb[39].mxu0 }
0x3276   :  { %6248 = vtanh.f32 %v2589_v3  ;;  %v4941_v47 = vmul.f32 -1.442695, %v2589_v3 }
0x3278   :  { %6250 = vpow2.f32 %v4941_v47 }
0x3280   :  { %v6249_v46 = vpop.eup %6248 }
0x3281   :  { %2601 = vrot.lane.b32.xlu0 %v6249_v46, %s6463_s27 }
0x3282   :  { %v6251_v33 = vpop.eup %6250 }
0x3283   :  { %v2595_v48 = vadd.f32 1.0, %v6251_v33 }
0x3285   :  { %6252 = vrcp.f32 %v2595_v48 }
0x328f   :  { %v6253_v37 = vpop.eup %6252 }
0x3290   :  { %v2599_v51 = vmul.f32 %v6253_v37, %v2510_v39 }
0x32f3   :  { %v2602_v49 = vpop.permute.xlu0 %2601 }
0x32f4   :  { %v2604_v50 = vmul.f32 %v6253_v37, %v2602_v49  ;;  %v2946_v49 = vld [vmem:[#allocation4 + $0x60] sm:$0xff] }
0x32f6   :  { %2606 = vrot.lane.b32.xlu1 %v2604_v50, %s6464_s28  ;;  %v2947_v50 = vld [vmem:[#allocation4 + $0x68] sm:$0xff] }
0x3368   :  { %v2607_v52 = vpop.permute.xlu1 %2606 }
0x3369   :  { %v2609_v40 = vadd.f32 %v2607_v52, %v2599_v51  ;;  %v7117_v51 = vpack.c.bf16 %v2947_v50, %v2946_v49  ;;  %v2948_v52 = vld [vmem:[#allocation4 + $0x70] sm:$0xff] }
0x336b   :  { %6254 = vtanh.f32 %v2609_v40 }
0x3375   :  { %v6255_v54 = vpop.eup %6254 }
0x3376   :  { %2612 = vrot.lane.b32.xlu0 %v6255_v54, %s6463_s27 }
0x33e8   :  { %v2613_v43 = vpop.permute.xlu0 %2612 }
0x33e9   :  { %v2615_v60 = vmul.f32 %v6253_v37, %v2613_v43 }
0x33eb   :  { %2617 = vrot.lane.b32.xlu1 %v2615_v60, %s6464_s28 }
0x345d   :  { %v2618_v4 = vpop.permute.xlu1 %2617 }
0x345e   :  { %2928 = vst.msk [vmem:[%s7494_s4 + $0x20] sm:$0xff] %vm71_vm1, %v2618_v4  ;;  %5558 = vmatmul.mubr.msk.f32.vlgmr.msra.gmra.mrb[26].mxu1 %vm71_vm1, %v2618_v4 }
0x345f   :  { %5962 = vmatpush3.bf16.msra.mxu1 %v6923_v53  ;;  %5579 = vmatprep.mubr.msk.f32.mxu1 %vm6461_vm0, %v6462_v1 }
0x3460   :  { %5963 = vmatprep.subr.bf16.mxu1 %v6460_v0 }
0x3463   :  { %5965 = vmatpush3.bf16.msra.mxu1 %v6927_v56 }
0x3464   :  { %5974 = vmatprep.subr.bf16.mxu1 %v6460_v0 }
0x3465   :  { %v2936_v23 = vld [vmem:[%s7494_s4 + $0x20] sm:$0xff] }
0x3531   :  { %v2687_v6 = vpop.f32.mrb[26].mxu1 }
0x3532   :  { %v2688_v7 = vadd.f32 %v2687_v6, %v2113_v5  ;;  %v5559_v8 = vpop.f32.mrb[27].mxu1  ;;  %v2123_v6 = vadd.f32 %v6996_v57, %v6959_v55 }
0x3534   :  { %6256 = vtanh.f32 %v2688_v7  ;;  %v4943_v53 = vmul.f32 -1.442695, %v2688_v7 }
0x3536   :  { %6258 = vpow2.f32 %v4943_v53  ;;  %v7153_v53 = vld [vmem:[%s7493_s3 + $0x3] ss:$0 sm:$0xff] }
0x353e   :  { %v6257_v10 = vpop.eup %6256 }
0x353f   :  { %2700 = vrot.lane.b32.xlu0 %v6257_v10, %s6463_s27 }
0x3540   :  { %v6259_v11 = vpop.eup %6258 }
0x3541   :  { %v2694_v12 = vadd.f32 1.0, %v6259_v11 }
0x3543   :  { %6260 = vrcp.f32 %v2694_v12 }
0x354d   :  { %v6261_v14 = vpop.eup %6260 }
0x354e   :  { %v2698_v13 = vmul.f32 %v6261_v14, %v2609_v40  ;;  %v2949_v40 = vld [vmem:[#allocation4 + $0x78] sm:$0xff] }
0x354f   :  { %v7121_v54 = vpack.c.bf16 %v2949_v40, %v2948_v52 }
0x35b1   :  { %v2701_v58 = vpop.permute.xlu0 %2700 }
0x35b2   :  { %v2703_v56 = vmul.f32 %v6261_v14, %v2701_v58 }
0x35b4   :  { %2705 = vrot.lane.b32.xlu1 %v2703_v56, %s6464_s28 }
0x3626   :  { %v2706_v9 = vpop.permute.xlu1 %2705 }
0x3627   :  { %v2708_v38 = vadd.f32 %v2706_v9, %v2698_v13 }
0x3629   :  { %6262 = vtanh.f32 %v2708_v38 }
0x3633   :  { %v6263_v2 = vpop.eup %6262 }
0x3634   :  { %2711 = vrot.lane.b32.xlu0 %v6263_v2, %s6463_s27 }
0x36a6   :  { %v2712_v36 = vpop.permute.xlu0 %2711 }
0x36a7   :  { %v2714_v15 = vmul.f32 %v6261_v14, %v2712_v36 }
0x36a9   :  { %2716 = vrot.lane.b32.xlu1 %v2714_v15, %s6464_s28 }
0x371b   :  { %v2717_v18 = vpop.permute.xlu1 %2716 }
0x371c   :  { %2929 = vst.msk [vmem:[%s7494_s4 + $0x28] sm:$0xff] %vm71_vm1, %v2717_v18  ;;  %5569 = vmatmul.mubr.msk.f32.vlgmr.msra.gmra.mrb[40].mxu0 %vm71_vm1, %v2717_v18 }
0x371d   :  { %5969 = vmatpush3.bf16.msra.mxu0 %v5966_v42  ;;  %5590 = vmatprep.mubr.msk.f32.mxu0 %vm71_vm1, %v2932_v19 }
0x371e   :  { %5971 = vmatprep.subr.bf16.mxu0 %v5970_v41 }
0x3721   :  { %5973 = vmatpush3.bf16.msra.mxu0 %v5970_v41 }
0x3722   :  { %5986 = vmatprep.subr.bf16.mxu0 %v6460_v0 }
0x3723   :  { %v2937_v24 = vld [vmem:[%s7494_s4 + $0x28] sm:$0xff] }
0x3724   :  { %5591 = vmatmul.mubr.msk.f32.vlgmr.msra.gmra.mrb[42].mxu0 %vm71_vm1, %v2933_v20 }
0x3725   :  { %5593 = vmatprep.mubr.msk.f32.mxu0 %vm71_vm1, %v2934_v21  ;;  %5988 = vmatpush3.bf16.msra.mxu0 %v7117_v51 }
0x3726   :  { %5989 = vmatprep.subr.bf16.mxu0 %v6460_v0 }
0x3728   :  { %5594 = vmatmul.mubr.msk.f32.gmra.mrb[44].mxu0 %vm71_vm1, %v2935_v22 }
0x3729   :  { %5596 = vmatprep.mubr.msk.f32.mxu0 %vm71_vm1, %v2936_v23  ;;  %5991 = vmatpush3.bf16.msra.mxu0 %v7121_v54 }
0x372a   :  { %5998 = vmatprep.subr.bf16.mxu0 %v6460_v0 }
0x372c   :  { %5597 = vmatmul.mubr.msk.f32.gmra.mrb[46].mxu0 %vm71_vm1, %v2937_v24 }
0x37ef   :  { %v2786_v26 = vpop.f32.mrb[40].mxu0 }
0x37f0   :  { %v2787_v27 = vadd.f32 %v2786_v26, %v2118_v25  ;;  %v5570_v28 = vpop.f32.mrb[41].mxu0 }
0x37f2   :  { %6264 = vtanh.f32 %v2787_v27  ;;  %v4945_v44 = vmul.f32 -1.442695, %v2787_v27 }
0x37f4   :  { %6266 = vpow2.f32 %v4945_v44 }
0x37f7   :  { %v7101_v29 = vpop.f32.mrb[42].mxu0 }
0x37f8   :  { %v3048_v30 = vpop.f32.mrb[43].mxu0 }
0x37f9   :  { %v3049_v11 = vadd.f32 %v7153_v53, %v3048_v30 }
0x37fb   :  { %v7103_v39 = vpop.f32.mrb[44].mxu0 }
0x37fc   :  { %v6265_v31 = vpop.eup %6264  ;;  %v7105_v32 = vpop.f32.mrb[45].mxu0 }
0x37fd   :  { %2799 = vrot.lane.b32.xlu0 %v6265_v31, %s6463_s27  ;;  %v3054_v31 = vadd.f32 %v7101_v29, %v7153_v53 }
0x37fe   :  { %v6267_v63 = vpop.eup %6266 }
0x37ff   :  { %v7108_v34 = vpop.f32.mrb[46].mxu0  ;;  %v2793_v61 = vadd.f32 1.0, %v6267_v63 }
0x3800   :  { %v7110_v35 = vpop.f32.mrb[47].mxu0 }
0x3801   :  { %6268 = vrcp.f32 %v2793_v61 }
0x380b   :  { %v6269_v3 = vpop.eup %6268 }
0x380c   :  { %v2797_v47 = vmul.f32 %v6269_v3, %v2708_v38 }
0x386f   :  { %v2800_v45 = vpop.permute.xlu0 %2799 }
0x3870   :  { %v2802_v46 = vmul.f32 %v6269_v3, %v2800_v45 }
0x3872   :  { %2804 = vrot.lane.b32.xlu1 %v2802_v46, %s6464_s28 }
0x38e4   :  { %v2805_v33 = vpop.permute.xlu1 %2804 }
0x38e5   :  { %v7113_v48 = vadd.f32 %v2805_v33, %v2797_v47 }
0x38e7   :  { %6270 = vtanh.f32 %v7113_v48 }
0x38f1   :  { %v6271_v37 = vpop.eup %6270 }
0x38f2   :  { %2810 = vrot.lane.b32.xlu0 %v6271_v37, %s6463_s27 }
0x3964   :  { %v2811_v43 = vpop.permute.xlu0 %2810 }
0x3965   :  { %v2813_v60 = vmul.f32 %v6269_v3, %v2811_v43 }
0x3967   :  { %2815 = vrot.lane.b32.xlu1 %v2813_v60, %s6464_s28 }
0x39d9   :  { %v2816_v4 = vpop.permute.xlu1 %2815 }
0x39da   :  { %2930 = vst.msk [vmem:[%s7494_s4 + $0x30] sm:$0xff] %vm71_vm1, %v2816_v4  ;;  %5580 = vmatmul.mubr.msk.f32.vlgmr.msra.gmra.mrb[28].mxu1 %vm71_vm1, %v2816_v4 }
0x39db   :  { %5976 = vmatpush3.bf16.msra.mxu1 %v7117_v51  ;;  %5610 = vmatprep.mubr.msk.f32.mxu1 %vm6461_vm0, %v6462_v1 }
0x39dc   :  { %5977 = vmatprep.subr.bf16.mxu1 %v6460_v0 }
0x39df   :  { %5979 = vmatpush3.bf16.msra.mxu1 %v7121_v54 }
0x39e0   :  { %5980 = vmatprep.subr.bf16.mxu1 %v6460_v0 }
0x39e1   :  { %v2938_v5 = vld [vmem:[%s7494_s4 + $0x30] sm:$0xff] }
0x39e2   :  { %5611 = vmatmul.mubr.f32.vlgmr.msra.gmra.mrb[30].mxu1 %v6462_v1  ;;  %5599 = vmatprep.mubr.msk.f32.mxu0 %vm71_vm1, %v2938_v5 }
0x39e3   :  { %5982 = vmatpush3.bf16.msra.mxu1 %v7117_v51  ;;  %5621 = vmatprep.mubr.msk.f32.mxu1 %vm6461_vm0, %v6462_v1 }
0x39e4   :  { %5983 = vmatprep.subr.bf16.mxu1 %v6460_v0 }
0x39e7   :  { %5985 = vmatpush3.bf16.msra.mxu1 %v7121_v54 }
0x39e8   :  { %5992 = vmatprep.subr.bf16.mxu1 %v6460_v0 }
0x3aad   :  { %v2885_v7 = vpop.f32.mrb[28].mxu1 }
0x3aae   :  { %v2886_v8 = vadd.f32 %v2885_v7, %v2123_v6  ;;  %v5581_v10 = vpop.f32.mrb[29].mxu1 }
0x3ab0   :  { %v4947_v62 = vmul.f32 -1.442695, %v2886_v8 }
0x3ab5   :  { %v3153_v12 = vpop.f32.mrb[30].mxu1 }
0x3ab6   :  { %v3154_v14 = vadd.f32 %v3153_v12, %v3049_v11  ;;  %v5612_v58 = vpop.f32.mrb[31].mxu1 }
0x3ab8   :  { %6272 = vtanh.f32 %v3154_v14  ;;  %v4958_v13 = vmul.f32 -1.442695, %v3154_v14 }
0x3aba   :  { %6274 = vpow2.f32 %v4958_v13 }
0x3ac2   :  { %v6273_v56 = vpop.eup %6272 }
0x3ac3   :  { %3166 = vrot.lane.b32.xlu0 %v6273_v56, %s6463_s27 }
0x3ac4   :  { %v6275_v55 = vpop.eup %6274 }
0x3ac5   :  { %v3160_v57 = vadd.f32 1.0, %v6275_v55 }
0x3ac7   :  { %6276 = vrcp.f32 %v3160_v57 }
0x3ad1   :  { %v6277_v9 = vpop.eup %6276 }
0x3ad2   :  { %v3164_v16 = vmul.f32 0.0, %v6277_v9 }
0x3b35   :  { %v3167_v38 = vpop.permute.xlu0 %3166 }
0x3b36   :  { %v3169_v59 = vmul.f32 %v6277_v9, %v3167_v38 }
0x3b38   :  { %3171 = vrot.lane.b32.xlu1 %v3169_v59, %s6464_s28 }
0x3baa   :  { %v3172_v42 = vpop.permute.xlu1 %3171 }
0x3bab   :  { %v3174_v2 = vadd.f32 %v3172_v42, %v3164_v16 }
0x3bad   :  { %6278 = vtanh.f32 %v3174_v2 }
0x3bae   :  { %6280 = vtanh.f32 %v2886_v8  ;;  %v3059_v8 = vadd.f32 %v7153_v53, %v7105_v32 }
0x3baf   :  { %6282 = vpow2.f32 %v4947_v62 }
0x3bb7   :  { %v6279_v36 = vpop.eup %6278 }
0x3bb8   :  { %3177 = vrot.lane.b32.xlu0 %v6279_v36, %s6463_s27  ;;  %v6281_v15 = vpop.eup %6280 }
0x3bb9   :  { %v6283_v17 = vpop.eup %6282 }
0x3bba   :  { %v2892_v41 = vadd.f32 1.0, %v6283_v17 }
0x3bbc   :  { %2898 = vrot.lane.b32.xlu0 %v6281_v15, %s6463_s27  ;;  %6284 = vrcp.f32 %v2892_v41  ;;  %v3064_v15 = vadd.f32 %v7103_v39, %v7153_v53 }
0x3bc6   :  { %v6285_v20 = vpop.eup %6284 }
0x3bc7   :  { %v2896_v24 = vmul.f32 %v6285_v20, %v7113_v48 }
0x3c2a   :  { %v3178_v18 = vpop.permute.xlu0 %3177 }
0x3c2b   :  { %v3180_v19 = vmul.f32 %v6277_v9, %v3178_v18 }
0x3c2d   :  { %3182 = vrot.lane.b32.xlu1 %v3180_v19, %s6464_s28 }
0x3c2e   :  { %v2899_v21 = vpop.permute.xlu0 %2898 }
0x3c2f   :  { %v2901_v22 = vmul.f32 %v6285_v20, %v2899_v21 }
0x3c31   :  { %2903 = vrot.lane.b32.xlu0 %v2901_v22, %s6464_s28 }
0x3c9f   :  { %v3183_v23 = vpop.permute.xlu1 %3182 }
0x3ca0   :  { %3885 = vst.msk [vmem:[%s7494_s4] sm:$0xff] %vm71_vm1, %v3183_v23  ;;  %5622 = vmatmul.mubr.msk.f32.vlgmr.msra.gmra.mrb[32].mxu1 %vm71_vm1, %v3183_v23 }
0x3ca1   :  { %5994 = vmatpush3.bf16.msra.mxu1 %v7117_v51  ;;  %5643 = vmatprep.mubr.msk.f32.mxu1 %vm6461_vm0, %v6462_v1 }
0x3ca2   :  { %5995 = vmatprep.subr.bf16.mxu1 %v6460_v0 }
0x3ca3   :  { %v2904_v25 = vpop.permute.xlu0 %2903 }
0x3ca4   :  { %v2906_v26 = vadd.f32 %v2904_v25, %v2896_v24 }
0x3ca5   :  { %5997 = vmatpush3.bf16.msra.mxu1 %v7121_v54 }
0x3ca6   :  { %6286 = vtanh.f32 %v2906_v26  ;;  %6004 = vmatprep.subr.bf16.mxu1 %v6460_v0 }
0x3cb0   :  { %v6287_v27 = vpop.eup %6286 }
0x3cb1   :  { %2909 = vrot.lane.b32.xlu0 %v6287_v27, %s6463_s27 }
0x3d23   :  { %v2910_v28 = vpop.permute.xlu0 %2909 }
0x3d24   :  { %v2912_v30 = vmul.f32 %v6285_v20, %v2910_v28 }
0x3d26   :  { %2914 = vrot.lane.b32.xlu0 %v2912_v30, %s6464_s28 }
0x3d73   :  { %v3252_v44 = vpop.f32.mrb[32].mxu1 }
0x3d74   :  { %v3253_v63 = vadd.f32 %v3252_v44, %v3054_v31  ;;  %v5623_v61 = vpop.f32.mrb[33].mxu1  ;;  %v3069_v44 = vadd.f32 %v7153_v53, %v7110_v35 }
0x3d76   :  { %6288 = vtanh.f32 %v3253_v63  ;;  %v4960_v29 = vmul.f32 -1.442695, %v3253_v63 }
0x3d78   :  { %6290 = vpow2.f32 %v4960_v29 }
0x3d80   :  { %v6289_v3 = vpop.eup %6288 }
0x3d81   :  { %3265 = vrot.lane.b32.xlu1 %v6289_v3, %s6463_s27 }
0x3d82   :  { %v6291_v47 = vpop.eup %6290 }
0x3d83   :  { %v3259_v33 = vadd.f32 1.0, %v6291_v47 }
0x3d85   :  { %6292 = vrcp.f32 %v3259_v33 }
0x3d8f   :  { %v6293_v48 = vpop.eup %6292 }
0x3d90   :  { %v3263_v50 = vmul.f32 %v6293_v48, %v3174_v2 }
0x3d98   :  { %v2915_v45 = vpop.permute.xlu0 %2914 }
0x3d99   :  { %2931 = vst.msk [vmem:[%s7494_s4 + $0x38] sm:$0xff] %vm71_vm1, %v2915_v45 }
0x3da0   :  { %v2939_v46 = vld [vmem:[%s7494_s4 + $0x38] sm:$0xff] }
0x3da1   :  { %5600 = vmatmul.mubr.msk.f32.gmra.mrb[48].mxu0 %vm71_vm1, %v2939_v46 }
0x3da2   :  { %5632 = vmatprep.mubr.msk.f32.mxu0 %vm6461_vm0, %v6462_v1 }
0x3df3   :  { %v3266_v37 = vpop.permute.xlu1 %3265 }
0x3df4   :  { %v3268_v49 = vmul.f32 %v6293_v48, %v3266_v37 }
0x3df6   :  { %3270 = vrot.lane.b32.xlu1 %v3268_v49, %s6464_s28 }
0x3e68   :  { %v3271_v52 = vpop.permute.xlu1 %3270 }
0x3e69   :  { %v3273_v40 = vadd.f32 %v3271_v52, %v3263_v50 }
0x3e6b   :  { %6294 = vtanh.f32 %v3273_v40 }
0x3e74   :  { %v7190_v43 = vpop.f32.mrb[48].mxu0 }
0x3e75   :  { %v6295_v60 = vpop.eup %6294  ;;  %v7192_v4 = vpop.f32.mrb[49].mxu0 }
0x3e76   :  { %3276 = vrot.lane.b32.xlu1 %v6295_v60, %s6463_s27 }
0x3ee8   :  { %v3277_v5 = vpop.permute.xlu1 %3276 }
0x3ee9   :  { %v3279_v6 = vmul.f32 %v6293_v48, %v3277_v5 }
0x3eeb   :  { %3281 = vrot.lane.b32.xlu1 %v3279_v6, %s6464_s28  ;;  %v3074_v6 = vadd.f32 %v7108_v34, %v7153_v53 }
0x3f5d   :  { %v3282_v7 = vpop.permute.xlu1 %3281 }
0x3f5e   :  { %3886 = vst.msk [vmem:[%s7494_s4 + $0x8] sm:$0xff] %vm71_vm1, %v3282_v7  ;;  %5633 = vmatmul.mubr.msk.f32.vlgmr.msra.gmra.mrb[50].mxu0 %vm71_vm1, %v3282_v7 }
0x3f5f   :  { %6000 = vmatpush3.bf16.msra.mxu0 %v7117_v51  ;;  %5654 = vmatprep.mubr.msk.f32.mxu0 %vm6461_vm0, %v6462_v1 }
0x3f60   :  { %6001 = vmatprep.subr.bf16.mxu0 %v6460_v0 }
0x3f63   :  { %6003 = vmatpush3.bf16.msra.mxu0 %v7121_v54 }
0x3f64   :  { %6010 = vmatprep.subr.bf16.mxu0 %v6460_v0 }
0x4031   :  { %v3351_v10 = vpop.f32.mrb[50].mxu0 }
0x4032   :  { %v3352_v11 = vadd.f32 %v3351_v10, %v3059_v8  ;;  %v5634_v12 = vpop.f32.mrb[51].mxu0 }
0x4034   :  { %6296 = vtanh.f32 %v3352_v11  ;;  %v4962_v58 = vmul.f32 -1.442695, %v3352_v11 }
0x4036   :  { %6298 = vpow2.f32 %v4962_v58 }
0x403e   :  { %v6297_v14 = vpop.eup %6296 }
0x403f   :  { %3364 = vrot.lane.b32.xlu0 %v6297_v14, %s6463_s27 }
0x4040   :  { %v6299_v56 = vpop.eup %6298 }
0x4041   :  { %v3358_v13 = vadd.f32 1.0, %v6299_v56 }
0x4043   :  { %6300 = vrcp.f32 %v3358_v13 }
0x404d   :  { %v6301_v55 = vpop.eup %6300 }
0x404e   :  { %v3362_v38 = vmul.f32 %v6301_v55, %v3273_v40 }
0x40b1   :  { %v3365_v57 = vpop.permute.xlu0 %3364 }
0x40b2   :  { %v3367_v9 = vmul.f32 %v6301_v55, %v3365_v57  ;;  %v3902_v57 = vld [vmem:[#allocation2 + $0x80] sm:$0xff] }
0x40b4   :  { %3369 = vrot.lane.b32.xlu1 %v3367_v9, %s6464_s28  ;;  %v3903_v9 = vld [vmem:[#allocation2 + $0x88] sm:$0xff] }
0x4126   :  { %v3370_v59 = vpop.permute.xlu1 %3369 }
0x4127   :  { %v3372_v32 = vadd.f32 %v3370_v59, %v3362_v38  ;;  %v6022_v38 = vpack.c.bf16 %v3903_v9, %v3902_v57 }
0x4129   :  { %6302 = vtanh.f32 %v3372_v32 }
0x4133   :  { %v6303_v16 = vpop.eup %6302 }
0x4134   :  { %3375 = vrot.lane.b32.xlu0 %v6303_v16, %s6463_s27 }
0x41a6   :  { %v3376_v42 = vpop.permute.xlu0 %3375 }
0x41a7   :  { %v3378_v2 = vmul.f32 %v6301_v55, %v3376_v42  ;;  %v3904_v42 = vld [vmem:[#allocation2 + $0x90] sm:$0xff] }
0x41a9   :  { %3380 = vrot.lane.b32.xlu1 %v3378_v2, %s6464_s28  ;;  %v3905_v2 = vld [vmem:[#allocation2 + $0x98] sm:$0xff] }
0x421b   :  { %v3381_v36 = vpop.permute.xlu1 %3380 }
0x421c   :  { %3887 = vst.msk [vmem:[%s7494_s4 + $0x10] sm:$0xff] %vm71_vm1, %v3381_v36  ;;  %5644 = vmatmul.mubr.msk.f32.vlgmr.msra.gmra.mrb[34].mxu1 %vm71_vm1, %v3381_v36  ;;  %v6026_v36 = vpack.c.bf16 %v3905_v2, %v3904_v42 }
0x421d   :  { %6006 = vmatpush3.bf16.msra.mxu1 %v7117_v51  ;;  %5665 = vmatprep.mubr.msk.f32.mxu1 %vm6461_vm0, %v6462_v1 }
0x421e   :  { %6007 = vmatprep.subr.bf16.mxu1 %v6460_v0 }
0x4221   :  { %6009 = vmatpush3.bf16.msra.mxu1 %v7121_v54 }
0x4222   :  { %6016 = vmatprep.subr.bf16.mxu1 %v6460_v0 }
0x42ef   :  { %v3450_v62 = vpop.f32.mrb[34].mxu1 }
0x42f0   :  { %v3451_v17 = vadd.f32 %v3450_v62, %v3064_v15  ;;  %v5645_v41 = vpop.f32.mrb[35].mxu1  ;;  %v3893_v62 = vld [vmem:[%s7494_s4] sm:$0xff] }
0x42f1   :  { %v3895_v41 = vld [vmem:[%s7494_s4 + $0x10] sm:$0xff] }
0x42f2   :  { %6304 = vtanh.f32 %v3451_v17  ;;  %v4964_v19 = vmul.f32 -1.442695, %v3451_v17  ;;  %v3894_v17 = vld [vmem:[%s7494_s4 + $0x8] sm:$0xff] }
0x42f4   :  { %6306 = vpow2.f32 %v4964_v19 }
0x42fc   :  { %v6305_v18 = vpop.eup %6304 }
0x42fd   :  { %3463 = vrot.lane.b32.xlu0 %v6305_v18, %s6463_s27 }
0x42fe   :  { %v6307_v20 = vpop.eup %6306 }
0x42ff   :  { %v3457_v21 = vadd.f32 1.0, %v6307_v20 }
0x4301   :  { %6308 = vrcp.f32 %v3457_v21  ;;  %v3079_v21 = vadd.f32 %v7153_v53, %v7192_v4 }
0x430b   :  { %v6309_v22 = vpop.eup %6308 }
0x430c   :  { %v3461_v25 = vmul.f32 %v6309_v22, %v3372_v32 }
0x436f   :  { %v3464_v23 = vpop.permute.xlu0 %3463 }
0x4370   :  { %v3466_v24 = vmul.f32 %v6309_v22, %v3464_v23 }
0x4372   :  { %3468 = vrot.lane.b32.xlu1 %v3466_v24, %s6464_s28 }
0x43e4   :  { %v3469_v26 = vpop.permute.xlu1 %3468 }
0x43e5   :  { %v3471_v39 = vadd.f32 %v3469_v26, %v3461_v25 }
0x43e7   :  { %6310 = vtanh.f32 %v3471_v39 }
0x43f1   :  { %v6311_v27 = vpop.eup %6310 }
0x43f2   :  { %3474 = vrot.lane.b32.xlu0 %v6311_v27, %s6463_s27 }
0x4464   :  { %v3475_v28 = vpop.permute.xlu0 %3474 }
0x4465   :  { %v3477_v30 = vmul.f32 %v6309_v22, %v3475_v28 }
0x4467   :  { %3479 = vrot.lane.b32.xlu1 %v3477_v30, %s6464_s28 }
0x44d9   :  { %v3480_v31 = vpop.permute.xlu1 %3479 }
0x44da   :  { %3888 = vst.msk [vmem:[%s7494_s4 + $0x18] sm:$0xff] %vm71_vm1, %v3480_v31  ;;  %5655 = vmatmul.mubr.msk.f32.vlgmr.msra.gmra.mrb[52].mxu0 %vm71_vm1, %v3480_v31 }
0x44db   :  { %6012 = vmatpush3.bf16.msra.mxu0 %v7117_v51  ;;  %5676 = vmatprep.mubr.msk.f32.mxu0 %vm6461_vm0, %v6462_v1 }
0x44dc   :  { %6013 = vmatprep.subr.bf16.mxu0 %v6460_v0 }
0x44df   :  { %6015 = vmatpush3.bf16.msra.mxu0 %v7121_v54 }
0x44e0   :  { %6023 = vmatprep.subr.bf16.mxu0 %v6022_v38 }
0x44e1   :  { %v3896_v18 = vld [vmem:[%s7494_s4 + $0x18] sm:$0xff] }
0x45ad   :  { %v3549_v63 = vpop.f32.mrb[52].mxu0 }
0x45ae   :  { %v3550_v61 = vadd.f32 %v3549_v63, %v3069_v44  ;;  %v5656_v3 = vpop.f32.mrb[53].mxu0 }
0x45b0   :  { %6312 = vtanh.f32 %v3550_v61  ;;  %v4966_v46 = vmul.f32 -1.442695, %v3550_v61 }
0x45b2   :  { %6314 = vpow2.f32 %v4966_v46 }
0x45ba   :  { %v6313_v45 = vpop.eup %6312 }
0x45bb   :  { %3562 = vrot.lane.b32.xlu0 %v6313_v45, %s6463_s27 }
0x45bc   :  { %v6315_v29 = vpop.eup %6314 }
0x45bd   :  { %v3556_v47 = vadd.f32 1.0, %v6315_v29 }
0x45bf   :  { %6316 = vrcp.f32 %v3556_v47 }
0x45c9   :  { %v6317_v33 = vpop.eup %6316 }
0x45ca   :  { %v3560_v49 = vmul.f32 %v6317_v33, %v3471_v39 }
0x462d   :  { %v3563_v48 = vpop.permute.xlu0 %3562 }
0x462e   :  { %v3565_v37 = vmul.f32 %v6317_v33, %v3563_v48  ;;  %v3907_v48 = vld [vmem:[#allocation4 + $0x80] sm:$0xff] }
0x4630   :  { %3567 = vrot.lane.b32.xlu1 %v3565_v37, %s6464_s28  ;;  %v3908_v37 = vld [vmem:[#allocation4 + $0x88] sm:$0xff] }
0x46a2   :  { %v3568_v50 = vpop.permute.xlu1 %3567 }
0x46a3   :  { %v3570_v35 = vadd.f32 %v3568_v50, %v3560_v49  ;;  %v7311_v49 = vpack.c.bf16 %v3908_v37, %v3907_v48  ;;  %v3909_v50 = vld [vmem:[#allocation4 + $0x90] sm:$0xff] }
0x46a5   :  { %6318 = vtanh.f32 %v3570_v35 }
0x46af   :  { %v6319_v52 = vpop.eup %6318 }
0x46b0   :  { %3573 = vrot.lane.b32.xlu0 %v6319_v52, %s6463_s27 }
0x4722   :  { %v3574_v40 = vpop.permute.xlu0 %3573 }
0x4723   :  { %v3576_v60 = vmul.f32 %v6317_v33, %v3574_v40 }
0x4725   :  { %3578 = vrot.lane.b32.xlu1 %v3576_v60, %s6464_s28 }
0x4797   :  { %v3579_v5 = vpop.permute.xlu1 %3578 }
0x4798   :  { %3889 = vst.msk [vmem:[%s7494_s4 + $0x20] sm:$0xff] %vm71_vm1, %v3579_v5  ;;  %5666 = vmatmul.mubr.msk.f32.vlgmr.msra.gmra.mrb[36].mxu1 %vm71_vm1, %v3579_v5 }
0x4799   :  { %6018 = vmatpush3.bf16.msra.mxu1 %v7117_v51  ;;  %5687 = vmatprep.mubr.msk.f32.mxu1 %vm6461_vm0, %v6462_v1 }
0x479a   :  { %6019 = vmatprep.subr.bf16.mxu1 %v6460_v0 }
0x479d   :  { %6021 = vmatpush3.bf16.msra.mxu1 %v7121_v54 }
0x479e   :  { %6030 = vmatprep.subr.bf16.mxu1 %v6460_v0 }
0x479f   :  { %v3897_v19 = vld [vmem:[%s7494_s4 + $0x20] sm:$0xff] }
0x486b   :  { %v3648_v7 = vpop.f32.mrb[36].mxu1 }
0x486c   :  { %v3649_v8 = vadd.f32 %v3648_v7, %v3074_v6  ;;  %v5667_v10 = vpop.f32.mrb[37].mxu1  ;;  %v3084_v7 = vadd.f32 %v7190_v43, %v7153_v53 }
0x486e   :  { %6320 = vtanh.f32 %v3649_v8  ;;  %v4968_v51 = vmul.f32 -1.442695, %v3649_v8 }
0x4870   :  { %6322 = vpow2.f32 %v4968_v51  ;;  %v7347_v51 = vld [vmem:[%s7493_s3 + $0x4] ss:$0 sm:$0xff] }
0x4878   :  { %v6321_v11 = vpop.eup %6320 }
0x4879   :  { %3661 = vrot.lane.b32.xlu0 %v6321_v11, %s6463_s27 }
0x487a   :  { %v6323_v12 = vpop.eup %6322 }
0x487b   :  { %v3655_v14 = vadd.f32 1.0, %v6323_v12 }
0x487d   :  { %6324 = vrcp.f32 %v3655_v14 }
0x4887   :  { %v6325_v58 = vpop.eup %6324 }
0x4888   :  { %v3659_v13 = vmul.f32 %v6325_v58, %v3570_v35  ;;  %v3910_v35 = vld [vmem:[#allocation4 + $0x98] sm:$0xff] }
0x4889   :  { %v7315_v52 = vpack.c.bf16 %v3910_v35, %v3909_v50 }
0x48eb   :  { %v3662_v56 = vpop.permute.xlu0 %3661 }
0x48ec   :  { %v3664_v54 = vmul.f32 %v6325_v58, %v3662_v56 }
0x48ee   :  { %3666 = vrot.lane.b32.xlu1 %v3664_v54, %s6464_s28 }
0x4960   :  { %v3667_v55 = vpop.permute.xlu1 %3666 }
0x4961   :  { %v3669_v34 = vadd.f32 %v3667_v55, %v3659_v13 }
0x4963   :  { %6326 = vtanh.f32 %v3669_v34 }
0x496d   :  { %v6327_v59 = vpop.eup %6326 }
0x496e   :  { %3672 = vrot.lane.b32.xlu0 %v6327_v59, %s6463_s27 }
0x49e0   :  { %v3673_v32 = vpop.permute.xlu0 %3672 }
0x49e1   :  { %v3675_v16 = vmul.f32 %v6325_v58, %v3673_v32 }
0x49e3   :  { %3677 = vrot.lane.b32.xlu1 %v3675_v16, %s6464_s28 }
0x4a55   :  { %v3678_v15 = vpop.permute.xlu1 %3677 }
0x4a56   :  { %3890 = vst.msk [vmem:[%s7494_s4 + $0x28] sm:$0xff] %vm71_vm1, %v3678_v15  ;;  %5677 = vmatmul.mubr.msk.f32.vlgmr.msra.gmra.mrb[54].mxu0 %vm71_vm1, %v3678_v15 }
0x4a57   :  { %6025 = vmatpush3.bf16.msra.mxu0 %v6022_v38  ;;  %5698 = vmatprep.mubr.msk.f32.mxu0 %vm71_vm1, %v3893_v62 }
0x4a58   :  { %6027 = vmatprep.subr.bf16.mxu0 %v6026_v36 }
0x4a5b   :  { %6029 = vmatpush3.bf16.msra.mxu0 %v6026_v36 }
0x4a5c   :  { %6042 = vmatprep.subr.bf16.mxu0 %v6460_v0 }
0x4a5d   :  { %v3898_v20 = vld [vmem:[%s7494_s4 + $0x28] sm:$0xff] }
0x4a5e   :  { %5699 = vmatmul.mubr.msk.f32.vlgmr.msra.gmra.mrb[56].mxu0 %vm71_vm1, %v3894_v17 }
0x4a5f   :  { %5701 = vmatprep.mubr.msk.f32.mxu0 %vm71_vm1, %v3895_v41  ;;  %6044 = vmatpush3.bf16.msra.mxu0 %v7311_v49 }
0x4a60   :  { %6045 = vmatprep.subr.bf16.mxu0 %v6460_v0 }
0x4a62   :  { %5702 = vmatmul.mubr.msk.f32.gmra.mrb[58].mxu0 %vm71_vm1, %v3896_v18 }
0x4a63   :  { %5704 = vmatprep.mubr.msk.f32.mxu0 %vm71_vm1, %v3897_v19  ;;  %6047 = vmatpush3.bf16.msra.mxu0 %v7315_v52 }
0x4a64   :  { %6054 = vmatprep.subr.bf16.mxu0 %v6460_v0 }
0x4a66   :  { %5705 = vmatmul.mubr.msk.f32.gmra.mrb[60].mxu0 %vm71_vm1, %v3898_v20 }
0x4b29   :  { %v3747_v22 = vpop.f32.mrb[54].mxu0 }
0x4b2a   :  { %v3748_v23 = vadd.f32 %v3747_v22, %v3079_v21  ;;  %v5678_v24 = vpop.f32.mrb[55].mxu0 }
0x4b2c   :  { %6328 = vtanh.f32 %v3748_v23  ;;  %v4970_v44 = vmul.f32 -1.442695, %v3748_v23 }
0x4b2e   :  { %6330 = vpow2.f32 %v4970_v44 }
0x4b31   :  { %v7295_v25 = vpop.f32.mrb[56].mxu0 }
0x4b32   :  { %v4009_v26 = vpop.f32.mrb[57].mxu0 }
0x4b33   :  { %v4010_v12 = vadd.f32 %v7347_v51, %v4009_v26 }
0x4b35   :  { %v7297_v39 = vpop.f32.mrb[58].mxu0 }
0x4b36   :  { %v6329_v27 = vpop.eup %6328  ;;  %v7299_v28 = vpop.f32.mrb[59].mxu0 }
0x4b37   :  { %3760 = vrot.lane.b32.xlu0 %v6329_v27, %s6463_s27  ;;  %v4015_v27 = vadd.f32 %v7295_v25, %v7347_v51 }
0x4b38   :  { %v6331_v4 = vpop.eup %6330 }
0x4b39   :  { %v7302_v30 = vpop.f32.mrb[60].mxu0  ;;  %v3754_v63 = vadd.f32 1.0, %v6331_v4 }
0x4b3a   :  { %v7304_v31 = vpop.f32.mrb[61].mxu0 }
0x4b3b   :  { %6332 = vrcp.f32 %v3754_v63 }
0x4b45   :  { %v6333_v61 = vpop.eup %6332 }
0x4b46   :  { %v3758_v46 = vmul.f32 %v6333_v61, %v3669_v34 }
0x4ba9   :  { %v3761_v3 = vpop.permute.xlu0 %3760 }
0x4baa   :  { %v3763_v45 = vmul.f32 %v6333_v61, %v3761_v3 }
0x4bac   :  { %3765 = vrot.lane.b32.xlu1 %v3763_v45, %s6464_s28 }
0x4c1e   :  { %v3766_v29 = vpop.permute.xlu1 %3765 }
0x4c1f   :  { %v7307_v47 = vadd.f32 %v3766_v29, %v3758_v46 }
0x4c21   :  { %6334 = vtanh.f32 %v7307_v47 }
0x4c2b   :  { %v6335_v33 = vpop.eup %6334 }
0x4c2c   :  { %3771 = vrot.lane.b32.xlu0 %v6335_v33, %s6463_s27 }
0x4c9e   :  { %v3772_v40 = vpop.permute.xlu0 %3771 }
0x4c9f   :  { %v3774_v60 = vmul.f32 %v6333_v61, %v3772_v40 }
0x4ca1   :  { %3776 = vrot.lane.b32.xlu1 %v3774_v60, %s6464_s28 }
0x4d13   :  { %v3777_v5 = vpop.permute.xlu1 %3776 }
0x4d14   :  { %3891 = vst.msk [vmem:[%s7494_s4 + $0x30] sm:$0xff] %vm71_vm1, %v3777_v5  ;;  %5688 = vmatmul.mubr.msk.f32.vlgmr.msra.gmra.mrb[38].mxu1 %vm71_vm1, %v3777_v5 }
0x4d15   :  { %6032 = vmatpush3.bf16.msra.mxu1 %v7311_v49  ;;  %5718 = vmatprep.mubr.msk.f32.mxu1 %vm6461_vm0, %v6462_v1 }
0x4d16   :  { %6033 = vmatprep.subr.bf16.mxu1 %v6460_v0 }
0x4d19   :  { %6035 = vmatpush3.bf16.msra.mxu1 %v7315_v52 }
0x4d1a   :  { %6036 = vmatprep.subr.bf16.mxu1 %v6460_v0 }
0x4d1b   :  { %v3899_v6 = vld [vmem:[%s7494_s4 + $0x30] sm:$0xff] }
0x4d1c   :  { %5719 = vmatmul.mubr.f32.vlgmr.msra.gmra.mrb[40].mxu1 %v6462_v1  ;;  %5707 = vmatprep.mubr.msk.f32.mxu0 %vm71_vm1, %v3899_v6 }
0x4d1d   :  { %6038 = vmatpush3.bf16.msra.mxu1 %v7311_v49  ;;  %5729 = vmatprep.mubr.msk.f32.mxu1 %vm6461_vm0, %v6462_v1 }
0x4d1e   :  { %6039 = vmatprep.subr.bf16.mxu1 %v6460_v0 }
0x4d21   :  { %6041 = vmatpush3.bf16.msra.mxu1 %v7315_v52 }
0x4d22   :  { %6048 = vmatprep.subr.bf16.mxu1 %v6460_v0 }
0x4de7   :  { %v3846_v8 = vpop.f32.mrb[38].mxu1 }
0x4de8   :  { %v3847_v10 = vadd.f32 %v3846_v8, %v3084_v7  ;;  %v5689_v11 = vpop.f32.mrb[39].mxu1 }
0x4dea   :  { %v4972_v42 = vmul.f32 -1.442695, %v3847_v10 }
0x4def   :  { %v4114_v14 = vpop.f32.mrb[40].mxu1 }
0x4df0   :  { %v4115_v58 = vadd.f32 %v4114_v14, %v4010_v12  ;;  %v5720_v56 = vpop.f32.mrb[41].mxu1 }
0x4df2   :  { %6336 = vtanh.f32 %v4115_v58  ;;  %v4983_v13 = vmul.f32 -1.442695, %v4115_v58 }
0x4df4   :  { %6338 = vpow2.f32 %v4983_v13 }
0x4dfc   :  { %v6337_v54 = vpop.eup %6336 }
0x4dfd   :  { %4127 = vrot.lane.b32.xlu0 %v6337_v54, %s6463_s27 }
0x4dfe   :  { %v6339_v53 = vpop.eup %6338 }
0x4dff   :  { %v4121_v43 = vadd.f32 1.0, %v6339_v53 }
0x4e01   :  { %6340 = vrcp.f32 %v4121_v43 }
0x4e0b   :  { %v6341_v55 = vpop.eup %6340 }
0x4e0c   :  { %v4125_v9 = vmul.f32 0.0, %v6341_v55 }
0x4e6f   :  { %v4128_v34 = vpop.permute.xlu0 %4127 }
0x4e70   :  { %v4130_v57 = vmul.f32 %v6341_v55, %v4128_v34 }
0x4e72   :  { %4132 = vrot.lane.b32.xlu1 %v4130_v57, %s6464_s28 }
0x4ee4   :  { %v4133_v38 = vpop.permute.xlu1 %4132 }
0x4ee5   :  { %v4135_v59 = vadd.f32 %v4133_v38, %v4125_v9 }
0x4ee7   :  { %6342 = vtanh.f32 %v4135_v59 }
0x4ee8   :  { %6344 = vtanh.f32 %v3847_v10  ;;  %v4020_v10 = vadd.f32 %v7347_v51, %v7299_v28 }
0x4ee9   :  { %6346 = vpow2.f32 %v4972_v42 }
0x4ef1   :  { %v6343_v32 = vpop.eup %6342 }
0x4ef2   :  { %4138 = vrot.lane.b32.xlu0 %v6343_v32, %s6463_s27  ;;  %v6345_v16 = vpop.eup %6344 }
0x4ef3   :  { %v6347_v2 = vpop.eup %6346 }
0x4ef4   :  { %v3853_v36 = vadd.f32 1.0, %v6347_v2 }
0x4ef6   :  { %3859 = vrot.lane.b32.xlu0 %v6345_v16, %s6463_s27  ;;  %6348 = vrcp.f32 %v3853_v36  ;;  %v4025_v16 = vadd.f32 %v7297_v39, %v7347_v51 }
0x4f00   :  { %v6349_v17 = vpop.eup %6348 }
0x4f01   :  { %v3857_v20 = vmul.f32 %v6349_v17, %v7307_v47 }
0x4f64   :  { %v4139_v15 = vpop.permute.xlu0 %4138 }
0x4f65   :  { %v4141_v62 = vmul.f32 %v6341_v55, %v4139_v15 }
0x4f67   :  { %4143 = vrot.lane.b32.xlu1 %v4141_v62, %s6464_s28 }
0x4f68   :  { %v3860_v41 = vpop.permute.xlu0 %3859 }
0x4f69   :  { %v3862_v18 = vmul.f32 %v6349_v17, %v3860_v41 }
0x4f6b   :  { %3864 = vrot.lane.b32.xlu0 %v3862_v18, %s6464_s28 }
0x4fd9   :  { %v4144_v19 = vpop.permute.xlu1 %4143 }
0x4fda   :  { %4846 = vst.msk [vmem:[%s7494_s4] sm:$0xff] %vm71_vm1, %v4144_v19  ;;  %5730 = vmatmul.mubr.msk.f32.vlgmr.msra.gmra.mrb[42].mxu1 %vm71_vm1, %v4144_v19 }
0x4fdb   :  { %6050 = vmatpush3.bf16.msra.mxu1 %v7311_v49  ;;  %5751 = vmatprep.mubr.msk.f32.mxu1 %vm6461_vm0, %v6462_v1 }
0x4fdc   :  { %6051 = vmatprep.subr.bf16.mxu1 %v6460_v0 }
0x4fdd   :  { %v3865_v21 = vpop.permute.xlu0 %3864 }
0x4fde   :  { %v3867_v22 = vadd.f32 %v3865_v21, %v3857_v20 }
0x4fdf   :  { %6053 = vmatpush3.bf16.msra.mxu1 %v7315_v52 }
0x4fe0   :  { %6350 = vtanh.f32 %v3867_v22  ;;  %6060 = vmatprep.subr.bf16.mxu1 %v6460_v0 }
0x4fea   :  { %v6351_v23 = vpop.eup %6350 }
0x4feb   :  { %3870 = vrot.lane.b32.xlu0 %v6351_v23, %s6463_s27 }
0x505d   :  { %v3871_v24 = vpop.permute.xlu0 %3870 }
0x505e   :  { %v3873_v26 = vmul.f32 %v6349_v17, %v3871_v24 }
0x5060   :  { %3875 = vrot.lane.b32.xlu0 %v3873_v26, %s6464_s28 }
0x50ad   :  { %v4213_v44 = vpop.f32.mrb[42].mxu1 }
0x50ae   :  { %v4214_v4 = vadd.f32 %v4213_v44, %v4015_v27  ;;  %v5731_v63 = vpop.f32.mrb[43].mxu1  ;;  %v4030_v44 = vadd.f32 %v7347_v51, %v7304_v31 }
0x50b0   :  { %6352 = vtanh.f32 %v4214_v4  ;;  %v4985_v25 = vmul.f32 -1.442695, %v4214_v4 }
0x50b2   :  { %6354 = vpow2.f32 %v4985_v25 }
0x50ba   :  { %v6353_v61 = vpop.eup %6352 }
0x50bb   :  { %4226 = vrot.lane.b32.xlu1 %v6353_v61, %s6463_s27 }
0x50bc   :  { %v6355_v46 = vpop.eup %6354 }
0x50bd   :  { %v4220_v29 = vadd.f32 1.0, %v6355_v46 }
0x50bf   :  { %6356 = vrcp.f32 %v4220_v29 }
0x50c9   :  { %v6357_v47 = vpop.eup %6356 }
0x50ca   :  { %v4224_v37 = vmul.f32 %v6357_v47, %v4135_v59 }
0x50d2   :  { %v3876_v3 = vpop.permute.xlu0 %3875 }
0x50d3   :  { %3892 = vst.msk [vmem:[%s7494_s4 + $0x38] sm:$0xff] %vm71_vm1, %v3876_v3 }
0x50da   :  { %v3900_v45 = vld [vmem:[%s7494_s4 + $0x38] sm:$0xff] }
0x50db   :  { %5708 = vmatmul.mubr.msk.f32.gmra.mrb[62].mxu0 %vm71_vm1, %v3900_v45 }
0x50dc   :  { %5740 = vmatprep.mubr.msk.f32.mxu0 %vm6461_vm0, %v6462_v1 }
0x512d   :  { %v4227_v33 = vpop.permute.xlu1 %4226 }
0x512e   :  { %v4229_v48 = vmul.f32 %v6357_v47, %v4227_v33 }
0x5130   :  { %4231 = vrot.lane.b32.xlu1 %v4229_v48, %s6464_s28 }
0x51a2   :  { %v4232_v50 = vpop.permute.xlu1 %4231 }
0x51a3   :  { %v4234_v35 = vadd.f32 %v4232_v50, %v4224_v37 }
0x51a5   :  { %6358 = vtanh.f32 %v4234_v35 }
0x51ae   :  { %v7384_v40 = vpop.f32.mrb[62].mxu0 }
0x51af   :  { %v6359_v60 = vpop.eup %6358  ;;  %v7386_v5 = vpop.f32.mrb[63].mxu0 }
0x51b0   :  { %4237 = vrot.lane.b32.xlu1 %v6359_v60, %s6463_s27 }
0x5222   :  { %v4238_v6 = vpop.permute.xlu1 %4237 }
0x5223   :  { %v4240_v7 = vmul.f32 %v6357_v47, %v4238_v6 }
0x5225   :  { %4242 = vrot.lane.b32.xlu1 %v4240_v7, %s6464_s28  ;;  %v4035_v7 = vadd.f32 %v7302_v30, %v7347_v51 }
0x5297   :  { %v4243_v8 = vpop.permute.xlu1 %4242 }
0x5298   :  { %4847 = vst.msk [vmem:[%s7494_s4 + $0x8] sm:$0xff] %vm71_vm1, %v4243_v8  ;;  %5741 = vmatmul.mubr.msk.f32.vlgmr.msra.gmra.mrb[64].mxu0 %vm71_vm1, %v4243_v8 }
0x5299   :  { %6056 = vmatpush3.bf16.msra.mxu0 %v7311_v49  ;;  %5762 = vmatprep.mubr.msk.f32.mxu0 %vm6461_vm0, %v6462_v1 }
0x529a   :  { %6057 = vmatprep.subr.bf16.mxu0 %v6460_v0 }
0x529d   :  { %6059 = vmatpush3.bf16.msra.mxu0 %v7315_v52 }
0x529e   :  { %6066 = vmatprep.subr.bf16.mxu0 %v6460_v0 }
0x536b   :  { %v4312_v11 = vpop.f32.mrb[64].mxu0 }
0x536c   :  { %v4313_v12 = vadd.f32 %v4312_v11, %v4020_v10  ;;  %v5742_v14 = vpop.f32.mrb[65].mxu0 }
0x536e   :  { %6360 = vtanh.f32 %v4313_v12  ;;  %v4987_v56 = vmul.f32 -1.442695, %v4313_v12 }
0x5370   :  { %6362 = vpow2.f32 %v4987_v56 }
0x5378   :  { %v6361_v58 = vpop.eup %6360 }
0x5379   :  { %4325 = vrot.lane.b32.xlu0 %v6361_v58, %s6463_s27 }
0x537a   :  { %v6363_v54 = vpop.eup %6362 }
0x537b   :  { %v4319_v13 = vadd.f32 1.0, %v6363_v54 }
0x537d   :  { %6364 = vrcp.f32 %v4319_v13 }
0x5387   :  { %v6365_v53 = vpop.eup %6364 }
0x5388   :  { %v4323_v34 = vmul.f32 %v6365_v53, %v4234_v35 }
0x53eb   :  { %v4326_v43 = vpop.permute.xlu0 %4325 }
0x53ec   :  { %v4328_v55 = vmul.f32 %v6365_v53, %v4326_v43 }
0x53ee   :  { %4330 = vrot.lane.b32.xlu1 %v4328_v55, %s6464_s28 }
0x5460   :  { %v4331_v57 = vpop.permute.xlu1 %4330 }
0x5461   :  { %v4333_v28 = vadd.f32 %v4331_v57, %v4323_v34  ;;  %v4040_v34 = vadd.f32 %v7347_v51, %v7386_v5 }
0x5463   :  { %6366 = vtanh.f32 %v4333_v28 }
0x546d   :  { %v6367_v9 = vpop.eup %6366 }
0x546e   :  { %4336 = vrot.lane.b32.xlu0 %v6367_v9, %s6463_s27 }
0x54e0   :  { %v4337_v38 = vpop.permute.xlu0 %4336 }
0x54e1   :  { %v4339_v59 = vmul.f32 %v6365_v53, %v4337_v38 }
0x54e3   :  { %4341 = vrot.lane.b32.xlu1 %v4339_v59, %s6464_s28 }
0x5555   :  { %v4342_v32 = vpop.permute.xlu1 %4341 }
0x5556   :  { %4848 = vst.msk [vmem:[%s7494_s4 + $0x10] sm:$0xff] %vm71_vm1, %v4342_v32  ;;  %5752 = vmatmul.mubr.msk.f32.vlgmr.msra.gmra.mrb[44].mxu1 %vm71_vm1, %v4342_v32 }
0x5557   :  { %6062 = vmatpush3.bf16.msra.mxu1 %v7311_v49  ;;  %5773 = vmatprep.mubr.msk.f32.mxu1 %vm6461_vm0, %v6462_v1 }
0x5558   :  { %6063 = vmatprep.subr.bf16.mxu1 %v6460_v0 }
0x555b   :  { %6065 = vmatpush3.bf16.msra.mxu1 %v7315_v52 }
0x555c   :  { %6072 = vmatprep.subr.bf16.mxu1 %v6460_v0 }
0x5629   :  { %v4411_v42 = vpop.f32.mrb[44].mxu1 }
0x562a   :  { %v4412_v2 = vadd.f32 %v4411_v42, %v4025_v16  ;;  %v5753_v36 = vpop.f32.mrb[45].mxu1 }
0x562c   :  { %6368 = vtanh.f32 %v4412_v2  ;;  %v4989_v62 = vmul.f32 -1.442695, %v4412_v2 }
0x562e   :  { %6370 = vpow2.f32 %v4989_v62 }
0x5636   :  { %v6369_v15 = vpop.eup %6368 }
0x5637   :  { %4424 = vrot.lane.b32.xlu0 %v6369_v15, %s6463_s27 }
0x5638   :  { %v6371_v17 = vpop.eup %6370 }
0x5639   :  { %v4418_v41 = vadd.f32 1.0, %v6371_v17 }
0x563b   :  { %6372 = vrcp.f32 %v4418_v41 }
0x5645   :  { %v6373_v18 = vpop.eup %6372 }
0x5646   :  { %v4422_v21 = vmul.f32 %v6373_v18, %v4333_v28 }
0x56a9   :  { %v4425_v19 = vpop.permute.xlu0 %4424 }
0x56aa   :  { %v4427_v20 = vmul.f32 %v6373_v18, %v4425_v19 }
0x56ac   :  { %4429 = vrot.lane.b32.xlu1 %v4427_v20, %s6464_s28  ;;  %v4045_v20 = vadd.f32 %v7384_v40, %v7347_v51 }
0x571e   :  { %v4430_v22 = vpop.permute.xlu1 %4429 }
0x571f   :  { %v4432_v39 = vadd.f32 %v4430_v22, %v4422_v21 }
0x5721   :  { %6374 = vtanh.f32 %v4432_v39 }
0x572b   :  { %v6375_v23 = vpop.eup %6374 }
0x572c   :  { %4435 = vrot.lane.b32.xlu0 %v6375_v23, %s6463_s27 }
0x579e   :  { %v4436_v24 = vpop.permute.xlu0 %4435 }
0x579f   :  { %v4438_v26 = vmul.f32 %v6373_v18, %v4436_v24 }
0x57a1   :  { %4440 = vrot.lane.b32.xlu1 %v4438_v26, %s6464_s28 }
0x5813   :  { %v4441_v27 = vpop.permute.xlu1 %4440 }
0x5814   :  { %4849 = vst.msk [vmem:[%s7494_s4 + $0x18] sm:$0xff] %vm71_vm1, %v4441_v27  ;;  %5763 = vmatmul.mubr.msk.f32.vlgmr.msra.gmra.mrb[66].mxu0 %vm71_vm1, %v4441_v27 }
0x5815   :  { %6068 = vmatpush3.bf16.msra.mxu0 %v7311_v49  ;;  %5784 = vmatprep.mubr.msk.f32.mxu0 %vm6461_vm0, %v6462_v1 }
0x5816   :  { %6069 = vmatprep.subr.bf16.mxu0 %v6460_v0 }
0x5819   :  { %6071 = vmatpush3.bf16.msra.mxu0 %v7315_v52 }
0x58e7   :  { %v4510_v4 = vpop.f32.mrb[66].mxu0 }
0x58e8   :  { %v4511_v63 = vadd.f32 %v4510_v4, %v4030_v44  ;;  %v5764_v61 = vpop.f32.mrb[67].mxu0 }
0x58ea   :  { %6376 = vtanh.f32 %v4511_v63  ;;  %v4991_v45 = vmul.f32 -1.442695, %v4511_v63 }
0x58ec   :  { %6378 = vpow2.f32 %v4991_v45 }
0x58f4   :  { %v6377_v3 = vpop.eup %6376 }
0x58f5   :  { %4523 = vrot.lane.b32.xlu0 %v6377_v3, %s6463_s27 }
0x58f6   :  { %v6379_v25 = vpop.eup %6378 }
0x58f7   :  { %v4517_v46 = vadd.f32 1.0, %v6379_v25 }
0x58f9   :  { %6380 = vrcp.f32 %v4517_v46 }
0x5903   :  { %v6381_v29 = vpop.eup %6380 }
0x5904   :  { %v4521_v48 = vmul.f32 %v6381_v29, %v4432_v39 }
0x5967   :  { %v4524_v47 = vpop.permute.xlu0 %4523 }
0x5968   :  { %v4526_v33 = vmul.f32 %v6381_v29, %v4524_v47 }
0x596a   :  { %4528 = vrot.lane.b32.xlu1 %v4526_v33, %s6464_s28 }
0x59dc   :  { %v4529_v37 = vpop.permute.xlu1 %4528 }
0x59dd   :  { %v4531_v31 = vadd.f32 %v4529_v37, %v4521_v48 }
0x59df   :  { %6382 = vtanh.f32 %v4531_v31 }
0x59e9   :  { %v6383_v50 = vpop.eup %6382 }
0x59ea   :  { %4534 = vrot.lane.b32.xlu0 %v6383_v50, %s6463_s27 }
0x5a5c   :  { %v4535_v35 = vpop.permute.xlu0 %4534 }
0x5a5d   :  { %v4537_v60 = vmul.f32 %v6381_v29, %v4535_v35 }
0x5a5f   :  { %4539 = vrot.lane.b32.xlu1 %v4537_v60, %s6464_s28 }
0x5ad1   :  { %v4540_v6 = vpop.permute.xlu1 %4539 }
0x5ad2   :  { %4850 = vst.msk [vmem:[%s7494_s4 + $0x20] sm:$0xff] %vm71_vm1, %v4540_v6  ;;  %5774 = vmatmul.mubr.msk.f32.vlgmr.msra.gmra.mrb[46].mxu1 %vm71_vm1, %v4540_v6 }
0x5ad3   :  { %6074 = vmatpush3.bf16.msra.mxu1 %v7311_v49  ;;  %5795 = vmatprep.mubr.msk.f32.mxu1 %vm6461_vm0, %v6462_v1 }
0x5ad4   :  { %6075 = vmatprep.subr.bf16.mxu1 %v6460_v0 }
0x5ad7   :  { %6077 = vmatpush3.bf16.msra.mxu1 %v7315_v52 }
0x5ba5   :  { %v4609_v8 = vpop.f32.mrb[46].mxu1 }
0x5ba6   :  { %v4610_v10 = vadd.f32 %v4609_v8, %v4035_v7  ;;  %v5775_v11 = vpop.f32.mrb[47].mxu1 }
0x5ba8   :  { %6384 = vtanh.f32 %v4610_v10  ;;  %v4993_v14 = vmul.f32 -1.442695, %v4610_v10 }
0x5baa   :  { %6386 = vpow2.f32 %v4993_v14 }
0x5bb2   :  { %v6385_v12 = vpop.eup %6384 }
0x5bb3   :  { %4622 = vrot.lane.b32.xlu0 %v6385_v12, %s6463_s27 }
0x5bb4   :  { %v6387_v49 = vpop.eup %6386 }
0x5bb5   :  { %v4616_v58 = vadd.f32 1.0, %v6387_v49 }
0x5bb7   :  { %6388 = vrcp.f32 %v4616_v58 }
0x5bc1   :  { %v6389_v1 = vpop.eup %6388 }
0x5bc2   :  { %v4620_v52 = vmul.f32 %v6389_v1, %v4531_v31 }
0x5c25   :  { %v4623_v56 = vpop.permute.xlu0 %4622 }
0x5c26   :  { %v4625_v0 = vmul.f32 %v6389_v1, %v4623_v56 }
0x5c28   :  { %4627 = vrot.lane.b32.xlu1 %v4625_v0, %s6464_s28 }
0x5c9a   :  { %v4628_v54 = vpop.permute.xlu1 %4627 }
0x5c9b   :  { %v4630_v30 = vadd.f32 %v4628_v54, %v4620_v52 }
0x5c9d   :  { %6390 = vtanh.f32 %v4630_v30 }
0x5ca7   :  { %v6391_v13 = vpop.eup %6390 }
0x5ca8   :  { %4633 = vrot.lane.b32.xlu0 %v6391_v13, %s6463_s27 }
0x5d1a   :  { %v4634_v53 = vpop.permute.xlu0 %4633 }
0x5d1b   :  { %v4636_v43 = vmul.f32 %v6389_v1, %v4634_v53 }
0x5d1d   :  { %4638 = vrot.lane.b32.xlu1 %v4636_v43, %s6464_s28 }
0x5d8f   :  { %v4639_v55 = vpop.permute.xlu1 %4638 }
0x5d90   :  { %4851 = vst.msk [vmem:[%s7494_s4 + $0x28] sm:$0xff] %vm71_vm1, %v4639_v55  ;;  %5785 = vmatmul.mubr.msk.f32.vlgmr.msra.gmra.mrb[68].mxu0 %vm71_vm1, %v4639_v55 }
0x5e63   :  { %v4708_v57 = vpop.f32.mrb[68].mxu0 }
0x5e64   :  { %v4709_v28 = vadd.f32 %v4708_v57, %v4040_v34  ;;  %v5786_v9 = vpop.f32.mrb[69].mxu0 }
0x5e66   :  { %6392 = vtanh.f32 %v4709_v28  ;;  %v4995_v59 = vmul.f32 -1.442695, %v4709_v28 }
0x5e68   :  { %6394 = vpow2.f32 %v4995_v59 }
0x5e70   :  { %v6393_v38 = vpop.eup %6392 }
0x5e71   :  { %4721 = vrot.lane.b32.xlu0 %v6393_v38, %s6463_s27 }
0x5e72   :  { %v6395_v32 = vpop.eup %6394 }
0x5e73   :  { %v4715_v16 = vadd.f32 1.0, %v6395_v32 }
0x5e75   :  { %6396 = vrcp.f32 %v4715_v16 }
0x5e7f   :  { %v6397_v42 = vpop.eup %6396 }
0x5e80   :  { %v4719_v15 = vmul.f32 %v6397_v42, %v4630_v30 }
0x5ee3   :  { %v4722_v2 = vpop.permute.xlu0 %4721 }
0x5ee4   :  { %v4724_v36 = vmul.f32 %v6397_v42, %v4722_v2 }
0x5ee6   :  { %4726 = vrot.lane.b32.xlu1 %v4724_v36, %s6464_s28 }
0x5f58   :  { %v4727_v62 = vpop.permute.xlu1 %4726 }
0x5f59   :  { %v4729_v5 = vadd.f32 %v4727_v62, %v4719_v15 }
0x5f5b   :  { %6398 = vtanh.f32 %v4729_v5 }
0x5f65   :  { %v6399_v17 = vpop.eup %6398 }
0x5f66   :  { %4732 = vrot.lane.b32.xlu0 %v6399_v17, %s6463_s27 }
0x5fd8   :  { %v4733_v41 = vpop.permute.xlu0 %4732 }
0x5fd9   :  { %v4735_v18 = vmul.f32 %v6397_v42, %v4733_v41 }
0x5fdb   :  { %4737 = vrot.lane.b32.xlu1 %v4735_v18, %s6464_s28 }
0x604d   :  { %v4738_v19 = vpop.permute.xlu1 %4737 }
0x604e   :  { %4852 = vst.msk [vmem:[%s7494_s4 + $0x30] sm:$0xff] %vm71_vm1, %v4738_v19  ;;  %5796 = vmatmul.mubr.msk.f32.vlgmr.msra.gmra.mrb[48].mxu1 %vm71_vm1, %v4738_v19 }
0x6121   :  { %v4807_v21 = vpop.f32.mrb[48].mxu1 }
0x6122   :  { %v4808_v22 = vadd.f32 %v4807_v21, %v4045_v20  ;;  %v5797_v39 = vpop.f32.mrb[49].mxu1 }
0x6124   :  { %6400 = vtanh.f32 %v4808_v22  ;;  %v4997_v24 = vmul.f32 -1.442695, %v4808_v22 }
0x6126   :  { %6402 = vpow2.f32 %v4997_v24 }
0x612e   :  { %v6401_v23 = vpop.eup %6400 }
0x612f   :  { %4820 = vrot.lane.b32.xlu0 %v6401_v23, %s6463_s27 }
0x6130   :  { %v6403_v26 = vpop.eup %6402 }
0x6131   :  { %v4814_v27 = vadd.f32 1.0, %v6403_v26 }
0x6133   :  { %6404 = vrcp.f32 %v4814_v27 }
0x613d   :  { %v6405_v44 = vpop.eup %6404 }
0x613e   :  { %v4818_v61 = vmul.f32 %v6405_v44, %v4729_v5 }
0x61a1   :  { %v4821_v4 = vpop.permute.xlu0 %4820 }
0x61a2   :  { %v4823_v63 = vmul.f32 %v6405_v44, %v4821_v4 }
0x61a4   :  { %4825 = vrot.lane.b32.xlu1 %v4823_v63, %s6464_s28 }
0x6216   :  { %v4826_v3 = vpop.permute.xlu1 %4825 }
0x6217   :  { %v4828_v51 = vadd.f32 %v4826_v3, %v4818_v61 }
0x6219   :  { %6406 = vtanh.f32 %v4828_v51 }
0x6223   :  { %v6407_v40 = vpop.eup %6406 }
0x6224   :  { %4831 = vrot.lane.b32.xlu0 %v6407_v40, %s6463_s27 }
0x6228   :  { %4856 = vrot.lane.b32.xlu0 %v4828_v51, %s6465_s16 }
0x6296   :  { %v4832_v45 = vpop.permute.xlu0 %4831 }
0x6297   :  { %v4834_v25 = vmul.f32 %v6405_v44, %v4832_v45 }
0x6299   :  { %4836 = vrot.lane.b32.xlu1 %v4834_v25, %s6464_s28 }
0x629a   :  { %v4857_v46 = vpop.permute.xlu0 %4856 }
0x629b   :  { %4859 = vst.msk [vmem:[%s7496_s6] sm:$0xff] %vm71_vm1, %v4857_v46 }
0x630b   :  { %v4837_v29 = vpop.permute.xlu1 %4836 }
0x630c   :  { %4853 = vst.msk [vmem:[%s7494_s4 + $0x38] sm:$0xff] %vm71_vm1, %v4837_v29  ;;  %4854 = vst.msk [vmem:[%s7495_s5] sm:$0xff] %vm71_vm1, %v4837_v29 }
0x630d   :  { %4872 = vsyncpa [#allocation3], 1 }
0x630e   :  { %4873 = vsyncpa [#allocation5], 1 }

</bundles_post_ra>
